<compile_context>
chip_gen: v5e
topology: v5e:2x2
jax: 0.10.0
libtpu: 0.0.40
codegen_flags: <defaults>
</compile_context>

<pallas_src>
import functools

import numpy as np
import jax
import jax.numpy as jnp
from jax import lax
from jax.experimental import pallas as pl
from jax.experimental.pallas import tpu as pltpu

KSIZE = 7
PAD = KSIZE // 2
KK = KSIZE * KSIZE


def _spatial_attn_kernel(x_ref, coef_ref, bsp_ref, o_ref, *, shifts):
    # x_ref:    (Bt, C, HWp)   VMEM, lane-dense in padded H*W
    # coef_ref: (2*KK, HWp)    VMEM; row t = w_avg[t]*mask[t], row KK+t = w_max[t]*mask[t]
    # bsp_ref:  (1,)           SMEM conv bias
    # o_ref:    (Bt, HWp)      VMEM (middle dim of the (B, 1, HWp) output is squeezed)
    x = x_ref[...]
    Bt = x.shape[0]
    HWp = x.shape[2]

    # ---- channel pooling: max in native dtype; mean accumulated in f32 ----
    mx = jnp.max(x, axis=1).astype(jnp.float32)                  # (Bt, HWp)
    # (astype is a no-op for f32 inputs; for bf16 it keeps mean accumulation in f32)
    avg = jnp.mean(x.astype(jnp.float32), axis=1)                # (Bt, HWp)

    # ---- 7x7 conv as 49 rolled, coefficient-masked FMAs ----
    acc = jnp.zeros((Bt, HWp), jnp.float32)
    for t in range(KK):
        sh = shifts[t]                                           # static int in [0, HWp)
        ra = pltpu.roll(avg, sh, 1) if sh else avg               # XLU lane rotate
        rm = pltpu.roll(mx, sh, 1) if sh else mx
        acc = (acc
               + coef_ref[t:t + 1, :] * ra
               + coef_ref[KK + t:KK + t + 1, :] * rm)

    o_ref[...] = jax.nn.sigmoid(acc + bsp_ref[0]).astype(o_ref.dtype)


def spatial_attention_pallas(x, wsp, bsp, *, block_bytes_target=4 << 20):
    """x: (B, C, H, W); wsp: (1, 2, 7, 7) [avg-ch, max-ch]; bsp: (1,). Returns (B, 1, H, W)."""
    B, C, H, W = x.shape
    HW = H * W
    HWp = ((HW + 127) // 128) * 128          # lane-density guard: pad H*W to a 128 multiple

    x_flat = x.reshape(B, C, HW)
    if HWp != HW:
        x_flat = jnp.pad(x_flat, ((0, 0), (0, 0), (0, HWp - HW)))

    # ---- host-side: tap shifts + weight*validity-mask coefficient rows ----
    row = np.arange(HW, dtype=np.int64) // W
    col = np.arange(HW, dtype=np.int64) % W
    mask_np = np.zeros((KK, HWp), np.float32)
    shifts = []
    t = 0
    for kh in range(KSIZE):
        for kw in range(KSIZE):
            dh, dw = kh - PAD, kw - PAD
            valid = ((row + dh >= 0) & (row + dh < H) &
                     (col + dw >= 0) & (col + dw < W))
            mask_np[t, :HW] = valid.astype(np.float32)
            # roll amount r s.t. rolled[p] = flat[p + dh*W + dw] for in-range taps
            shifts.append(int((-(dh * W + dw)) % HWp))
            t += 1
    wflat = wsp.reshape(2, KK).astype(jnp.float32)                       # (2, 49): [avg; max]
    coef = (wflat[:, :, None] * jnp.asarray(mask_np)[None, :, :]).reshape(2 * KK, HWp)
    bsp_flat = bsp.reshape(-1).astype(jnp.float32)                       # (1,)

    # ---- batch tile: ~block_bytes_target input blocks, sublane-aligned ----
    itemsize = x.dtype.itemsize
    per_image_bytes = C * HWp * itemsize
    bt_cap = max(1, int(block_bytes_target // per_image_bytes))
    Bt = int(max(1, min(B, bt_cap)))
    if Bt >= 8:
        Bt = (Bt // 8) * 8                   # multiple of the f32 sublane count
    if Bt == B and B >= 16:
        Bt = ((B // 2 + 7) // 8) * 8         # keep >= 2 grid steps (v7x megacore / pipelining)
    num_blocks = pl.cdiv(B, Bt)              # ragged last block: padded rows are discarded

    in_block_bytes = Bt * C * HWp * itemsize
    out_block_bytes = Bt * HWp * itemsize
    coef_bytes = 2 * KK * HWp * 4
    vmem_limit = 2 * (in_block_bytes + out_block_bytes) + 2 * coef_bytes + (4 << 20)
    vmem_limit = int(min(max(vmem_limit, 16 << 20), 64 << 20))

    kernel = functools.partial(_spatial_attn_kernel, shifts=tuple(shifts))

    out = pl.pallas_call(
        kernel,
        out_shape=jax.ShapeDtypeStruct((B, 1, HWp), x.dtype),
        grid=(num_blocks,),
        in_specs=[
            pl.BlockSpec((Bt, C, HWp), lambda b: (b, 0, 0)),
            pl.BlockSpec((2 * KK, HWp), lambda b: (0, 0)),       # resident coefficient table
            pl.BlockSpec(memory_space=pltpu.MemorySpace.SMEM),   # bias scalar
        ],
        out_specs=pl.BlockSpec((Bt, None, HWp), lambda b: (b, 0, 0)),
        compiler_params=pltpu.CompilerParams(
            dimension_semantics=("parallel",),
            vmem_limit_bytes=vmem_limit),
    )(x_flat, coef, bsp_flat)

    if HWp != HW:
        out = out[:, :, :HW]
    return out.reshape(B, 1, H, W)


def spatial_attention_reference(x, wsp, bsp):
    # pure-JAX reference of the PyTorch forward pass (for verification)
    avg = jnp.mean(x, axis=1, keepdims=True)
    mx = jnp.max(x, axis=1, keepdims=True)
    inp = jnp.concatenate([avg, mx], axis=1)                     # (B, 2, H, W)
    conv = lax.conv_general_dilated(
        inp, wsp, window_strides=(1, 1),
        padding=[(PAD, PAD), (PAD, PAD)],
        dimension_numbers=("NCHW", "OIHW", "NCHW"),
        precision=lax.Precision.HIGHEST)
    return jax.nn.sigmoid(conv + bsp[0])                         # (B, 1, H, W)


if __name__ == "__main__":
    B, C, H, W = 2, 4, 16, 16

    key = jax.random.PRNGKey(0)
    kx, kw_, kb = jax.random.split(key, 3)

    x = jax.random.normal(kx, (B, C, H, W), dtype=jnp.float32)
    wsp = 0.1 * jax.random.normal(kw_, (1, 2, KSIZE, KSIZE), dtype=jnp.float32)  # Conv2d(2,1,7).weight
    bsp = 0.1 * jax.random.normal(kb, (1,), dtype=jnp.float32)                   # Conv2d(2,1,7).bias

    out = jax.block_until_ready(spatial_attention_pallas(x, wsp, bsp))
    ref = jax.block_until_ready(spatial_attention_reference(x, wsp, bsp))

    assert out.shape == (B, 1, H, W)
    max_err = jnp.max(jnp.abs(out - ref))
    assert jnp.allclose(out, ref, atol=1e-4, rtol=1e-4), f"max abs err = {max_err}"

    print("KERNEL_OK")
</pallas_src>

<mosaic_0001>
module attributes {stable_mosaic.version = 11 : i64} {
  func.func @_spatial_attn_kernel(%arg0: i32, %arg1: memref<2x4x256xf32, #tpu.memory_space<vmem>>, %arg2: memref<98x256xf32, #tpu.memory_space<vmem>>, %arg3: memref<1xf32, #tpu.memory_space<smem>>, %arg4: memref<2x1x256xf32, #tpu.memory_space<vmem>>) attributes {dimension_semantics = [#tpu.dimension_semantics<parallel>], iteration_bounds = array<i64: 1>, scalar_prefetch = 0 : i64, scratch_operands = 0 : i64, tpu.core_type = #tpu.core_type<tc>, window_params = [{transform_indices = @transform_0, window_bounds = array<i64: 2, 4, 256>}, {pipeline_mode = #tpu.pipeline_mode<synchronous>, transform_indices = @transform_1, window_bounds = array<i64: 98, 256>}, {transform_indices = @transform_2, window_bounds = array<i64: 1>}, {transform_indices = @transform_3, window_bounds = array<i64: 2, 1, 256>}]} {
    %c0 = arith.constant 0 : index
    %c0_0 = arith.constant 0 : index
    %c0_1 = arith.constant 0 : index
    %0 = vector.load %arg1[%c0, %c0_0, %c0_1] : memref<2x4x256xf32, #tpu.memory_space<vmem>>, vector<2x4x256xf32>
    %cst = arith.constant dense<0xFF800000> : vector<2x256xf32>
    %1 = vector.multi_reduction <maximumf>, %0, %cst [1] : vector<2x4x256xf32> to vector<2x256xf32>
    %cst_2 = arith.constant dense<0.000000e+00> : vector<2x256xf32>
    %2 = vector.multi_reduction <add>, %0, %cst_2 [1] : vector<2x4x256xf32> to vector<2x256xf32>
    %cst_3 = arith.constant 4.000000e+00 : f32
    %3 = vector.broadcast %cst_3 : f32 to vector<2x256xf32>
    %4 = arith.divf %2, %3 : vector<2x256xf32>
    %cst_4 = arith.constant 0.000000e+00 : f32
    %5 = vector.broadcast %cst_4 : f32 to vector<2x256xf32>
    %c51_i32 = arith.constant 51 : i32
    %6 = tpu.dynamic_rotate %4 by %c51_i32 dim 1 : vector<2x256xf32>, i32 -> vector<2x256xf32>
    %c51_i32_5 = arith.constant 51 : i32
    %7 = tpu.dynamic_rotate %1 by %c51_i32_5 dim 1 : vector<2x256xf32>, i32 -> vector<2x256xf32>
    %c0_6 = arith.constant 0 : index
    %c0_7 = arith.constant 0 : index
    %8 = vector.load %arg2[%c0_6, %c0_7] : memref<98x256xf32, #tpu.memory_space<vmem>>, vector<1x256xf32>
    %9 = vector.broadcast %8 : vector<1x256xf32> to vector<2x256xf32>
    %10 = arith.mulf %9, %6 : vector<2x256xf32>
    %11 = arith.addf %5, %10 : vector<2x256xf32>
    %c49 = arith.constant 49 : index
    %c0_8 = arith.constant 0 : index
    %12 = vector.load %arg2[%c49, %c0_8] : memref<98x256xf32, #tpu.memory_space<vmem>>, vector<1x256xf32>
    %13 = vector.broadcast %12 : vector<1x256xf32> to vector<2x256xf32>
    %14 = arith.mulf %13, %7 : vector<2x256xf32>
    %15 = arith.addf %11, %14 : vector<2x256xf32>
    %c50_i32 = arith.constant 50 : i32
    %16 = tpu.dynamic_rotate %4 by %c50_i32 dim 1 : vector<2x256xf32>, i32 -> vector<2x256xf32>
    %c50_i32_9 = arith.constant 50 : i32
    %17 = tpu.dynamic_rotate %1 by %c50_i32_9 dim 1 : vector<2x256xf32>, i32 -> vector<2x256xf32>
    %c1 = arith.constant 1 : index
    %c0_10 = arith.constant 0 : index
    %18 = vector.load %arg2[%c1, %c0_10] : memref<98x256xf32, #tpu.memory_space<vmem>>, vector<1x256xf32>
    %19 = vector.broadcast %18 : vector<1x256xf32> to vector<2x256xf32>
    %20 = arith.mulf %19, %16 : vector<2x256xf32>
    %21 = arith.addf %15, %20 : vector<2x256xf32>
    %c50 = arith.constant 50 : index
    %c0_11 = arith.constant 0 : index
    %22 = vector.load %arg2[%c50, %c0_11] : memref<98x256xf32, #tpu.memory_space<vmem>>, vector<1x256xf32>
    %23 = vector.broadcast %22 : vector<1x256xf32> to vector<2x256xf32>
    %24 = arith.mulf %23, %17 : vector<2x256xf32>
    %25 = arith.addf %21, %24 : vector<2x256xf32>
    %c49_i32 = arith.constant 49 : i32
    %26 = tpu.dynamic_rotate %4 by %c49_i32 dim 1 : vector<2x256xf32>, i32 -> vector<2x256xf32>
    %c49_i32_12 = arith.constant 49 : i32
    %27 = tpu.dynamic_rotate %1 by %c49_i32_12 dim 1 : vector<2x256xf32>, i32 -> vector<2x256xf32>
    %c2 = arith.constant 2 : index
    %c0_13 = arith.constant 0 : index
    %28 = vector.load %arg2[%c2, %c0_13] : memref<98x256xf32, #tpu.memory_space<vmem>>, vector<1x256xf32>
    %29 = vector.broadcast %28 : vector<1x256xf32> to vector<2x256xf32>
    %30 = arith.mulf %29, %26 : vector<2x256xf32>
    %31 = arith.addf %25, %30 : vector<2x256xf32>
    %c51 = arith.constant 51 : index
    %c0_14 = arith.constant 0 : index
    %32 = vector.load %arg2[%c51, %c0_14] : memref<98x256xf32, #tpu.memory_space<vmem>>, vector<1x256xf32>
    %33 = vector.broadcast %32 : vector<1x256xf32> to vector<2x256xf32>
    %34 = arith.mulf %33, %27 : vector<2x256xf32>
    %35 = arith.addf %31, %34 : vector<2x256xf32>
    %c48_i32 = arith.constant 48 : i32
    %36 = tpu.dynamic_rotate %4 by %c48_i32 dim 1 : vector<2x256xf32>, i32 -> vector<2x256xf32>
    %c48_i32_15 = arith.constant 48 : i32
    %37 = tpu.dynamic_rotate %1 by %c48_i32_15 dim 1 : vector<2x256xf32>, i32 -> vector<2x256xf32>
    %c3 = arith.constant 3 : index
    %c0_16 = arith.constant 0 : index
    %38 = vector.load %arg2[%c3, %c0_16] : memref<98x256xf32, #tpu.memory_space<vmem>>, vector<1x256xf32>
    %39 = vector.broadcast %38 : vector<1x256xf32> to vector<2x256xf32>
    %40 = arith.mulf %39, %36 : vector<2x256xf32>
    %41 = arith.addf %35, %40 : vector<2x256xf32>
    %c52 = arith.constant 52 : index
    %c0_17 = arith.constant 0 : index
    %42 = vector.load %arg2[%c52, %c0_17] : memref<98x256xf32, #tpu.memory_space<vmem>>, vector<1x256xf32>
    %43 = vector.broadcast %42 : vector<1x256xf32> to vector<2x256xf32>
    %44 = arith.mulf %43, %37 : vector<2x256xf32>
    %45 = arith.addf %41, %44 : vector<2x256xf32>
    %c47_i32 = arith.constant 47 : i32
    %46 = tpu.dynamic_rotate %4 by %c47_i32 dim 1 : vector<2x256xf32>, i32 -> vector<2x256xf32>
    %c47_i32_18 = arith.constant 47 : i32
    %47 = tpu.dynamic_rotate %1 by %c47_i32_18 dim 1 : vector<2x256xf32>, i32 -> vector<2x256xf32>
    %c4 = arith.constant 4 : index
    %c0_19 = arith.constant 0 : index
    %48 = vector.load %arg2[%c4, %c0_19] : memref<98x256xf32, #tpu.memory_space<vmem>>, vector<1x256xf32>
    %49 = vector.broadcast %48 : vector<1x256xf32> to vector<2x256xf32>
    %50 = arith.mulf %49, %46 : vector<2x256xf32>
    %51 = arith.addf %45, %50 : vector<2x256xf32>
    %c53 = arith.constant 53 : index
    %c0_20 = arith.constant 0 : index
    %52 = vector.load %arg2[%c53, %c0_20] : memref<98x256xf32, #tpu.memory_space<vmem>>, vector<1x256xf32>
    %53 = vector.broadcast %52 : vector<1x256xf32> to vector<2x256xf32>
    %54 = arith.mulf %53, %47 : vector<2x256xf32>
    %55 = arith.addf %51, %54 : vector<2x256xf32>
    %c46_i32 = arith.constant 46 : i32
    %56 = tpu.dynamic_rotate %4 by %c46_i32 dim 1 : vector<2x256xf32>, i32 -> vector<2x256xf32>
    %c46_i32_21 = arith.constant 46 : i32
    %57 = tpu.dynamic_rotate %1 by %c46_i32_21 dim 1 : vector<2x256xf32>, i32 -> vector<2x256xf32>
    %c5 = arith.constant 5 : index
    %c0_22 = arith.constant 0 : index
    %58 = vector.load %arg2[%c5, %c0_22] : memref<98x256xf32, #tpu.memory_space<vmem>>, vector<1x256xf32>
    %59 = vector.broadcast %58 : vector<1x256xf32> to vector<2x256xf32>
    %60 = arith.mulf %59, %56 : vector<2x256xf32>
    %61 = arith.addf %55, %60 : vector<2x256xf32>
    %c54 = arith.constant 54 : index
    %c0_23 = arith.constant 0 : index
    %62 = vector.load %arg2[%c54, %c0_23] : memref<98x256xf32, #tpu.memory_space<vmem>>, vector<1x256xf32>
    %63 = vector.broadcast %62 : vector<1x256xf32> to vector<2x256xf32>
    %64 = arith.mulf %63, %57 : vector<2x256xf32>
    %65 = arith.addf %61, %64 : vector<2x256xf32>
    %c45_i32 = arith.constant 45 : i32
    %66 = tpu.dynamic_rotate %4 by %c45_i32 dim 1 : vector<2x256xf32>, i32 -> vector<2x256xf32>
    %c45_i32_24 = arith.constant 45 : i32
    %67 = tpu.dynamic_rotate %1 by %c45_i32_24 dim 1 : vector<2x256xf32>, i32 -> vector<2x256xf32>
    %c6 = arith.constant 6 : index
    %c0_25 = arith.constant 0 : index
    %68 = vector.load %arg2[%c6, %c0_25] : memref<98x256xf32, #tpu.memory_space<vmem>>, vector<1x256xf32>
    %69 = vector.broadcast %68 : vector<1x256xf32> to vector<2x256xf32>
    %70 = arith.mulf %69, %66 : vector<2x256xf32>
    %71 = arith.addf %65, %70 : vector<2x256xf32>
    %c55 = arith.constant 55 : index
    %c0_26 = arith.constant 0 : index
    %72 = vector.load %arg2[%c55, %c0_26] : memref<98x256xf32, #tpu.memory_space<vmem>>, vector<1x256xf32>
    %73 = vector.broadcast %72 : vector<1x256xf32> to vector<2x256xf32>
    %74 = arith.mulf %73, %67 : vector<2x256xf32>
    %75 = arith.addf %71, %74 : vector<2x256xf32>
    %c35_i32 = arith.constant 35 : i32
    %76 = tpu.dynamic_rotate %4 by %c35_i32 dim 1 : vector<2x256xf32>, i32 -> vector<2x256xf32>
    %c35_i32_27 = arith.constant 35 : i32
    %77 = tpu.dynamic_rotate %1 by %c35_i32_27 dim 1 : vector<2x256xf32>, i32 -> vector<2x256xf32>
    %c7 = arith.constant 7 : index
    %c0_28 = arith.constant 0 : index
    %78 = vector.load %arg2[%c7, %c0_28] : memref<98x256xf32, #tpu.memory_space<vmem>>, vector<1x256xf32>
    %79 = vector.broadcast %78 : vector<1x256xf32> to vector<2x256xf32>
    %80 = arith.mulf %79, %76 : vector<2x256xf32>
    %81 = arith.addf %75, %80 : vector<2x256xf32>
    %c56 = arith.constant 56 : index
    %c0_29 = arith.constant 0 : index
    %82 = vector.load %arg2[%c56, %c0_29] : memref<98x256xf32, #tpu.memory_space<vmem>>, vector<1x256xf32>
    %83 = vector.broadcast %82 : vector<1x256xf32> to vector<2x256xf32>
    %84 = arith.mulf %83, %77 : vector<2x256xf32>
    %85 = arith.addf %81, %84 : vector<2x256xf32>
    %c34_i32 = arith.constant 34 : i32
    %86 = tpu.dynamic_rotate %4 by %c34_i32 dim 1 : vector<2x256xf32>, i32 -> vector<2x256xf32>
    %c34_i32_30 = arith.constant 34 : i32
    %87 = tpu.dynamic_rotate %1 by %c34_i32_30 dim 1 : vector<2x256xf32>, i32 -> vector<2x256xf32>
    %c8 = arith.constant 8 : index
    %c0_31 = arith.constant 0 : index
    %88 = vector.load %arg2[%c8, %c0_31] : memref<98x256xf32, #tpu.memory_space<vmem>>, vector<1x256xf32>
    %89 = vector.broadcast %88 : vector<1x256xf32> to vector<2x256xf32>
    %90 = arith.mulf %89, %86 : vector<2x256xf32>
    %91 = arith.addf %85, %90 : vector<2x256xf32>
    %c57 = arith.constant 57 : index
    %c0_32 = arith.constant 0 : index
    %92 = vector.load %arg2[%c57, %c0_32] : memref<98x256xf32, #tpu.memory_space<vmem>>, vector<1x256xf32>
    %93 = vector.broadcast %92 : vector<1x256xf32> to vector<2x256xf32>
    %94 = arith.mulf %93, %87 : vector<2x256xf32>
    %95 = arith.addf %91, %94 : vector<2x256xf32>
    %c33_i32 = arith.constant 33 : i32
    %96 = tpu.dynamic_rotate %4 by %c33_i32 dim 1 : vector<2x256xf32>, i32 -> vector<2x256xf32>
    %c33_i32_33 = arith.constant 33 : i32
    %97 = tpu.dynamic_rotate %1 by %c33_i32_33 dim 1 : vector<2x256xf32>, i32 -> vector<2x256xf32>
    %c9 = arith.constant 9 : index
    %c0_34 = arith.constant 0 : index
    %98 = vector.load %arg2[%c9, %c0_34] : memref<98x256xf32, #tpu.memory_space<vmem>>, vector<1x256xf32>
    %99 = vector.broadcast %98 : vector<1x256xf32> to vector<2x256xf32>
    %100 = arith.mulf %99, %96 : vector<2x256xf32>
    %101 = arith.addf %95, %100 : vector<2x256xf32>
    %c58 = arith.constant 58 : index
    %c0_35 = arith.constant 0 : index
    %102 = vector.load %arg2[%c58, %c0_35] : memref<98x256xf32, #tpu.memory_space<vmem>>, vector<1x256xf32>
    %103 = vector.broadcast %102 : vector<1x256xf32> to vector<2x256xf32>
    %104 = arith.mulf %103, %97 : vector<2x256xf32>
    %105 = arith.addf %101, %104 : vector<2x256xf32>
    %c32_i32 = arith.constant 32 : i32
    %106 = tpu.dynamic_rotate %4 by %c32_i32 dim 1 : vector<2x256xf32>, i32 -> vector<2x256xf32>
    %c32_i32_36 = arith.constant 32 : i32
    %107 = tpu.dynamic_rotate %1 by %c32_i32_36 dim 1 : vector<2x256xf32>, i32 -> vector<2x256xf32>
    %c10 = arith.constant 10 : index
    %c0_37 = arith.constant 0 : index
    %108 = vector.load %arg2[%c10, %c0_37] : memref<98x256xf32, #tpu.memory_space<vmem>>, vector<1x256xf32>
    %109 = vector.broadcast %108 : vector<1x256xf32> to vector<2x256xf32>
    %110 = arith.mulf %109, %106 : vector<2x256xf32>
    %111 = arith.addf %105, %110 : vector<2x256xf32>
    %c59 = arith.constant 59 : index
    %c0_38 = arith.constant 0 : index
    %112 = vector.load %arg2[%c59, %c0_38] : memref<98x256xf32, #tpu.memory_space<vmem>>, vector<1x256xf32>
    %113 = vector.broadcast %112 : vector<1x256xf32> to vector<2x256xf32>
    %114 = arith.mulf %113, %107 : vector<2x256xf32>
    %115 = arith.addf %111, %114 : vector<2x256xf32>
    %c31_i32 = arith.constant 31 : i32
    %116 = tpu.dynamic_rotate %4 by %c31_i32 dim 1 : vector<2x256xf32>, i32 -> vector<2x256xf32>
    %c31_i32_39 = arith.constant 31 : i32
    %117 = tpu.dynamic_rotate %1 by %c31_i32_39 dim 1 : vector<2x256xf32>, i32 -> vector<2x256xf32>
    %c11 = arith.constant 11 : index
    %c0_40 = arith.constant 0 : index
    %118 = vector.load %arg2[%c11, %c0_40] : memref<98x256xf32, #tpu.memory_space<vmem>>, vector<1x256xf32>
    %119 = vector.broadcast %118 : vector<1x256xf32> to vector<2x256xf32>
    %120 = arith.mulf %119, %116 : vector<2x256xf32>
    %121 = arith.addf %115, %120 : vector<2x256xf32>
    %c60 = arith.constant 60 : index
    %c0_41 = arith.constant 0 : index
    %122 = vector.load %arg2[%c60, %c0_41] : memref<98x256xf32, #tpu.memory_space<vmem>>, vector<1x256xf32>
    %123 = vector.broadcast %122 : vector<1x256xf32> to vector<2x256xf32>
    %124 = arith.mulf %123, %117 : vector<2x256xf32>
    %125 = arith.addf %121, %124 : vector<2x256xf32>
    %c30_i32 = arith.constant 30 : i32
    %126 = tpu.dynamic_rotate %4 by %c30_i32 dim 1 : vector<2x256xf32>, i32 -> vector<2x256xf32>
    %c30_i32_42 = arith.constant 30 : i32
    %127 = tpu.dynamic_rotate %1 by %c30_i32_42 dim 1 : vector<2x256xf32>, i32 -> vector<2x256xf32>
    %c12 = arith.constant 12 : index
    %c0_43 = arith.constant 0 : index
    %128 = vector.load %arg2[%c12, %c0_43] : memref<98x256xf32, #tpu.memory_space<vmem>>, vector<1x256xf32>
    %129 = vector.broadcast %128 : vector<1x256xf32> to vector<2x256xf32>
    %130 = arith.mulf %129, %126 : vector<2x256xf32>
    %131 = arith.addf %125, %130 : vector<2x256xf32>
    %c61 = arith.constant 61 : index
    %c0_44 = arith.constant 0 : index
    %132 = vector.load %arg2[%c61, %c0_44] : memref<98x256xf32, #tpu.memory_space<vmem>>, vector<1x256xf32>
    %133 = vector.broadcast %132 : vector<1x256xf32> to vector<2x256xf32>
    %134 = arith.mulf %133, %127 : vector<2x256xf32>
    %135 = arith.addf %131, %134 : vector<2x256xf32>
    %c29_i32 = arith.constant 29 : i32
    %136 = tpu.dynamic_rotate %4 by %c29_i32 dim 1 : vector<2x256xf32>, i32 -> vector<2x256xf32>
    %c29_i32_45 = arith.constant 29 : i32
    %137 = tpu.dynamic_rotate %1 by %c29_i32_45 dim 1 : vector<2x256xf32>, i32 -> vector<2x256xf32>
    %c13 = arith.constant 13 : index
    %c0_46 = arith.constant 0 : index
    %138 = vector.load %arg2[%c13, %c0_46] : memref<98x256xf32, #tpu.memory_space<vmem>>, vector<1x256xf32>
    %139 = vector.broadcast %138 : vector<1x256xf32> to vector<2x256xf32>
    %140 = arith.mulf %139, %136 : vector<2x256xf32>
    %141 = arith.addf %135, %140 : vector<2x256xf32>
    %c62 = arith.constant 62 : index
    %c0_47 = arith.constant 0 : index
    %142 = vector.load %arg2[%c62, %c0_47] : memref<98x256xf32, #tpu.memory_space<vmem>>, vector<1x256xf32>
    %143 = vector.broadcast %142 : vector<1x256xf32> to vector<2x256xf32>
    %144 = arith.mulf %143, %137 : vector<2x256xf32>
    %145 = arith.addf %141, %144 : vector<2x256xf32>
    %c19_i32 = arith.constant 19 : i32
    %146 = tpu.dynamic_rotate %4 by %c19_i32 dim 1 : vector<2x256xf32>, i32 -> vector<2x256xf32>
    %c19_i32_48 = arith.constant 19 : i32
    %147 = tpu.dynamic_rotate %1 by %c19_i32_48 dim 1 : vector<2x256xf32>, i32 -> vector<2x256xf32>
    %c14 = arith.constant 14 : index
    %c0_49 = arith.constant 0 : index
    %148 = vector.load %arg2[%c14, %c0_49] : memref<98x256xf32, #tpu.memory_space<vmem>>, vector<1x256xf32>
    %149 = vector.broadcast %148 : vector<1x256xf32> to vector<2x256xf32>
    %150 = arith.mulf %149, %146 : vector<2x256xf32>
    %151 = arith.addf %145, %150 : vector<2x256xf32>
    %c63 = arith.constant 63 : index
    %c0_50 = arith.constant 0 : index
    %152 = vector.load %arg2[%c63, %c0_50] : memref<98x256xf32, #tpu.memory_space<vmem>>, vector<1x256xf32>
    %153 = vector.broadcast %152 : vector<1x256xf32> to vector<2x256xf32>
    %154 = arith.mulf %153, %147 : vector<2x256xf32>
    %155 = arith.addf %151, %154 : vector<2x256xf32>
    %c18_i32 = arith.constant 18 : i32
    %156 = tpu.dynamic_rotate %4 by %c18_i32 dim 1 : vector<2x256xf32>, i32 -> vector<2x256xf32>
    %c18_i32_51 = arith.constant 18 : i32
    %157 = tpu.dynamic_rotate %1 by %c18_i32_51 dim 1 : vector<2x256xf32>, i32 -> vector<2x256xf32>
    %c15 = arith.constant 15 : index
    %c0_52 = arith.constant 0 : index
    %158 = vector.load %arg2[%c15, %c0_52] : memref<98x256xf32, #tpu.memory_space<vmem>>, vector<1x256xf32>
    %159 = vector.broadcast %158 : vector<1x256xf32> to vector<2x256xf32>
    %160 = arith.mulf %159, %156 : vector<2x256xf32>
    %161 = arith.addf %155, %160 : vector<2x256xf32>
    %c64 = arith.constant 64 : index
    %c0_53 = arith.constant 0 : index
    %162 = vector.load %arg2[%c64, %c0_53] : memref<98x256xf32, #tpu.memory_space<vmem>>, vector<1x256xf32>
    %163 = vector.broadcast %162 : vector<1x256xf32> to vector<2x256xf32>
    %164 = arith.mulf %163, %157 : vector<2x256xf32>
    %165 = arith.addf %161, %164 : vector<2x256xf32>
    %c17_i32 = arith.constant 17 : i32
    %166 = tpu.dynamic_rotate %4 by %c17_i32 dim 1 : vector<2x256xf32>, i32 -> vector<2x256xf32>
    %c17_i32_54 = arith.constant 17 : i32
    %167 = tpu.dynamic_rotate %1 by %c17_i32_54 dim 1 : vector<2x256xf32>, i32 -> vector<2x256xf32>
    %c16 = arith.constant 16 : index
    %c0_55 = arith.constant 0 : index
    %168 = vector.load %arg2[%c16, %c0_55] : memref<98x256xf32, #tpu.memory_space<vmem>>, vector<1x256xf32>
    %169 = vector.broadcast %168 : vector<1x256xf32> to vector<2x256xf32>
    %170 = arith.mulf %169, %166 : vector<2x256xf32>
    %171 = arith.addf %165, %170 : vector<2x256xf32>
    %c65 = arith.constant 65 : index
    %c0_56 = arith.constant 0 : index
    %172 = vector.load %arg2[%c65, %c0_56] : memref<98x256xf32, #tpu.memory_space<vmem>>, vector<1x256xf32>
    %173 = vector.broadcast %172 : vector<1x256xf32> to vector<2x256xf32>
    %174 = arith.mulf %173, %167 : vector<2x256xf32>
    %175 = arith.addf %171, %174 : vector<2x256xf32>
    %c16_i32 = arith.constant 16 : i32
    %176 = tpu.dynamic_rotate %4 by %c16_i32 dim 1 : vector<2x256xf32>, i32 -> vector<2x256xf32>
    %c16_i32_57 = arith.constant 16 : i32
    %177 = tpu.dynamic_rotate %1 by %c16_i32_57 dim 1 : vector<2x256xf32>, i32 -> vector<2x256xf32>
    %c17 = arith.constant 17 : index
    %c0_58 = arith.constant 0 : index
    %178 = vector.load %arg2[%c17, %c0_58] : memref<98x256xf32, #tpu.memory_space<vmem>>, vector<1x256xf32>
    %179 = vector.broadcast %178 : vector<1x256xf32> to vector<2x256xf32>
    %180 = arith.mulf %179, %176 : vector<2x256xf32>
    %181 = arith.addf %175, %180 : vector<2x256xf32>
    %c66 = arith.constant 66 : index
    %c0_59 = arith.constant 0 : index
    %182 = vector.load %arg2[%c66, %c0_59] : memref<98x256xf32, #tpu.memory_space<vmem>>, vector<1x256xf32>
    %183 = vector.broadcast %182 : vector<1x256xf32> to vector<2x256xf32>
    %184 = arith.mulf %183, %177 : vector<2x256xf32>
    %185 = arith.addf %181, %184 : vector<2x256xf32>
    %c15_i32 = arith.constant 15 : i32
    %186 = tpu.dynamic_rotate %4 by %c15_i32 dim 1 : vector<2x256xf32>, i32 -> vector<2x256xf32>
    %c15_i32_60 = arith.constant 15 : i32
    %187 = tpu.dynamic_rotate %1 by %c15_i32_60 dim 1 : vector<2x256xf32>, i32 -> vector<2x256xf32>
    %c18 = arith.constant 18 : index
    %c0_61 = arith.constant 0 : index
    %188 = vector.load %arg2[%c18, %c0_61] : memref<98x256xf32, #tpu.memory_space<vmem>>, vector<1x256xf32>
    %189 = vector.broadcast %188 : vector<1x256xf32> to vector<2x256xf32>
    %190 = arith.mulf %189, %186 : vector<2x256xf32>
    %191 = arith.addf %185, %190 : vector<2x256xf32>
    %c67 = arith.constant 67 : index
    %c0_62 = arith.constant 0 : index
    %192 = vector.load %arg2[%c67, %c0_62] : memref<98x256xf32, #tpu.memory_space<vmem>>, vector<1x256xf32>
    %193 = vector.broadcast %192 : vector<1x256xf32> to vector<2x256xf32>
    %194 = arith.mulf %193, %187 : vector<2x256xf32>
    %195 = arith.addf %191, %194 : vector<2x256xf32>
    %c14_i32 = arith.constant 14 : i32
    %196 = tpu.dynamic_rotate %4 by %c14_i32 dim 1 : vector<2x256xf32>, i32 -> vector<2x256xf32>
    %c14_i32_63 = arith.constant 14 : i32
    %197 = tpu.dynamic_rotate %1 by %c14_i32_63 dim 1 : vector<2x256xf32>, i32 -> vector<2x256xf32>
    %c19 = arith.constant 19 : index
    %c0_64 = arith.constant 0 : index
    %198 = vector.load %arg2[%c19, %c0_64] : memref<98x256xf32, #tpu.memory_space<vmem>>, vector<1x256xf32>
    %199 = vector.broadcast %198 : vector<1x256xf32> to vector<2x256xf32>
    %200 = arith.mulf %199, %196 : vector<2x256xf32>
    %201 = arith.addf %195, %200 : vector<2x256xf32>
    %c68 = arith.constant 68 : index
    %c0_65 = arith.constant 0 : index
    %202 = vector.load %arg2[%c68, %c0_65] : memref<98x256xf32, #tpu.memory_space<vmem>>, vector<1x256xf32>
    %203 = vector.broadcast %202 : vector<1x256xf32> to vector<2x256xf32>
    %204 = arith.mulf %203, %197 : vector<2x256xf32>
    %205 = arith.addf %201, %204 : vector<2x256xf32>
    %c13_i32 = arith.constant 13 : i32
    %206 = tpu.dynamic_rotate %4 by %c13_i32 dim 1 : vector<2x256xf32>, i32 -> vector<2x256xf32>
    %c13_i32_66 = arith.constant 13 : i32
    %207 = tpu.dynamic_rotate %1 by %c13_i32_66 dim 1 : vector<2x256xf32>, i32 -> vector<2x256xf32>
    %c20 = arith.constant 20 : index
    %c0_67 = arith.constant 0 : index
    %208 = vector.load %arg2[%c20, %c0_67] : memref<98x256xf32, #tpu.memory_space<vmem>>, vector<1x256xf32>
    %209 = vector.broadcast %208 : vector<1x256xf32> to vector<2x256xf32>
    %210 = arith.mulf %209, %206 : vector<2x256xf32>
    %211 = arith.addf %205, %210 : vector<2x256xf32>
    %c69 = arith.constant 69 : index
    %c0_68 = arith.constant 0 : index
    %212 = vector.load %arg2[%c69, %c0_68] : memref<98x256xf32, #tpu.memory_space<vmem>>, vector<1x256xf32>
    %213 = vector.broadcast %212 : vector<1x256xf32> to vector<2x256xf32>
    %214 = arith.mulf %213, %207 : vector<2x256xf32>
    %215 = arith.addf %211, %214 : vector<2x256xf32>
    %c3_i32 = arith.constant 3 : i32
    %216 = tpu.dynamic_rotate %4 by %c3_i32 dim 1 : vector<2x256xf32>, i32 -> vector<2x256xf32>
    %c3_i32_69 = arith.constant 3 : i32
    %217 = tpu.dynamic_rotate %1 by %c3_i32_69 dim 1 : vector<2x256xf32>, i32 -> vector<2x256xf32>
    %c21 = arith.constant 21 : index
    %c0_70 = arith.constant 0 : index
    %218 = vector.load %arg2[%c21, %c0_70] : memref<98x256xf32, #tpu.memory_space<vmem>>, vector<1x256xf32>
    %219 = vector.broadcast %218 : vector<1x256xf32> to vector<2x256xf32>
    %220 = arith.mulf %219, %216 : vector<2x256xf32>
    %221 = arith.addf %215, %220 : vector<2x256xf32>
    %c70 = arith.constant 70 : index
    %c0_71 = arith.constant 0 : index
    %222 = vector.load %arg2[%c70, %c0_71] : memref<98x256xf32, #tpu.memory_space<vmem>>, vector<1x256xf32>
    %223 = vector.broadcast %222 : vector<1x256xf32> to vector<2x256xf32>
    %224 = arith.mulf %223, %217 : vector<2x256xf32>
    %225 = arith.addf %221, %224 : vector<2x256xf32>
    %c2_i32 = arith.constant 2 : i32
    %226 = tpu.dynamic_rotate %4 by %c2_i32 dim 1 : vector<2x256xf32>, i32 -> vector<2x256xf32>
    %c2_i32_72 = arith.constant 2 : i32
    %227 = tpu.dynamic_rotate %1 by %c2_i32_72 dim 1 : vector<2x256xf32>, i32 -> vector<2x256xf32>
    %c22 = arith.constant 22 : index
    %c0_73 = arith.constant 0 : index
    %228 = vector.load %arg2[%c22, %c0_73] : memref<98x256xf32, #tpu.memory_space<vmem>>, vector<1x256xf32>
    %229 = vector.broadcast %228 : vector<1x256xf32> to vector<2x256xf32>
    %230 = arith.mulf %229, %226 : vector<2x256xf32>
    %231 = arith.addf %225, %230 : vector<2x256xf32>
    %c71 = arith.constant 71 : index
    %c0_74 = arith.constant 0 : index
    %232 = vector.load %arg2[%c71, %c0_74] : memref<98x256xf32, #tpu.memory_space<vmem>>, vector<1x256xf32>
    %233 = vector.broadcast %232 : vector<1x256xf32> to vector<2x256xf32>
    %234 = arith.mulf %233, %227 : vector<2x256xf32>
    %235 = arith.addf %231, %234 : vector<2x256xf32>
    %c1_i32 = arith.constant 1 : i32
    %236 = tpu.dynamic_rotate %4 by %c1_i32 dim 1 : vector<2x256xf32>, i32 -> vector<2x256xf32>
    %c1_i32_75 = arith.constant 1 : i32
    %237 = tpu.dynamic_rotate %1 by %c1_i32_75 dim 1 : vector<2x256xf32>, i32 -> vector<2x256xf32>
    %c23 = arith.constant 23 : index
    %c0_76 = arith.constant 0 : index
    %238 = vector.load %arg2[%c23, %c0_76] : memref<98x256xf32, #tpu.memory_space<vmem>>, vector<1x256xf32>
    %239 = vector.broadcast %238 : vector<1x256xf32> to vector<2x256xf32>
    %240 = arith.mulf %239, %236 : vector<2x256xf32>
    %241 = arith.addf %235, %240 : vector<2x256xf32>
    %c72 = arith.constant 72 : index
    %c0_77 = arith.constant 0 : index
    %242 = vector.load %arg2[%c72, %c0_77] : memref<98x256xf32, #tpu.memory_space<vmem>>, vector<1x256xf32>
    %243 = vector.broadcast %242 : vector<1x256xf32> to vector<2x256xf32>
    %244 = arith.mulf %243, %237 : vector<2x256xf32>
    %245 = arith.addf %241, %244 : vector<2x256xf32>
    %c24 = arith.constant 24 : index
    %c0_78 = arith.constant 0 : index
    %246 = vector.load %arg2[%c24, %c0_78] : memref<98x256xf32, #tpu.memory_space<vmem>>, vector<1x256xf32>
    %247 = vector.broadcast %246 : vector<1x256xf32> to vector<2x256xf32>
    %248 = arith.mulf %247, %4 : vector<2x256xf32>
    %249 = arith.addf %245, %248 : vector<2x256xf32>
    %c73 = arith.constant 73 : index
    %c0_79 = arith.constant 0 : index
    %250 = vector.load %arg2[%c73, %c0_79] : memref<98x256xf32, #tpu.memory_space<vmem>>, vector<1x256xf32>
    %251 = vector.broadcast %250 : vector<1x256xf32> to vector<2x256xf32>
    %252 = arith.mulf %251, %1 : vector<2x256xf32>
    %253 = arith.addf %249, %252 : vector<2x256xf32>
    %c255_i32 = arith.constant 255 : i32
    %254 = tpu.dynamic_rotate %4 by %c255_i32 dim 1 : vector<2x256xf32>, i32 -> vector<2x256xf32>
    %c255_i32_80 = arith.constant 255 : i32
    %255 = tpu.dynamic_rotate %1 by %c255_i32_80 dim 1 : vector<2x256xf32>, i32 -> vector<2x256xf32>
    %c25 = arith.constant 25 : index
    %c0_81 = arith.constant 0 : index
    %256 = vector.load %arg2[%c25, %c0_81] : memref<98x256xf32, #tpu.memory_space<vmem>>, vector<1x256xf32>
    %257 = vector.broadcast %256 : vector<1x256xf32> to vector<2x256xf32>
    %258 = arith.mulf %257, %254 : vector<2x256xf32>
    %259 = arith.addf %253, %258 : vector<2x256xf32>
    %c74 = arith.constant 74 : index
    %c0_82 = arith.constant 0 : index
    %260 = vector.load %arg2[%c74, %c0_82] : memref<98x256xf32, #tpu.memory_space<vmem>>, vector<1x256xf32>
    %261 = vector.broadcast %260 : vector<1x256xf32> to vector<2x256xf32>
    %262 = arith.mulf %261, %255 : vector<2x256xf32>
    %263 = arith.addf %259, %262 : vector<2x256xf32>
    %c254_i32 = arith.constant 254 : i32
    %264 = tpu.dynamic_rotate %4 by %c254_i32 dim 1 : vector<2x256xf32>, i32 -> vector<2x256xf32>
    %c254_i32_83 = arith.constant 254 : i32
    %265 = tpu.dynamic_rotate %1 by %c254_i32_83 dim 1 : vector<2x256xf32>, i32 -> vector<2x256xf32>
    %c26 = arith.constant 26 : index
    %c0_84 = arith.constant 0 : index
    %266 = vector.load %arg2[%c26, %c0_84] : memref<98x256xf32, #tpu.memory_space<vmem>>, vector<1x256xf32>
    %267 = vector.broadcast %266 : vector<1x256xf32> to vector<2x256xf32>
    %268 = arith.mulf %267, %264 : vector<2x256xf32>
    %269 = arith.addf %263, %268 : vector<2x256xf32>
    %c75 = arith.constant 75 : index
    %c0_85 = arith.constant 0 : index
    %270 = vector.load %arg2[%c75, %c0_85] : memref<98x256xf32, #tpu.memory_space<vmem>>, vector<1x256xf32>
    %271 = vector.broadcast %270 : vector<1x256xf32> to vector<2x256xf32>
    %272 = arith.mulf %271, %265 : vector<2x256xf32>
    %273 = arith.addf %269, %272 : vector<2x256xf32>
    %c253_i32 = arith.constant 253 : i32
    %274 = tpu.dynamic_rotate %4 by %c253_i32 dim 1 : vector<2x256xf32>, i32 -> vector<2x256xf32>
    %c253_i32_86 = arith.constant 253 : i32
    %275 = tpu.dynamic_rotate %1 by %c253_i32_86 dim 1 : vector<2x256xf32>, i32 -> vector<2x256xf32>
    %c27 = arith.constant 27 : index
    %c0_87 = arith.constant 0 : index
    %276 = vector.load %arg2[%c27, %c0_87] : memref<98x256xf32, #tpu.memory_space<vmem>>, vector<1x256xf32>
    %277 = vector.broadcast %276 : vector<1x256xf32> to vector<2x256xf32>
    %278 = arith.mulf %277, %274 : vector<2x256xf32>
    %279 = arith.addf %273, %278 : vector<2x256xf32>
    %c76 = arith.constant 76 : index
    %c0_88 = arith.constant 0 : index
    %280 = vector.load %arg2[%c76, %c0_88] : memref<98x256xf32, #tpu.memory_space<vmem>>, vector<1x256xf32>
    %281 = vector.broadcast %280 : vector<1x256xf32> to vector<2x256xf32>
    %282 = arith.mulf %281, %275 : vector<2x256xf32>
    %283 = arith.addf %279, %282 : vector<2x256xf32>
    %c243_i32 = arith.constant 243 : i32
    %284 = tpu.dynamic_rotate %4 by %c243_i32 dim 1 : vector<2x256xf32>, i32 -> vector<2x256xf32>
    %c243_i32_89 = arith.constant 243 : i32
    %285 = tpu.dynamic_rotate %1 by %c243_i32_89 dim 1 : vector<2x256xf32>, i32 -> vector<2x256xf32>
    %c28 = arith.constant 28 : index
    %c0_90 = arith.constant 0 : index
    %286 = vector.load %arg2[%c28, %c0_90] : memref<98x256xf32, #tpu.memory_space<vmem>>, vector<1x256xf32>
    %287 = vector.broadcast %286 : vector<1x256xf32> to vector<2x256xf32>
    %288 = arith.mulf %287, %284 : vector<2x256xf32>
    %289 = arith.addf %283, %288 : vector<2x256xf32>
    %c77 = arith.constant 77 : index
    %c0_91 = arith.constant 0 : index
    %290 = vector.load %arg2[%c77, %c0_91] : memref<98x256xf32, #tpu.memory_space<vmem>>, vector<1x256xf32>
    %291 = vector.broadcast %290 : vector<1x256xf32> to vector<2x256xf32>
    %292 = arith.mulf %291, %285 : vector<2x256xf32>
    %293 = arith.addf %289, %292 : vector<2x256xf32>
    %c242_i32 = arith.constant 242 : i32
    %294 = tpu.dynamic_rotate %4 by %c242_i32 dim 1 : vector<2x256xf32>, i32 -> vector<2x256xf32>
    %c242_i32_92 = arith.constant 242 : i32
    %295 = tpu.dynamic_rotate %1 by %c242_i32_92 dim 1 : vector<2x256xf32>, i32 -> vector<2x256xf32>
    %c29 = arith.constant 29 : index
    %c0_93 = arith.constant 0 : index
    %296 = vector.load %arg2[%c29, %c0_93] : memref<98x256xf32, #tpu.memory_space<vmem>>, vector<1x256xf32>
    %297 = vector.broadcast %296 : vector<1x256xf32> to vector<2x256xf32>
    %298 = arith.mulf %297, %294 : vector<2x256xf32>
    %299 = arith.addf %293, %298 : vector<2x256xf32>
    %c78 = arith.constant 78 : index
    %c0_94 = arith.constant 0 : index
    %300 = vector.load %arg2[%c78, %c0_94] : memref<98x256xf32, #tpu.memory_space<vmem>>, vector<1x256xf32>
    %301 = vector.broadcast %300 : vector<1x256xf32> to vector<2x256xf32>
    %302 = arith.mulf %301, %295 : vector<2x256xf32>
    %303 = arith.addf %299, %302 : vector<2x256xf32>
    %c241_i32 = arith.constant 241 : i32
    %304 = tpu.dynamic_rotate %4 by %c241_i32 dim 1 : vector<2x256xf32>, i32 -> vector<2x256xf32>
    %c241_i32_95 = arith.constant 241 : i32
    %305 = tpu.dynamic_rotate %1 by %c241_i32_95 dim 1 : vector<2x256xf32>, i32 -> vector<2x256xf32>
    %c30 = arith.constant 30 : index
    %c0_96 = arith.constant 0 : index
    %306 = vector.load %arg2[%c30, %c0_96] : memref<98x256xf32, #tpu.memory_space<vmem>>, vector<1x256xf32>
    %307 = vector.broadcast %306 : vector<1x256xf32> to vector<2x256xf32>
    %308 = arith.mulf %307, %304 : vector<2x256xf32>
    %309 = arith.addf %303, %308 : vector<2x256xf32>
    %c79 = arith.constant 79 : index
    %c0_97 = arith.constant 0 : index
    %310 = vector.load %arg2[%c79, %c0_97] : memref<98x256xf32, #tpu.memory_space<vmem>>, vector<1x256xf32>
    %311 = vector.broadcast %310 : vector<1x256xf32> to vector<2x256xf32>
    %312 = arith.mulf %311, %305 : vector<2x256xf32>
    %313 = arith.addf %309, %312 : vector<2x256xf32>
    %c240_i32 = arith.constant 240 : i32
    %314 = tpu.dynamic_rotate %4 by %c240_i32 dim 1 : vector<2x256xf32>, i32 -> vector<2x256xf32>
    %c240_i32_98 = arith.constant 240 : i32
    %315 = tpu.dynamic_rotate %1 by %c240_i32_98 dim 1 : vector<2x256xf32>, i32 -> vector<2x256xf32>
    %c31 = arith.constant 31 : index
    %c0_99 = arith.constant 0 : index
    %316 = vector.load %arg2[%c31, %c0_99] : memref<98x256xf32, #tpu.memory_space<vmem>>, vector<1x256xf32>
    %317 = vector.broadcast %316 : vector<1x256xf32> to vector<2x256xf32>
    %318 = arith.mulf %317, %314 : vector<2x256xf32>
    %319 = arith.addf %313, %318 : vector<2x256xf32>
    %c80 = arith.constant 80 : index
    %c0_100 = arith.constant 0 : index
    %320 = vector.load %arg2[%c80, %c0_100] : memref<98x256xf32, #tpu.memory_space<vmem>>, vector<1x256xf32>
    %321 = vector.broadcast %320 : vector<1x256xf32> to vector<2x256xf32>
    %322 = arith.mulf %321, %315 : vector<2x256xf32>
    %323 = arith.addf %319, %322 : vector<2x256xf32>
    %c239_i32 = arith.constant 239 : i32
    %324 = tpu.dynamic_rotate %4 by %c239_i32 dim 1 : vector<2x256xf32>, i32 -> vector<2x256xf32>
    %c239_i32_101 = arith.constant 239 : i32
    %325 = tpu.dynamic_rotate %1 by %c239_i32_101 dim 1 : vector<2x256xf32>, i32 -> vector<2x256xf32>
    %c32 = arith.constant 32 : index
    %c0_102 = arith.constant 0 : index
    %326 = vector.load %arg2[%c32, %c0_102] : memref<98x256xf32, #tpu.memory_space<vmem>>, vector<1x256xf32>
    %327 = vector.broadcast %326 : vector<1x256xf32> to vector<2x256xf32>
    %328 = arith.mulf %327, %324 : vector<2x256xf32>
    %329 = arith.addf %323, %328 : vector<2x256xf32>
    %c81 = arith.constant 81 : index
    %c0_103 = arith.constant 0 : index
    %330 = vector.load %arg2[%c81, %c0_103] : memref<98x256xf32, #tpu.memory_space<vmem>>, vector<1x256xf32>
    %331 = vector.broadcast %330 : vector<1x256xf32> to vector<2x256xf32>
    %332 = arith.mulf %331, %325 : vector<2x256xf32>
    %333 = arith.addf %329, %332 : vector<2x256xf32>
    %c238_i32 = arith.constant 238 : i32
    %334 = tpu.dynamic_rotate %4 by %c238_i32 dim 1 : vector<2x256xf32>, i32 -> vector<2x256xf32>
    %c238_i32_104 = arith.constant 238 : i32
    %335 = tpu.dynamic_rotate %1 by %c238_i32_104 dim 1 : vector<2x256xf32>, i32 -> vector<2x256xf32>
    %c33 = arith.constant 33 : index
    %c0_105 = arith.constant 0 : index
    %336 = vector.load %arg2[%c33, %c0_105] : memref<98x256xf32, #tpu.memory_space<vmem>>, vector<1x256xf32>
    %337 = vector.broadcast %336 : vector<1x256xf32> to vector<2x256xf32>
    %338 = arith.mulf %337, %334 : vector<2x256xf32>
    %339 = arith.addf %333, %338 : vector<2x256xf32>
    %c82 = arith.constant 82 : index
    %c0_106 = arith.constant 0 : index
    %340 = vector.load %arg2[%c82, %c0_106] : memref<98x256xf32, #tpu.memory_space<vmem>>, vector<1x256xf32>
    %341 = vector.broadcast %340 : vector<1x256xf32> to vector<2x256xf32>
    %342 = arith.mulf %341, %335 : vector<2x256xf32>
    %343 = arith.addf %339, %342 : vector<2x256xf32>
    %c237_i32 = arith.constant 237 : i32
    %344 = tpu.dynamic_rotate %4 by %c237_i32 dim 1 : vector<2x256xf32>, i32 -> vector<2x256xf32>
    %c237_i32_107 = arith.constant 237 : i32
    %345 = tpu.dynamic_rotate %1 by %c237_i32_107 dim 1 : vector<2x256xf32>, i32 -> vector<2x256xf32>
    %c34 = arith.constant 34 : index
    %c0_108 = arith.constant 0 : index
    %346 = vector.load %arg2[%c34, %c0_108] : memref<98x256xf32, #tpu.memory_space<vmem>>, vector<1x256xf32>
    %347 = vector.broadcast %346 : vector<1x256xf32> to vector<2x256xf32>
    %348 = arith.mulf %347, %344 : vector<2x256xf32>
    %349 = arith.addf %343, %348 : vector<2x256xf32>
    %c83 = arith.constant 83 : index
    %c0_109 = arith.constant 0 : index
    %350 = vector.load %arg2[%c83, %c0_109] : memref<98x256xf32, #tpu.memory_space<vmem>>, vector<1x256xf32>
    %351 = vector.broadcast %350 : vector<1x256xf32> to vector<2x256xf32>
    %352 = arith.mulf %351, %345 : vector<2x256xf32>
    %353 = arith.addf %349, %352 : vector<2x256xf32>
    %c227_i32 = arith.constant 227 : i32
    %354 = tpu.dynamic_rotate %4 by %c227_i32 dim 1 : vector<2x256xf32>, i32 -> vector<2x256xf32>
    %c227_i32_110 = arith.constant 227 : i32
    %355 = tpu.dynamic_rotate %1 by %c227_i32_110 dim 1 : vector<2x256xf32>, i32 -> vector<2x256xf32>
    %c35 = arith.constant 35 : index
    %c0_111 = arith.constant 0 : index
    %356 = vector.load %arg2[%c35, %c0_111] : memref<98x256xf32, #tpu.memory_space<vmem>>, vector<1x256xf32>
    %357 = vector.broadcast %356 : vector<1x256xf32> to vector<2x256xf32>
    %358 = arith.mulf %357, %354 : vector<2x256xf32>
    %359 = arith.addf %353, %358 : vector<2x256xf32>
    %c84 = arith.constant 84 : index
    %c0_112 = arith.constant 0 : index
    %360 = vector.load %arg2[%c84, %c0_112] : memref<98x256xf32, #tpu.memory_space<vmem>>, vector<1x256xf32>
    %361 = vector.broadcast %360 : vector<1x256xf32> to vector<2x256xf32>
    %362 = arith.mulf %361, %355 : vector<2x256xf32>
    %363 = arith.addf %359, %362 : vector<2x256xf32>
    %c226_i32 = arith.constant 226 : i32
    %364 = tpu.dynamic_rotate %4 by %c226_i32 dim 1 : vector<2x256xf32>, i32 -> vector<2x256xf32>
    %c226_i32_113 = arith.constant 226 : i32
    %365 = tpu.dynamic_rotate %1 by %c226_i32_113 dim 1 : vector<2x256xf32>, i32 -> vector<2x256xf32>
    %c36 = arith.constant 36 : index
    %c0_114 = arith.constant 0 : index
    %366 = vector.load %arg2[%c36, %c0_114] : memref<98x256xf32, #tpu.memory_space<vmem>>, vector<1x256xf32>
    %367 = vector.broadcast %366 : vector<1x256xf32> to vector<2x256xf32>
    %368 = arith.mulf %367, %364 : vector<2x256xf32>
    %369 = arith.addf %363, %368 : vector<2x256xf32>
    %c85 = arith.constant 85 : index
    %c0_115 = arith.constant 0 : index
    %370 = vector.load %arg2[%c85, %c0_115] : memref<98x256xf32, #tpu.memory_space<vmem>>, vector<1x256xf32>
    %371 = vector.broadcast %370 : vector<1x256xf32> to vector<2x256xf32>
    %372 = arith.mulf %371, %365 : vector<2x256xf32>
    %373 = arith.addf %369, %372 : vector<2x256xf32>
    %c225_i32 = arith.constant 225 : i32
    %374 = tpu.dynamic_rotate %4 by %c225_i32 dim 1 : vector<2x256xf32>, i32 -> vector<2x256xf32>
    %c225_i32_116 = arith.constant 225 : i32
    %375 = tpu.dynamic_rotate %1 by %c225_i32_116 dim 1 : vector<2x256xf32>, i32 -> vector<2x256xf32>
    %c37 = arith.constant 37 : index
    %c0_117 = arith.constant 0 : index
    %376 = vector.load %arg2[%c37, %c0_117] : memref<98x256xf32, #tpu.memory_space<vmem>>, vector<1x256xf32>
    %377 = vector.broadcast %376 : vector<1x256xf32> to vector<2x256xf32>
    %378 = arith.mulf %377, %374 : vector<2x256xf32>
    %379 = arith.addf %373, %378 : vector<2x256xf32>
    %c86 = arith.constant 86 : index
    %c0_118 = arith.constant 0 : index
    %380 = vector.load %arg2[%c86, %c0_118] : memref<98x256xf32, #tpu.memory_space<vmem>>, vector<1x256xf32>
    %381 = vector.broadcast %380 : vector<1x256xf32> to vector<2x256xf32>
    %382 = arith.mulf %381, %375 : vector<2x256xf32>
    %383 = arith.addf %379, %382 : vector<2x256xf32>
    %c224_i32 = arith.constant 224 : i32
    %384 = tpu.dynamic_rotate %4 by %c224_i32 dim 1 : vector<2x256xf32>, i32 -> vector<2x256xf32>
    %c224_i32_119 = arith.constant 224 : i32
    %385 = tpu.dynamic_rotate %1 by %c224_i32_119 dim 1 : vector<2x256xf32>, i32 -> vector<2x256xf32>
    %c38 = arith.constant 38 : index
    %c0_120 = arith.constant 0 : index
    %386 = vector.load %arg2[%c38, %c0_120] : memref<98x256xf32, #tpu.memory_space<vmem>>, vector<1x256xf32>
    %387 = vector.broadcast %386 : vector<1x256xf32> to vector<2x256xf32>
    %388 = arith.mulf %387, %384 : vector<2x256xf32>
    %389 = arith.addf %383, %388 : vector<2x256xf32>
    %c87 = arith.constant 87 : index
    %c0_121 = arith.constant 0 : index
    %390 = vector.load %arg2[%c87, %c0_121] : memref<98x256xf32, #tpu.memory_space<vmem>>, vector<1x256xf32>
    %391 = vector.broadcast %390 : vector<1x256xf32> to vector<2x256xf32>
    %392 = arith.mulf %391, %385 : vector<2x256xf32>
    %393 = arith.addf %389, %392 : vector<2x256xf32>
    %c223_i32 = arith.constant 223 : i32
    %394 = tpu.dynamic_rotate %4 by %c223_i32 dim 1 : vector<2x256xf32>, i32 -> vector<2x256xf32>
    %c223_i32_122 = arith.constant 223 : i32
    %395 = tpu.dynamic_rotate %1 by %c223_i32_122 dim 1 : vector<2x256xf32>, i32 -> vector<2x256xf32>
    %c39 = arith.constant 39 : index
    %c0_123 = arith.constant 0 : index
    %396 = vector.load %arg2[%c39, %c0_123] : memref<98x256xf32, #tpu.memory_space<vmem>>, vector<1x256xf32>
    %397 = vector.broadcast %396 : vector<1x256xf32> to vector<2x256xf32>
    %398 = arith.mulf %397, %394 : vector<2x256xf32>
    %399 = arith.addf %393, %398 : vector<2x256xf32>
    %c88 = arith.constant 88 : index
    %c0_124 = arith.constant 0 : index
    %400 = vector.load %arg2[%c88, %c0_124] : memref<98x256xf32, #tpu.memory_space<vmem>>, vector<1x256xf32>
    %401 = vector.broadcast %400 : vector<1x256xf32> to vector<2x256xf32>
    %402 = arith.mulf %401, %395 : vector<2x256xf32>
    %403 = arith.addf %399, %402 : vector<2x256xf32>
    %c222_i32 = arith.constant 222 : i32
    %404 = tpu.dynamic_rotate %4 by %c222_i32 dim 1 : vector<2x256xf32>, i32 -> vector<2x256xf32>
    %c222_i32_125 = arith.constant 222 : i32
    %405 = tpu.dynamic_rotate %1 by %c222_i32_125 dim 1 : vector<2x256xf32>, i32 -> vector<2x256xf32>
    %c40 = arith.constant 40 : index
    %c0_126 = arith.constant 0 : index
    %406 = vector.load %arg2[%c40, %c0_126] : memref<98x256xf32, #tpu.memory_space<vmem>>, vector<1x256xf32>
    %407 = vector.broadcast %406 : vector<1x256xf32> to vector<2x256xf32>
    %408 = arith.mulf %407, %404 : vector<2x256xf32>
    %409 = arith.addf %403, %408 : vector<2x256xf32>
    %c89 = arith.constant 89 : index
    %c0_127 = arith.constant 0 : index
    %410 = vector.load %arg2[%c89, %c0_127] : memref<98x256xf32, #tpu.memory_space<vmem>>, vector<1x256xf32>
    %411 = vector.broadcast %410 : vector<1x256xf32> to vector<2x256xf32>
    %412 = arith.mulf %411, %405 : vector<2x256xf32>
    %413 = arith.addf %409, %412 : vector<2x256xf32>
    %c221_i32 = arith.constant 221 : i32
    %414 = tpu.dynamic_rotate %4 by %c221_i32 dim 1 : vector<2x256xf32>, i32 -> vector<2x256xf32>
    %c221_i32_128 = arith.constant 221 : i32
    %415 = tpu.dynamic_rotate %1 by %c221_i32_128 dim 1 : vector<2x256xf32>, i32 -> vector<2x256xf32>
    %c41 = arith.constant 41 : index
    %c0_129 = arith.constant 0 : index
    %416 = vector.load %arg2[%c41, %c0_129] : memref<98x256xf32, #tpu.memory_space<vmem>>, vector<1x256xf32>
    %417 = vector.broadcast %416 : vector<1x256xf32> to vector<2x256xf32>
    %418 = arith.mulf %417, %414 : vector<2x256xf32>
    %419 = arith.addf %413, %418 : vector<2x256xf32>
    %c90 = arith.constant 90 : index
    %c0_130 = arith.constant 0 : index
    %420 = vector.load %arg2[%c90, %c0_130] : memref<98x256xf32, #tpu.memory_space<vmem>>, vector<1x256xf32>
    %421 = vector.broadcast %420 : vector<1x256xf32> to vector<2x256xf32>
    %422 = arith.mulf %421, %415 : vector<2x256xf32>
    %423 = arith.addf %419, %422 : vector<2x256xf32>
    %c211_i32 = arith.constant 211 : i32
    %424 = tpu.dynamic_rotate %4 by %c211_i32 dim 1 : vector<2x256xf32>, i32 -> vector<2x256xf32>
    %c211_i32_131 = arith.constant 211 : i32
    %425 = tpu.dynamic_rotate %1 by %c211_i32_131 dim 1 : vector<2x256xf32>, i32 -> vector<2x256xf32>
    %c42 = arith.constant 42 : index
    %c0_132 = arith.constant 0 : index
    %426 = vector.load %arg2[%c42, %c0_132] : memref<98x256xf32, #tpu.memory_space<vmem>>, vector<1x256xf32>
    %427 = vector.broadcast %426 : vector<1x256xf32> to vector<2x256xf32>
    %428 = arith.mulf %427, %424 : vector<2x256xf32>
    %429 = arith.addf %423, %428 : vector<2x256xf32>
    %c91 = arith.constant 91 : index
    %c0_133 = arith.constant 0 : index
    %430 = vector.load %arg2[%c91, %c0_133] : memref<98x256xf32, #tpu.memory_space<vmem>>, vector<1x256xf32>
    %431 = vector.broadcast %430 : vector<1x256xf32> to vector<2x256xf32>
    %432 = arith.mulf %431, %425 : vector<2x256xf32>
    %433 = arith.addf %429, %432 : vector<2x256xf32>
    %c210_i32 = arith.constant 210 : i32
    %434 = tpu.dynamic_rotate %4 by %c210_i32 dim 1 : vector<2x256xf32>, i32 -> vector<2x256xf32>
    %c210_i32_134 = arith.constant 210 : i32
    %435 = tpu.dynamic_rotate %1 by %c210_i32_134 dim 1 : vector<2x256xf32>, i32 -> vector<2x256xf32>
    %c43 = arith.constant 43 : index
    %c0_135 = arith.constant 0 : index
    %436 = vector.load %arg2[%c43, %c0_135] : memref<98x256xf32, #tpu.memory_space<vmem>>, vector<1x256xf32>
    %437 = vector.broadcast %436 : vector<1x256xf32> to vector<2x256xf32>
    %438 = arith.mulf %437, %434 : vector<2x256xf32>
    %439 = arith.addf %433, %438 : vector<2x256xf32>
    %c92 = arith.constant 92 : index
    %c0_136 = arith.constant 0 : index
    %440 = vector.load %arg2[%c92, %c0_136] : memref<98x256xf32, #tpu.memory_space<vmem>>, vector<1x256xf32>
    %441 = vector.broadcast %440 : vector<1x256xf32> to vector<2x256xf32>
    %442 = arith.mulf %441, %435 : vector<2x256xf32>
    %443 = arith.addf %439, %442 : vector<2x256xf32>
    %c209_i32 = arith.constant 209 : i32
    %444 = tpu.dynamic_rotate %4 by %c209_i32 dim 1 : vector<2x256xf32>, i32 -> vector<2x256xf32>
    %c209_i32_137 = arith.constant 209 : i32
    %445 = tpu.dynamic_rotate %1 by %c209_i32_137 dim 1 : vector<2x256xf32>, i32 -> vector<2x256xf32>
    %c44 = arith.constant 44 : index
    %c0_138 = arith.constant 0 : index
    %446 = vector.load %arg2[%c44, %c0_138] : memref<98x256xf32, #tpu.memory_space<vmem>>, vector<1x256xf32>
    %447 = vector.broadcast %446 : vector<1x256xf32> to vector<2x256xf32>
    %448 = arith.mulf %447, %444 : vector<2x256xf32>
    %449 = arith.addf %443, %448 : vector<2x256xf32>
    %c93 = arith.constant 93 : index
    %c0_139 = arith.constant 0 : index
    %450 = vector.load %arg2[%c93, %c0_139] : memref<98x256xf32, #tpu.memory_space<vmem>>, vector<1x256xf32>
    %451 = vector.broadcast %450 : vector<1x256xf32> to vector<2x256xf32>
    %452 = arith.mulf %451, %445 : vector<2x256xf32>
    %453 = arith.addf %449, %452 : vector<2x256xf32>
    %c208_i32 = arith.constant 208 : i32
    %454 = tpu.dynamic_rotate %4 by %c208_i32 dim 1 : vector<2x256xf32>, i32 -> vector<2x256xf32>
    %c208_i32_140 = arith.constant 208 : i32
    %455 = tpu.dynamic_rotate %1 by %c208_i32_140 dim 1 : vector<2x256xf32>, i32 -> vector<2x256xf32>
    %c45 = arith.constant 45 : index
    %c0_141 = arith.constant 0 : index
    %456 = vector.load %arg2[%c45, %c0_141] : memref<98x256xf32, #tpu.memory_space<vmem>>, vector<1x256xf32>
    %457 = vector.broadcast %456 : vector<1x256xf32> to vector<2x256xf32>
    %458 = arith.mulf %457, %454 : vector<2x256xf32>
    %459 = arith.addf %453, %458 : vector<2x256xf32>
    %c94 = arith.constant 94 : index
    %c0_142 = arith.constant 0 : index
    %460 = vector.load %arg2[%c94, %c0_142] : memref<98x256xf32, #tpu.memory_space<vmem>>, vector<1x256xf32>
    %461 = vector.broadcast %460 : vector<1x256xf32> to vector<2x256xf32>
    %462 = arith.mulf %461, %455 : vector<2x256xf32>
    %463 = arith.addf %459, %462 : vector<2x256xf32>
    %c207_i32 = arith.constant 207 : i32
    %464 = tpu.dynamic_rotate %4 by %c207_i32 dim 1 : vector<2x256xf32>, i32 -> vector<2x256xf32>
    %c207_i32_143 = arith.constant 207 : i32
    %465 = tpu.dynamic_rotate %1 by %c207_i32_143 dim 1 : vector<2x256xf32>, i32 -> vector<2x256xf32>
    %c46 = arith.constant 46 : index
    %c0_144 = arith.constant 0 : index
    %466 = vector.load %arg2[%c46, %c0_144] : memref<98x256xf32, #tpu.memory_space<vmem>>, vector<1x256xf32>
    %467 = vector.broadcast %466 : vector<1x256xf32> to vector<2x256xf32>
    %468 = arith.mulf %467, %464 : vector<2x256xf32>
    %469 = arith.addf %463, %468 : vector<2x256xf32>
    %c95 = arith.constant 95 : index
    %c0_145 = arith.constant 0 : index
    %470 = vector.load %arg2[%c95, %c0_145] : memref<98x256xf32, #tpu.memory_space<vmem>>, vector<1x256xf32>
    %471 = vector.broadcast %470 : vector<1x256xf32> to vector<2x256xf32>
    %472 = arith.mulf %471, %465 : vector<2x256xf32>
    %473 = arith.addf %469, %472 : vector<2x256xf32>
    %c206_i32 = arith.constant 206 : i32
    %474 = tpu.dynamic_rotate %4 by %c206_i32 dim 1 : vector<2x256xf32>, i32 -> vector<2x256xf32>
    %c206_i32_146 = arith.constant 206 : i32
    %475 = tpu.dynamic_rotate %1 by %c206_i32_146 dim 1 : vector<2x256xf32>, i32 -> vector<2x256xf32>
    %c47 = arith.constant 47 : index
    %c0_147 = arith.constant 0 : index
    %476 = vector.load %arg2[%c47, %c0_147] : memref<98x256xf32, #tpu.memory_space<vmem>>, vector<1x256xf32>
    %477 = vector.broadcast %476 : vector<1x256xf32> to vector<2x256xf32>
    %478 = arith.mulf %477, %474 : vector<2x256xf32>
    %479 = arith.addf %473, %478 : vector<2x256xf32>
    %c96 = arith.constant 96 : index
    %c0_148 = arith.constant 0 : index
    %480 = vector.load %arg2[%c96, %c0_148] : memref<98x256xf32, #tpu.memory_space<vmem>>, vector<1x256xf32>
    %481 = vector.broadcast %480 : vector<1x256xf32> to vector<2x256xf32>
    %482 = arith.mulf %481, %475 : vector<2x256xf32>
    %483 = arith.addf %479, %482 : vector<2x256xf32>
    %c205_i32 = arith.constant 205 : i32
    %484 = tpu.dynamic_rotate %4 by %c205_i32 dim 1 : vector<2x256xf32>, i32 -> vector<2x256xf32>
    %c205_i32_149 = arith.constant 205 : i32
    %485 = tpu.dynamic_rotate %1 by %c205_i32_149 dim 1 : vector<2x256xf32>, i32 -> vector<2x256xf32>
    %c48 = arith.constant 48 : index
    %c0_150 = arith.constant 0 : index
    %486 = vector.load %arg2[%c48, %c0_150] : memref<98x256xf32, #tpu.memory_space<vmem>>, vector<1x256xf32>
    %487 = vector.broadcast %486 : vector<1x256xf32> to vector<2x256xf32>
    %488 = arith.mulf %487, %484 : vector<2x256xf32>
    %489 = arith.addf %483, %488 : vector<2x256xf32>
    %c97 = arith.constant 97 : index
    %c0_151 = arith.constant 0 : index
    %490 = vector.load %arg2[%c97, %c0_151] : memref<98x256xf32, #tpu.memory_space<vmem>>, vector<1x256xf32>
    %491 = vector.broadcast %490 : vector<1x256xf32> to vector<2x256xf32>
    %492 = arith.mulf %491, %485 : vector<2x256xf32>
    %493 = arith.addf %489, %492 : vector<2x256xf32>
    %c0_152 = arith.constant 0 : index
    %494 = memref.load %arg3[%c0_152] : memref<1xf32, #tpu.memory_space<smem>>
    %495 = vector.broadcast %494 : f32 to vector<2x256xf32>
    %496 = arith.addf %493, %495 : vector<2x256xf32>
    %497 = arith.negf %496 : vector<2x256xf32>
    %498 = math.exp %497 : vector<2x256xf32>
    %cst_153 = arith.constant 1.000000e+00 : f32
    %499 = vector.broadcast %cst_153 : f32 to vector<2x256xf32>
    %500 = arith.addf %499, %498 : vector<2x256xf32>
    %501 = arith.divf %499, %500 : vector<2x256xf32>
    %c0_154 = arith.constant 0 : index
    %c0_155 = arith.constant 0 : index
    %c0_156 = arith.constant 0 : index
    %502 = vector.load %arg4[%c0_154, %c0_155, %c0_156] : memref<2x1x256xf32, #tpu.memory_space<vmem>>, vector<2x1x256xf32>
    %503 = vector.shape_cast %502 : vector<2x1x256xf32> to vector<2x256xf32>
    %504 = vector.shape_cast %501 : vector<2x256xf32> to vector<2x1x256xf32>
    tpu.vector_store %arg4[%c0_154, %c0_155, %c0_156], %504 {strides = array<i32>} : memref<2x1x256xf32, #tpu.memory_space<vmem>>, vector<2x1x256xf32>,
    return
  }
  func.func @transform_0(%arg0: i32) -> (i32, i32, i32) {
    %c0_i32 = arith.constant 0 : i32
    %c0_i32_0 = arith.constant 0 : i32
    %c0_i32_1 = arith.constant 0 : i32
    return %arg0, %c0_i32, %c0_i32_0 : i32, i32, i32
  }
  func.func @transform_1(%arg0: i32) -> (i32, i32) {
    %c0_i32 = arith.constant 0 : i32
    %c0_i32_0 = arith.constant 0 : i32
    %c0_i32_1 = arith.constant 0 : i32
    return %c0_i32, %c0_i32_0 : i32, i32
  }
  func.func @transform_2(%arg0: i32) -> i32 {
    %c0_i32 = arith.constant 0 : i32
    %c0_i32_0 = arith.constant 0 : i32
    return %c0_i32 : i32
  }
  func.func @transform_3(%arg0: i32) -> (i32, i32, i32) {
    %c0_i32 = arith.constant 0 : i32
    %c0_i32_0 = arith.constant 0 : i32
    %c0_i32_1 = arith.constant 0 : i32
    return %arg0, %c0_i32, %c0_i32_0 : i32, i32, i32
  }
}

</mosaic_0001>

<bundles_post_ra>
// kernel: tpu_custom_call.1
= control target key start
LH: loop header
LB: loop body
LE: loop exit
PB: predicated region body
PF: predicated region fallthrough
CT: control target
= control target key end

     0   :  { %9 = vsyncpa [#allocation4], 0  ;;  %s3157_s0 = inlined_call_operand.hbm [shape: f32[2,4,256], index: 0, kind: input, shape index: {}]   ;;  %s3158_s1 = inlined_call_operand.hbm [shape: f32[98,256], index: 1, kind: input, shape index: {}]   ;;  %s3159_s2 = inlined_call_operand.<no memory space> [shape: f32[1], index: 2, kind: input, shape index: {}]   ;;  %s3160_s3 = inlined_call_operand.hbm [shape: f32[2,1,256], index: 3, kind: output, shape index: {}]  }
   0x1   :  { %10 = vsyncpa [#allocation7], 0 }
   0x2   :  { %11 = vsyncpa [#allocation5], 0  ;;  %s16_s14 = sshll.u32 %s3157_s0, 4  ;;  %s2084_s15 = smov [#allocation3]   ;;  %s17_s14 = int_to_ptr.hbm [resolvable:$true] %s16_s14 }
   0x3   :  { %s18_s16 = sshll.u32 %s2084_s15, 4  ;;  %s29_s19 = sshll.u32 %s3158_s1, 4  ;;  %s19_s16 = int_to_ptr.vmem [resolvable:$true] %s18_s16  ;;  %s30_s19 = int_to_ptr.hbm [resolvable:$true] %s29_s19 }
   0x4   :  { %s2085_s20 = smov 128   ;;  %s2086_s21 = smov 8  }
   0x5   :  { %24 = dma.hbm_to_vmem [thread:$0]  %s17_s14, 256, %s19_s16, [#allocation4], %s2085_s20, %s2085_s20, %s2086_s21  }
   0x6   :  { %s2087_s22 = smov [#allocation6]   ;;  %s2088_s24 = smov 256  }
   0x7   :  { %s31_s23 = sshll.u32 %s2087_s22, 4  ;;  %s2089_s25 = smov 16   ;;  %s32_s23 = int_to_ptr.vmem [resolvable:$true] %s31_s23 }
   0x8   :  { %37 = dma.hbm_to_vmem [thread:$0]  %s30_s19, 3328, %s32_s23, [#allocation7], %s2088_s24, %s2088_s24, %s2089_s25  }
   0x9   :  { %2078 = dma.done.wait [#allocation4], 256  }
   0xa   :  { %2079 = vsyncadd [#allocation4], 4294967040 }
   0xb   :  { %2080 = dma.done.wait [#allocation7], 3328  }
   0xc   :  { %2081 = vsyncadd [#allocation7], 4294963968  ;;  %v48_v0 = vld [vmem:[#allocation3] sm:$0xff]  ;;  %v49_v1 = vld [vmem:[#allocation3 + $0x8] sm:$0xff]  ;;  %v2090_v2 = vmov 4.0   ;;  %vm63_vm0 = vcmask 1043456  }
   0xd   :  { %52 = vst [vmem:[#allocation1] ss:$2 sm:$0xff] %v48_v0  ;;  %1996 = vrcp.f32 %v2090_v2  ;;  %vm146_vm1 = vcmask 1041409   ;;  %s2091_s0 = smov 50   ;;  %s2092_s1 = smov 51  }
   0xe   :  { %56 = vst [vmem:[#allocation1 + $0x10] ss:$2 sm:$0xff] %v49_v1  ;;  %s2093_s26 = smov 49   ;;  %s2094_s27 = smov 48  }
   0xf   :  { %s2095_s28 = smov 47   ;;  %s2096_s29 = smov 46  }
  0x10   :  { %s2097_s30 = smov 45   ;;  %s2098_s4 = smov 35  }
  0x11   :  { %s2099_s5 = smov 34   ;;  %s2100_s6 = smov 33  }
  0x12   :  { %s2101_s7 = smov 32   ;;  %s2102_s8 = smov 31  }
  0x13   :  { %v2168_v8 = vpop.eup %1996  ;;  %s2103_s9 = smov 30   ;;  %s2104_s10 = smov 29  }
  0x14   :  { %v53_v3 = vld.sshfl [vmem:[#allocation1] sm:$0xff pattern:$0x75316420]  ;;  %v54_v4 = vld.sshfl [vmem:[#allocation1 + $0x8] sm:$0xff pattern:$0x75316420]  ;;  %vm136_vm2 = vweird.f32 %v2168_v8 }
  0x15   :  { %v57_v5 = vld.sshfl [vmem:[#allocation1 + $0x10] sm:$0xff pattern:$0x75316420]  ;;  %v64_v6 = vsel %vm63_vm0, %v53_v3, -inf  ;;  %v71_v7 = vsel %vm63_vm0, %v54_v4, -inf  ;;  %v132_v19 = vmul.f32 4.0, %v2168_v8 }
  0x16   :  { %v65_v9 = vrot.slane %v64_v6, 4  ;;  %v78_v10 = vsel %vm63_vm0, %v57_v5, -inf  ;;  %v58_v11 = vld.sshfl [vmem:[#allocation1 + $0x18] sm:$0xff pattern:$0x75316420]  ;;  %v72_v12 = vrot.slane %v71_v7, 4 }
  0x17   :  { %v79_v13 = vrot.slane %v78_v10, 4  ;;  %v85_v14 = vsel %vm63_vm0, %v58_v11, -inf  ;;  %92 = vst [vmem:[#allocation1] ss:$2 sm:$0xff] %v48_v0  ;;  %v133_v28 = vsub.f32 1.0, %v132_v19  ;;  %s2105_s11 = smov 19  }
  0x18   :  { %v66_v15 = vmax.f32 %v64_v6, %v65_v9  ;;  %v73_v16 = vmax.f32 %v71_v7, %v72_v12  ;;  %v86_v17 = vrot.slane %v85_v14, 4  ;;  %96 = vst [vmem:[#allocation1 + $0x10] ss:$2 sm:$0xff] %v49_v1  ;;  %s2106_s12 = smov 18   ;;  %s2107_s13 = smov 17  }
  0x19   :  { %v80_v18 = vmax.f32 %v78_v10, %v79_v13  ;;  %v134_v43 = vmul.f32 %v2168_v8, %v133_v28  ;;  %s2108_s14 = smov 15   ;;  %s2109_s15 = smov 14  }
  0x1a   :  { %v67_v20 = vrot.slane %v66_v15, 2  ;;  %v74_v21 = vrot.slane %v73_v16, 2  ;;  %v87_v22 = vmax.f32 %v85_v14, %v86_v17  ;;  %s2110_s16 = smov 13   ;;  %s2111_s17 = smov 3  }
  0x1b   :  { %v81_v23 = vrot.slane %v80_v18, 2  ;;  %v135_v59 = vadd.f32 %v2168_v8, %v134_v43  ;;  %v174_v43 = vld [vmem:[#allocation6] ss:$8 sm:$0x3]  ;;  %s2112_s18 = smov 2   ;;  %s2113_s19 = smov 1  }
  0x1c   :  { %v68_v24 = vmax.f32 %v66_v15, %v67_v20  ;;  %v75_v25 = vmax.f32 %v73_v16, %v74_v21  ;;  %v88_v26 = vrot.slane %v87_v22, 2  ;;  %s2114_s20 = smov 127   ;;  %s2115_s21 = smov 126  }
  0x1d   :  { %v82_v27 = vmax.f32 %v80_v18, %v81_v23  ;;  %v137_v4 = vsel %vm136_vm2, %v2168_v8, %v135_v59  ;;  %s2116_s22 = smov 125   ;;  %s2117_s23 = smov 115  }
  0x1e   :  { %v69_v29 = vrot.slane %v68_v24, 1  ;;  %v76_v30 = vrot.slane %v75_v25, 1  ;;  %v89_v31 = vmax.f32 %v87_v22, %v88_v26  ;;  %v93_v32 = vld.sshfl [vmem:[#allocation1] sm:$0xff pattern:$0x75316420]  ;;  %s2118_s24 = smov 114  }
  0x1f   :  { %v83_v33 = vrot.slane %v82_v27, 1  ;;  %v97_v34 = vld.sshfl [vmem:[#allocation1 + $0x10] sm:$0xff pattern:$0x75316420]  ;;  %v103_v35 = vsel %vm63_vm0, %v93_v32, 0.0 }
  0x20   :  { %v70_v36 = vmax.f32 %v68_v24, %v69_v29  ;;  %v77_v37 = vmax.f32 %v75_v25, %v76_v30  ;;  %v90_v38 = vrot.slane %v89_v31, 1  ;;  %v104_v39 = vrot.slane %v103_v35, 4  ;;  %v94_v40 = vld.sshfl [vmem:[#allocation1 + $0x8] sm:$0xff pattern:$0x75316420] }
  0x21   :  { %v84_v41 = vmax.f32 %v82_v27, %v83_v33  ;;  %v117_v42 = vsel %vm63_vm0, %v97_v34, 0.0  ;;  %v98_v44 = vld.sshfl [vmem:[#allocation1 + $0x18] sm:$0xff pattern:$0x75316420]  ;;  %v110_v45 = vsel %vm63_vm0, %v94_v40, 0.0 }
  0x22   :  { %v91_v46 = vmax.f32 %v89_v31, %v90_v38  ;;  %v105_v47 = vadd.f32 %v104_v39, %v103_v35  ;;  %v118_v48 = vrot.slane %v117_v42, 4  ;;  %v111_v49 = vrot.slane %v110_v45, 4 }
  0x23   :  { %v2178_v50 = vsel %vm146_vm1, %v84_v41, %v70_v36  ;;  %v124_v51 = vsel %vm63_vm0, %v98_v44, 0.0  ;;  %v155_v38 = vlaneseq  ;;  %v185_v44 = vld [vmem:[#allocation6 + $0x61] ss:$8 sm:$0x3] }
  0x24   :  { %202 = vrot.lane.b32.xlu0 %v2178_v50, %s2091_s0  ;;  %168 = vrot.lane.b32.xlu1 %v2178_v50, %s2092_s1  ;;  %v2186_v52 = vsel %vm146_vm1, %v91_v46, %v77_v37  ;;  %v106_v53 = vrot.slane %v105_v47, 2  ;;  %v119_v54 = vadd.f32 %v118_v48, %v117_v42  ;;  %v112_v55 = vadd.f32 %v111_v49, %v110_v45 }
  0x25   :  { %239 = vrot.lane.b32.xlu2 %v2186_v52, %s2093_s26  ;;  %v125_v56 = vrot.slane %v124_v51, 4  ;;  %v2311_v41 = vand.u32 127, %v155_v38  ;;  %v176_v45 = vperm.slane %v174_v43, 0  ;;  %v177_v46 = vperm.slane %v174_v43, 1 }
  0x26   :  { %v107_v57 = vadd.f32 %v106_v53, %v105_v47  ;;  %v120_v58 = vrot.slane %v119_v54, 2  ;;  %v113_v60 = vrot.slane %v112_v55, 2  ;;  %v187_v48 = vperm.slane %v185_v44, 0 }
  0x27   :  { %v126_v61 = vadd.f32 %v125_v56, %v124_v51  ;;  %vm157_vm3 = vcmp.lt.s32.totalorder %v2311_v41, 51  ;;  %v188_v51 = vperm.slane %v185_v44, 1  ;;  %vm199_vm4 = vcmp.lt.s32.totalorder %v2311_v41, 50  ;;  %v255_v44 = vld [vmem:[#allocation6 + $0x63] ss:$8 sm:$0x3] }
  0x28   :  { %v108_v62 = vrot.slane %v107_v57, 1  ;;  %v121_v63 = vadd.f32 %v120_v58, %v119_v54  ;;  %v114_v0 = vadd.f32 %v113_v60, %v112_v55  ;;  %v209_v54 = vld [vmem:[#allocation6 + $0x1] ss:$8 sm:$0x3]  ;;  %vm234_vm5 = vcmp.lt.s32.totalorder %v2311_v41, 49 }
  0x29   :  { %v127_v1 = vrot.slane %v126_v61, 2  ;;  %vm269_vm6 = vcmp.lt.s32.totalorder %v2311_v41, 48  ;;  %vm304_vm7 = vcmp.lt.s32.totalorder %v2311_v41, 47  ;;  %vm339_vm8 = vcmp.lt.s32.totalorder %v2311_v41, 46 }
  0x2a   :  { %v109_v2 = vadd.f32 %v108_v62, %v107_v57  ;;  %v122_v3 = vrot.slane %v121_v63, 1  ;;  %v115_v9 = vrot.slane %v114_v0, 1  ;;  %v220_v62 = vld [vmem:[#allocation6 + $0x62] ss:$8 sm:$0x3]  ;;  %vm374_vm9 = vcmp.lt.s32.totalorder %v2311_v41, 45 }
  0x2b   :  { %v128_v5 = vadd.f32 %v127_v1, %v126_v61  ;;  %v212_v1 = vperm.slane %v209_v54, 1  ;;  %vm409_vm10 = vcmp.lt.s32.totalorder %v2311_v41, 35  ;;  %vm444_vm11 = vcmp.lt.s32.totalorder %v2311_v41, 34 }
  0x2c   :  { %274 = vrot.lane.b32.xlu0 %v2186_v52, %s2094_s27  ;;  %170 = vrot.lane.b32.xlu1 %v2186_v52, %s2092_s1  ;;  %v123_v6 = vadd.f32 %v122_v3, %v121_v63  ;;  %v138_v7 = vmul.f32 %v137_v4, %v109_v2  ;;  %v116_v13 = vadd.f32 %v115_v9, %v114_v0  ;;  %v211_v63 = vperm.slane %v209_v54, 0  ;;  %v244_v3 = vld [vmem:[#allocation6 + $0x2] ss:$8 sm:$0x3] }
  0x2d   :  { %v129_v10 = vrot.slane %v128_v5, 1  ;;  %272 = vrot.lane.b32.xlu2 %v2178_v50, %s2094_s27  ;;  %v223_v9 = vperm.slane %v220_v62, 1  ;;  %vm479_vm12 = vcmp.lt.s32.totalorder %v2311_v41, 33  ;;  %vm514_vm13 = vcmp.lt.s32.totalorder %v2311_v41, 32 }
  0x2e   :  { %v140_v11 = vmul.f32 %v137_v4, %v123_v6  ;;  %v139_v8 = vmul.f32 %v137_v4, %v116_v13  ;;  %v222_v6 = vperm.slane %v220_v62, 0  ;;  %vm549_vm14 = vcmp.lt.s32.totalorder %v2311_v41, 31 }
  0x2f   :  { %v130_v14 = vadd.f32 %v129_v10, %v128_v5  ;;  %vm584_vm15 = vcmp.lt.s32.totalorder %v2311_v41, 30  ;;  %vm619_vm0 = vcmp.lt.s32.totalorder %v2311_v41, 29  ;;  %vm654_vm2 = vcmp.lt.s32.totalorder %v2311_v41, 19 }
  0x30   :  { %v2198_v12 = vsel %vm146_vm1, %v140_v11, %v138_v7  ;;  %v246_v11 = vperm.slane %v244_v3, 0 }
  0x31   :  { %v141_v15 = vmul.f32 %v137_v4, %v130_v14 }
  0x33   :  { %v2207_v16 = vsel %vm146_vm1, %v141_v15, %v139_v8  ;;  %v247_v8 = vperm.slane %v244_v3, 1 }
  0x34   :  { %151 = vrot.lane.b32.xlu0 %v2198_v12, %s2092_s1  ;;  %204 = vrot.lane.b32.xlu1 %v2186_v52, %s2091_s0 }
  0x35   :  { %195 = vrot.lane.b32.xlu2 %v2198_v12, %s2091_s0 }
  0x3c   :  { %153 = vrot.lane.b32.xlu0 %v2207_v16, %s2092_s1  ;;  %237 = vrot.lane.b32.xlu1 %v2178_v50, %s2093_s26  ;;  %s2121_s1 = smov 111  }
  0x3d   :  { %197 = vrot.lane.b32.xlu2 %v2207_v16, %s2091_s0  ;;  %s2120_s0 = smov 112  }
  0x44   :  { %232 = vrot.lane.b32.xlu0 %v2207_v16, %s2093_s26  ;;  %267 = vrot.lane.b32.xlu1 %v2207_v16, %s2094_s27 }
  0x45   :  { %230 = vrot.lane.b32.xlu2 %v2198_v12, %s2093_s26  ;;  %s2122_s26 = smov 110  }
  0x4c   :  { %265 = vrot.lane.b32.xlu0 %v2198_v12, %s2094_s27  ;;  %300 = vrot.lane.b32.xlu1 %v2198_v12, %s2095_s28  ;;  %s2123_s27 = smov 109  }
  0x4d   :  { %302 = vrot.lane.b32.xlu2 %v2207_v16, %s2095_s28 }
  0x54   :  { %307 = vrot.lane.b32.xlu0 %v2178_v50, %s2095_s28  ;;  %309 = vrot.lane.b32.xlu1 %v2186_v52, %s2095_s28  ;;  %s2124_s28 = smov 99  }
  0x55   :  { %335 = vrot.lane.b32.xlu2 %v2198_v12, %s2096_s29 }
  0x5c   :  { %337 = vrot.lane.b32.xlu0 %v2207_v16, %s2096_s29  ;;  %342 = vrot.lane.b32.xlu1 %v2178_v50, %s2096_s29 }
  0x5d   :  { %344 = vrot.lane.b32.xlu2 %v2186_v52, %s2096_s29  ;;  %s2125_s29 = smov 98  }
  0x64   :  { %370 = vrot.lane.b32.xlu0 %v2198_v12, %s2097_s30  ;;  %372 = vrot.lane.b32.xlu1 %v2207_v16, %s2097_s30 }
  0x65   :  { %377 = vrot.lane.b32.xlu2 %v2178_v50, %s2097_s30 }
  0x6c   :  { %379 = vrot.lane.b32.xlu0 %v2186_v52, %s2097_s30  ;;  %405 = vrot.lane.b32.xlu1 %v2198_v12, %s2098_s4  ;;  %s2126_s30 = smov 97  }
  0x6d   :  { %407 = vrot.lane.b32.xlu2 %v2207_v16, %s2098_s4 }
  0x74   :  { %412 = vrot.lane.b32.xlu0 %v2178_v50, %s2098_s4  ;;  %414 = vrot.lane.b32.xlu1 %v2186_v52, %s2098_s4  ;;  %s2127_s4 = smov 96  }
  0x75   :  { %440 = vrot.lane.b32.xlu2 %v2198_v12, %s2099_s5 }
  0x7c   :  { %442 = vrot.lane.b32.xlu0 %v2207_v16, %s2099_s5  ;;  %447 = vrot.lane.b32.xlu1 %v2178_v50, %s2099_s5 }
  0x7d   :  { %449 = vrot.lane.b32.xlu2 %v2186_v52, %s2099_s5  ;;  %s2128_s5 = smov 95  }
  0x7f   :  { %v2241_v17 = vpop.permute.xlu2 %239 }
  0x84   :  { %475 = vrot.lane.b32.xlu0 %v2198_v12, %s2100_s6  ;;  %477 = vrot.lane.b32.xlu1 %v2207_v16, %s2100_s6 }
  0x85   :  { %482 = vrot.lane.b32.xlu2 %v2178_v50, %s2100_s6 }
  0x87   :  { %v2246_v18 = vpop.permute.xlu2 %272 }
  0x8c   :  { %484 = vrot.lane.b32.xlu0 %v2186_v52, %s2100_s6  ;;  %510 = vrot.lane.b32.xlu1 %v2198_v12, %s2101_s7  ;;  %s2129_s6 = smov 94  }
  0x8d   :  { %512 = vrot.lane.b32.xlu2 %v2207_v16, %s2101_s7 }
  0x8f   :  { %v2253_v19 = vpop.permute.xlu2 %195 }
  0x94   :  { %517 = vrot.lane.b32.xlu0 %v2178_v50, %s2101_s7  ;;  %519 = vrot.lane.b32.xlu1 %v2186_v52, %s2101_s7 }
  0x95   :  { %545 = vrot.lane.b32.xlu2 %v2198_v12, %s2102_s8 }
  0x96   :  { %v2260_v20 = vpop.permute.xlu0 %202  ;;  %v169_v21 = vpop.permute.xlu1 %168 }
  0x97   :  { %v2262_v22 = vpop.permute.xlu2 %197 }
  0x98   :  { %v201_v2 = vsel %vm199_vm4, %v2262_v22, %v2253_v19  ;;  %v200_v4 = vsel %vm199_vm4, %v2253_v19, %v2262_v22 }
  0x99   :  { %v215_v10 = vmul.f32 %v211_v63, %v201_v2  ;;  %v216_v14 = vmul.f32 %v212_v1, %v200_v4 }
  0x9c   :  { %547 = vrot.lane.b32.xlu0 %v2207_v16, %s2102_s8  ;;  %552 = vrot.lane.b32.xlu1 %v2178_v50, %s2102_s8 }
  0x9d   :  { %554 = vrot.lane.b32.xlu2 %v2186_v52, %s2102_s8  ;;  %s2130_s8 = smov 93  }
  0x9e   :  { %v2267_v23 = vpop.permute.xlu0 %274  ;;  %v171_v24 = vpop.permute.xlu1 %170 }
  0x9f   :  { %v2269_v25 = vpop.permute.xlu2 %230  ;;  %v173_v53 = vsel %vm157_vm3, %v171_v24, %v169_v21  ;;  %v172_v57 = vsel %vm157_vm3, %v169_v21, %v171_v24 }
  0xa0   :  { %v191_v61 = vmul.f32 %v187_v48, %v173_v53  ;;  %v192_v0 = vmul.f32 %v188_v51, %v172_v57  ;;  %v257_v53 = vperm.slane %v255_v44, 0 }
  0xa4   :  { %580 = vrot.lane.b32.xlu0 %v2198_v12, %s2103_s9  ;;  %582 = vrot.lane.b32.xlu1 %v2207_v16, %s2103_s9 }
  0xa5   :  { %587 = vrot.lane.b32.xlu2 %v2178_v50, %s2103_s9 }
  0xa6   :  { %v152_v26 = vpop.permute.xlu0 %151  ;;  %v2274_v27 = vpop.permute.xlu1 %204 }
  0xa7   :  { %v2276_v28 = vpop.permute.xlu2 %302  ;;  %v207_v13 = vsel %vm199_vm4, %v2274_v27, %v2260_v20  ;;  %v206_v22 = vsel %vm199_vm4, %v2260_v20, %v2274_v27  ;;  %v258_v20 = vperm.slane %v255_v44, 1  ;;  %vm724_vm4 = vcmp.lt.s32.totalorder %v2311_v41, 17 }
  0xa8   :  { %v227_v48 = vmul.f32 %v223_v9, %v206_v22 }
  0xac   :  { %589 = vrot.lane.b32.xlu0 %v2186_v52, %s2103_s9  ;;  %615 = vrot.lane.b32.xlu1 %v2198_v12, %s2104_s10  ;;  %s2131_s9 = smov 83  }
  0xad   :  { %617 = vrot.lane.b32.xlu2 %v2207_v16, %s2104_s10 }
  0xae   :  { %v154_v29 = vpop.permute.xlu0 %153  ;;  %v2281_v30 = vpop.permute.xlu1 %237 }
  0xaf   :  { %v2283_v31 = vpop.permute.xlu2 %335  ;;  %v159_v47 = vsel %vm157_vm3, %v154_v29, %v152_v26  ;;  %v158_v49 = vsel %vm157_vm3, %v152_v26, %v154_v29  ;;  %vm689_vm3 = vcmp.lt.s32.totalorder %v2311_v41, 18 }
  0xb0   :  { %v180_v58 = vmul.f32 %v176_v45, %v159_v47  ;;  %v181_v60 = vmul.f32 %v177_v46, %v158_v49  ;;  %v279_v45 = vld [vmem:[#allocation6 + $0x3] ss:$8 sm:$0x3]  ;;  %v226_v46 = vmul.f32 %v222_v6, %v207_v13 }
  0xb1   :  { %v281_v27 = vperm.slane %v279_v45, 0 }
  0xb2   :  { %v193_v5 = vadd.f32 %v191_v61, %v180_v58  ;;  %v194_v7 = vadd.f32 %v192_v0, %v181_v60  ;;  %v290_v58 = vld [vmem:[#allocation6 + $0x64] ss:$8 sm:$0x3]  ;;  %v241_v60 = vsel %vm234_vm5, %v2281_v30, %v2241_v17 }
  0xb3   :  { %v293_v6 = vperm.slane %v290_v58, 1 }
  0xb4   :  { %622 = vrot.lane.b32.xlu0 %v2178_v50, %s2104_s10  ;;  %624 = vrot.lane.b32.xlu1 %v2186_v52, %s2104_s10  ;;  %v217_v24 = vadd.f32 %v215_v10, %v193_v5  ;;  %v218_v43 = vadd.f32 %v216_v14, %v194_v7  ;;  %v292_v5 = vperm.slane %v290_v58, 0  ;;  %v276_v7 = vsel %vm269_vm6, %v2246_v18, %v2267_v23  ;;  %v314_v10 = vld [vmem:[#allocation6 + $0x4] ss:$8 sm:$0x3]  ;;  %s2132_s10 = smov 82  }
  0xb5   :  { %650 = vrot.lane.b32.xlu2 %v2198_v12, %s2105_s11  ;;  %v297_v22 = vmul.f32 %v293_v6, %v276_v7 }
  0xb6   :  { %v2288_v32 = vpop.permute.xlu0 %232  ;;  %v2290_v33 = vpop.permute.xlu1 %267  ;;  %v228_v51 = vadd.f32 %v226_v46, %v217_v24  ;;  %v229_v54 = vadd.f32 %v227_v48, %v218_v43  ;;  %v316_v24 = vperm.slane %v314_v10, 0 }
  0xb7   :  { %v2292_v34 = vpop.permute.xlu2 %344  ;;  %v236_v15 = vsel %vm234_vm5, %v2288_v32, %v2269_v25  ;;  %v235_v26 = vsel %vm234_vm5, %v2269_v25, %v2288_v32  ;;  %v242_v25 = vsel %vm234_vm5, %v2241_v17, %v2281_v30  ;;  %v282_v32 = vperm.slane %v279_v45, 1 }
  0xb8   :  { %v250_v47 = vmul.f32 %v246_v11, %v236_v15  ;;  %v251_v49 = vmul.f32 %v247_v8, %v235_v26  ;;  %v261_v2 = vmul.f32 %v257_v53, %v242_v25  ;;  %v262_v17 = vmul.f32 %v258_v20, %v241_v60  ;;  %v325_v11 = vld [vmem:[#allocation6 + $0x65] ss:$8 sm:$0x3]  ;;  %v360_v25 = vld [vmem:[#allocation6 + $0x66] ss:$8 sm:$0x3] }
  0xb9   :  { %v349_v15 = vld [vmem:[#allocation6 + $0x5] ss:$8 sm:$0x3]  ;;  %v327_v26 = vperm.slane %v325_v11, 0  ;;  %v328_v43 = vperm.slane %v325_v11, 1  ;;  %vm759_vm5 = vcmp.lt.s32.totalorder %v2311_v41, 16 }
  0xba   :  { %v252_v61 = vadd.f32 %v250_v47, %v228_v51  ;;  %v253_v63 = vadd.f32 %v251_v49, %v229_v54  ;;  %v351_v51 = vperm.slane %v349_v15, 0 }
  0xbc   :  { %652 = vrot.lane.b32.xlu0 %v2207_v16, %s2105_s11  ;;  %657 = vrot.lane.b32.xlu1 %v2178_v50, %s2105_s11  ;;  %v264_v9 = vadd.f32 %v262_v17, %v253_v63 }
  0xbd   :  { %659 = vrot.lane.b32.xlu2 %v2186_v52, %s2105_s11  ;;  %s2133_s11 = smov 81  }
  0xbe   :  { %v2297_v35 = vpop.permute.xlu0 %265  ;;  %v2299_v36 = vpop.permute.xlu1 %300 }
  0xbf   :  { %v2301_v37 = vpop.permute.xlu2 %377  ;;  %v271_v57 = vsel %vm269_vm6, %v2290_v33, %v2297_v35  ;;  %v270_v62 = vsel %vm269_vm6, %v2297_v35, %v2290_v33  ;;  %v277_v33 = vsel %vm269_vm6, %v2267_v23, %v2246_v18  ;;  %v263_v35 = vadd.f32 %v261_v2, %v252_v61 }
  0xc0   :  { %v285_v3 = vmul.f32 %v281_v27, %v271_v57  ;;  %v286_v30 = vmul.f32 %v282_v32, %v270_v62  ;;  %v296_v14 = vmul.f32 %v292_v5, %v277_v33  ;;  %v317_v18 = vperm.slane %v314_v10, 1  ;;  %v395_v5 = vld [vmem:[#allocation6 + $0x67] ss:$8 sm:$0x3] }
  0xc1   :  { %v306_v23 = vsel %vm304_vm7, %v2276_v28, %v2299_v36  ;;  %v305_v48 = vsel %vm304_vm7, %v2299_v36, %v2276_v28  ;;  %v352_v27 = vperm.slane %v349_v15, 1  ;;  %v362_v61 = vperm.slane %v360_v25, 0 }
  0xc2   :  { %v287_v13 = vadd.f32 %v285_v3, %v263_v35  ;;  %v288_v8 = vadd.f32 %v286_v30, %v264_v9  ;;  %v320_v32 = vmul.f32 %v316_v24, %v306_v23  ;;  %v321_v36 = vmul.f32 %v317_v18, %v305_v48 }
  0xc3   :  { %v363_v2 = vperm.slane %v360_v25, 1  ;;  %vm794_vm6 = vcmp.lt.s32.totalorder %v2311_v41, 15 }
  0xc4   :  { %685 = vrot.lane.b32.xlu0 %v2198_v12, %s2106_s12  ;;  %687 = vrot.lane.b32.xlu1 %v2207_v16, %s2106_s12  ;;  %v298_v47 = vadd.f32 %v296_v14, %v287_v13  ;;  %v299_v20 = vadd.f32 %v297_v22, %v288_v8  ;;  %v398_v8 = vperm.slane %v395_v5, 1  ;;  %v419_v22 = vld [vmem:[#allocation6 + $0x7] ss:$8 sm:$0x3] }
  0xc5   :  { %692 = vrot.lane.b32.xlu2 %v2178_v50, %s2106_s12  ;;  %v422_v48 = vperm.slane %v419_v22, 1 }
  0xc6   :  { %v2306_v39 = vpop.permute.xlu0 %307  ;;  %v2308_v40 = vpop.permute.xlu1 %309  ;;  %v322_v58 = vadd.f32 %v320_v32, %v298_v47  ;;  %v323_v62 = vadd.f32 %v321_v36, %v299_v20 }
  0xc7   :  { %v2313_v42 = vpop.permute.xlu2 %407  ;;  %v312_v44 = vsel %vm304_vm7, %v2308_v40, %v2306_v39  ;;  %v311_v49 = vsel %vm304_vm7, %v2306_v39, %v2308_v40  ;;  %v384_v40 = vld [vmem:[#allocation6 + $0x6] ss:$8 sm:$0x3]  ;;  %vm829_vm7 = vcmp.lt.s32.totalorder %v2311_v41, 14 }
  0xc8   :  { %v331_v57 = vmul.f32 %v327_v26, %v312_v44  ;;  %v332_v39 = vmul.f32 %v328_v43, %v311_v49  ;;  %v386_v17 = vperm.slane %v384_v40, 0  ;;  %v387_v6 = vperm.slane %v384_v40, 1 }
  0xc9   :  { %v421_v43 = vperm.slane %v419_v22, 0 }
  0xca   :  { %v334_v30 = vadd.f32 %v332_v39, %v323_v62  ;;  %v465_v62 = vld [vmem:[#allocation6 + $0x71] ss:$8 sm:$0x3] }
  0xcc   :  { %694 = vrot.lane.b32.xlu0 %v2186_v52, %s2106_s12  ;;  %720 = vrot.lane.b32.xlu1 %v2198_v12, %s2107_s13  ;;  %s2134_s12 = smov 80  }
  0xcd   :  { %722 = vrot.lane.b32.xlu2 %v2207_v16, %s2107_s13 }
  0xce   :  { %v2319_v55 = vpop.permute.xlu0 %337  ;;  %v2321_v56 = vpop.permute.xlu1 %342 }
  0xcf   :  { %v2323_v59 = vpop.permute.xlu2 %440  ;;  %v341_v54 = vsel %vm339_vm8, %v2319_v55, %v2283_v31  ;;  %v340_v28 = vsel %vm339_vm8, %v2283_v31, %v2319_v55  ;;  %v347_v3 = vsel %vm339_vm8, %v2292_v34, %v2321_v56  ;;  %v333_v31 = vadd.f32 %v331_v57, %v322_v58 }
  0xd0   :  { %v355_v60 = vmul.f32 %v351_v51, %v341_v54  ;;  %v356_v63 = vmul.f32 %v352_v27, %v340_v28  ;;  %v346_v55 = vsel %vm339_vm8, %v2321_v56, %v2292_v34  ;;  %v366_v10 = vmul.f32 %v362_v61, %v347_v3  ;;  %v454_v51 = vld [vmem:[#allocation6 + $0x10] ss:$8 sm:$0x3] }
  0xd1   :  { %v397_v56 = vperm.slane %v395_v5, 0  ;;  %v367_v14 = vmul.f32 %v363_v2, %v346_v55  ;;  %v489_v55 = vld [vmem:[#allocation6 + $0x11] ss:$8 sm:$0x3]  ;;  %vm864_vm8 = vcmp.lt.s32.totalorder %v2311_v41, 13 }
  0xd2   :  { %v357_v9 = vadd.f32 %v355_v60, %v333_v31  ;;  %v358_v13 = vadd.f32 %v356_v63, %v334_v30  ;;  %v457_v60 = vperm.slane %v454_v51, 1 }
  0xd4   :  { %727 = vrot.lane.b32.xlu0 %v2178_v50, %s2107_s13  ;;  %729 = vrot.lane.b32.xlu1 %v2186_v52, %s2107_s13  ;;  %v368_v18 = vadd.f32 %v366_v10, %v357_v9  ;;  %v369_v44 = vadd.f32 %v367_v14, %v358_v13  ;;  %v491_v10 = vperm.slane %v489_v55, 0  ;;  %s2135_s13 = smov 79  }
  0xd5   :  { %755 = vrot.lane.b32.xlu2 %v2198_v12, %s2089_s25 }
  0xd6   :  { %v2347_v19 = vpop.permute.xlu0 %370  ;;  %v2349_v21 = vpop.permute.xlu1 %372 }
  0xd7   :  { %v2359_v29 = vpop.permute.xlu2 %449  ;;  %v376_v33 = vsel %vm374_vm9, %v2349_v21, %v2347_v19  ;;  %v375_v34 = vsel %vm374_vm9, %v2347_v19, %v2349_v21  ;;  %v430_v21 = vld [vmem:[#allocation6 + $0x70] ss:$8 sm:$0x3] }
  0xd8   :  { %v390_v24 = vmul.f32 %v386_v17, %v376_v33  ;;  %v391_v19 = vmul.f32 %v387_v6, %v375_v34  ;;  %v432_v20 = vperm.slane %v430_v21, 0  ;;  %v433_v54 = vperm.slane %v430_v21, 1  ;;  %v524_v21 = vld [vmem:[#allocation6 + $0x12] ss:$8 sm:$0x3] }
  0xd9   :  { %v492_v34 = vperm.slane %v489_v55, 1 }
  0xda   :  { %v393_v27 = vadd.f32 %v391_v19, %v369_v44 }
  0xdc   :  { %757 = vrot.lane.b32.xlu0 %v2207_v16, %s2089_s25  ;;  %762 = vrot.lane.b32.xlu1 %v2178_v50, %s2089_s25 }
  0xdd   :  { %764 = vrot.lane.b32.xlu2 %v2186_v52, %s2089_s25  ;;  %s2119_s25 = smov 113  }
  0xde   :  { %v2384_v0 = vpop.permute.xlu0 %379  ;;  %v2386_v1 = vpop.permute.xlu1 %405 }
  0xdf   :  { %v2388_v4 = vpop.permute.xlu2 %482  ;;  %v382_v15 = vsel %vm374_vm9, %v2384_v0, %v2301_v37  ;;  %v381_v26 = vsel %vm374_vm9, %v2301_v37, %v2384_v0  ;;  %v411_v49 = vsel %vm409_vm10, %v2313_v42, %v2386_v1  ;;  %v392_v37 = vadd.f32 %v390_v24, %v368_v18 }
  0xe0   :  { %v401_v23 = vmul.f32 %v397_v56, %v382_v15  ;;  %v402_v47 = vmul.f32 %v398_v8, %v381_v26  ;;  %v410_v0 = vsel %vm409_vm10, %v2386_v1, %v2313_v42  ;;  %v425_v36 = vmul.f32 %v421_v43, %v411_v49  ;;  %v535_v49 = vld [vmem:[#allocation6 + $0x73] ss:$8 sm:$0x3] }
  0xe1   :  { %v456_v1 = vperm.slane %v454_v51, 0  ;;  %v426_v58 = vmul.f32 %v422_v48, %v410_v0  ;;  %v526_v48 = vperm.slane %v524_v21, 0  ;;  %vm899_vm9 = vcmp.lt.s32.totalorder %v2311_v41, 3 }
  0xe2   :  { %v403_v28 = vadd.f32 %v401_v23, %v392_v37  ;;  %v404_v40 = vadd.f32 %v402_v47, %v393_v27 }
  0xe4   :  { %790 = vrot.lane.b32.xlu0 %v2198_v12, %s2108_s14  ;;  %792 = vrot.lane.b32.xlu1 %v2207_v16, %s2108_s14  ;;  %v427_v5 = vadd.f32 %v425_v36, %v403_v28  ;;  %v428_v17 = vadd.f32 %v426_v58, %v404_v40  ;;  %v538_v28 = vperm.slane %v535_v49, 1 }
  0xe5   :  { %797 = vrot.lane.b32.xlu2 %v2178_v50, %s2108_s14 }
  0xe6   :  { %v2414_v45 = vpop.permute.xlu0 %412  ;;  %v2416_v46 = vpop.permute.xlu1 %414 }
  0xe7   :  { %v2426_v53 = vpop.permute.xlu2 %512  ;;  %v417_v25 = vsel %vm409_vm10, %v2416_v46, %v2414_v45  ;;  %v416_v42 = vsel %vm409_vm10, %v2414_v45, %v2416_v46  ;;  %v467_v45 = vperm.slane %v465_v62, 0  ;;  %v468_v46 = vperm.slane %v465_v62, 1  ;;  %v559_v62 = vld [vmem:[#allocation6 + $0x13] ss:$8 sm:$0x3] }
  0xe8   :  { %v436_v63 = vmul.f32 %v432_v20, %v417_v25  ;;  %v437_v3 = vmul.f32 %v433_v54, %v416_v42  ;;  %v527_v20 = vperm.slane %v524_v21, 1  ;;  %vm934_vm10 = vcmp.lt.s32.totalorder %v2311_v41, 2 }
  0xea   :  { %v439_v9 = vadd.f32 %v437_v3, %v428_v17 }
  0xec   :  { %799 = vrot.lane.b32.xlu0 %v2186_v52, %s2108_s14  ;;  %825 = vrot.lane.b32.xlu1 %v2198_v12, %s2109_s15  ;;  %s2136_s14 = smov 78  }
  0xed   :  { %827 = vrot.lane.b32.xlu2 %v2207_v16, %s2109_s15 }
  0xee   :  { %v443_v35 = vpop.permute.xlu0 %442  ;;  %v2455_v7 = vpop.permute.xlu1 %447 }
  0xef   :  { %v2461_v11 = vpop.permute.xlu2 %545  ;;  %v446_v61 = vsel %vm444_vm11, %v443_v35, %v2323_v59  ;;  %v445_v2 = vsel %vm444_vm11, %v2323_v59, %v443_v35  ;;  %v452_v6 = vsel %vm444_vm11, %v2359_v29, %v2455_v7  ;;  %v438_v59 = vadd.f32 %v436_v63, %v427_v5  ;;  %v500_v35 = vld [vmem:[#allocation6 + $0x72] ss:$8 sm:$0x3]  ;;  %v570_v63 = vld [vmem:[#allocation6 + $0x74] ss:$8 sm:$0x3] }
  0xf0   :  { %v460_v31 = vmul.f32 %v456_v1, %v446_v61  ;;  %v461_v30 = vmul.f32 %v457_v60, %v445_v2  ;;  %v451_v33 = vsel %vm444_vm11, %v2455_v7, %v2359_v29  ;;  %v471_v8 = vmul.f32 %v467_v45, %v452_v6 }
  0xf1   :  { %v472_v7 = vmul.f32 %v468_v46, %v451_v33  ;;  %v502_v26 = vperm.slane %v500_v35, 0  ;;  %v503_v19 = vperm.slane %v500_v35, 1  ;;  %v561_v5 = vperm.slane %v559_v62, 0 }
  0xf2   :  { %v462_v14 = vadd.f32 %v460_v31, %v438_v59  ;;  %v463_v29 = vadd.f32 %v461_v30, %v439_v9  ;;  %v562_v31 = vperm.slane %v559_v62, 1  ;;  %v572_v55 = vperm.slane %v570_v63, 0  ;;  %v640_v62 = vld [vmem:[#allocation6 + $0x76] ss:$8 sm:$0x3] }
  0xf3   :  { %v573_v17 = vperm.slane %v570_v63, 1  ;;  %vm969_vm11 = vcmp.lt.s32.totalorder %v2311_v41, 1 }
  0xf4   :  { %832 = vrot.lane.b32.xlu0 %v2178_v50, %s2109_s15  ;;  %834 = vrot.lane.b32.xlu1 %v2186_v52, %s2109_s15  ;;  %v473_v47 = vadd.f32 %v471_v8, %v462_v14  ;;  %v474_v51 = vadd.f32 %v472_v7, %v463_v29  ;;  %s2137_s15 = smov 77  }
  0xf5   :  { %860 = vrot.lane.b32.xlu2 %v2198_v12, %s2110_s16 }
  0xf6   :  { %v476_v32 = vpop.permute.xlu0 %475  ;;  %v478_v57 = vpop.permute.xlu1 %477 }
  0xf7   :  { %v2495_v39 = vpop.permute.xlu2 %554  ;;  %v480_v15 = vsel %vm479_vm12, %v476_v32, %v478_v57  ;;  %v481_v22 = vsel %vm479_vm12, %v478_v57, %v476_v32  ;;  %v537_v57 = vperm.slane %v535_v49, 0  ;;  %v605_v49 = vld [vmem:[#allocation6 + $0x75] ss:$8 sm:$0x3] }
  0xf8   :  { %v495_v43 = vmul.f32 %v491_v10, %v481_v22  ;;  %v496_v44 = vmul.f32 %v492_v34, %v480_v15  ;;  %v594_v22 = vld [vmem:[#allocation6 + $0x14] ss:$8 sm:$0x3] }
  0xfa   :  { %v497_v54 = vadd.f32 %v495_v43, %v473_v47  ;;  %v498_v25 = vadd.f32 %v496_v44, %v474_v51  ;;  %v629_v51 = vld [vmem:[#allocation6 + $0x15] ss:$8 sm:$0x3] }
  0xfc   :  { %862 = vrot.lane.b32.xlu0 %v2207_v16, %s2110_s16  ;;  %867 = vrot.lane.b32.xlu1 %v2178_v50, %s2110_s16 }
  0xfd   :  { %869 = vrot.lane.b32.xlu2 %v2186_v52, %s2110_s16 }
  0xfe   :  { %v485_v56 = vpop.permute.xlu0 %484  ;;  %v511_v13 = vpop.permute.xlu1 %510 }
  0xff   :  { %v2522_v24 = vpop.permute.xlu2 %587  ;;  %v486_v18 = vsel %vm479_vm12, %v2388_v4, %v485_v56  ;;  %v487_v23 = vsel %vm479_vm12, %v485_v56, %v2388_v4  ;;  %v515_v4 = vsel %vm514_vm13, %v511_v13, %v2426_v53  ;;  %v516_v27 = vsel %vm514_vm13, %v2426_v53, %v511_v13 }
 0x100   :  { %v506_v37 = vmul.f32 %v502_v26, %v487_v23  ;;  %v507_v0 = vmul.f32 %v503_v19, %v486_v18  ;;  %v530_v61 = vmul.f32 %v526_v48, %v516_v27  ;;  %v531_v53 = vmul.f32 %v527_v20, %v515_v4 }
 0x101   :  { %v597_v19 = vperm.slane %v594_v22, 1  ;;  %v607_v20 = vperm.slane %v605_v49, 0  ;;  %v608_v4 = vperm.slane %v605_v49, 1  ;;  %v631_v27 = vperm.slane %v629_v51, 0 }
 0x102   :  { %v508_v58 = vadd.f32 %v506_v37, %v497_v54  ;;  %v509_v60 = vadd.f32 %v507_v0, %v498_v25  ;;  %v632_v54 = vperm.slane %v629_v51, 1  ;;  %vm1026_vm12 = vcmp.lt.s32.totalorder %v2311_v41, 127 }
 0x104   :  { %895 = vrot.lane.b32.xlu0 %v2198_v12, %s2111_s17  ;;  %897 = vrot.lane.b32.xlu1 %v2207_v16, %s2111_s17  ;;  %v532_v45 = vadd.f32 %v530_v61, %v508_v58  ;;  %v533_v46 = vadd.f32 %v531_v53, %v509_v60 }
 0x105   :  { %902 = vrot.lane.b32.xlu2 %v2178_v50, %s2111_s17 }
 0x106   :  { %v518_v32 = vpop.permute.xlu0 %517  ;;  %v520_v36 = vpop.permute.xlu1 %519 }
 0x107   :  { %v521_v42 = vsel %vm514_vm13, %v518_v32, %v520_v36  ;;  %v522_v1 = vsel %vm514_vm13, %v520_v36, %v518_v32  ;;  %v2544_v40 = vpop.permute.xlu2 %617  ;;  %vm1061_vm13 = vcmp.lt.s32.totalorder %v2311_v41, 126 }
 0x108   :  { %v541_v2 = vmul.f32 %v537_v57, %v522_v1  ;;  %v542_v3 = vmul.f32 %v538_v28, %v521_v42 }
 0x10a   :  { %v543_v30 = vadd.f32 %v541_v2, %v532_v45  ;;  %v544_v6 = vadd.f32 %v542_v3, %v533_v46 }
 0x10c   :  { %904 = vrot.lane.b32.xlu0 %v2186_v52, %s2111_s17  ;;  %930 = vrot.lane.b32.xlu1 %v2198_v12, %s2112_s18 }
 0x10d   :  { %932 = vrot.lane.b32.xlu2 %v2207_v16, %s2112_s18 }
 0x10e   :  { %v548_v59 = vpop.permute.xlu0 %547  ;;  %v553_v33 = vpop.permute.xlu1 %552 }
 0x10f   :  { %v550_v35 = vsel %vm549_vm14, %v2461_v11, %v548_v59  ;;  %v551_v9 = vsel %vm549_vm14, %v548_v59, %v2461_v11  ;;  %v556_v10 = vsel %vm549_vm14, %v553_v33, %v2495_v39  ;;  %v557_v34 = vsel %vm549_vm14, %v2495_v39, %v553_v33  ;;  %v2564_v56 = vpop.permute.xlu2 %650  ;;  %v664_v59 = vld [vmem:[#allocation6 + $0x16] ss:$8 sm:$0x3]  ;;  %v675_v33 = vld [vmem:[#allocation6 + $0x77] ss:$8 sm:$0x3] }
 0x110   :  { %v565_v13 = vmul.f32 %v561_v5, %v551_v9  ;;  %v566_v14 = vmul.f32 %v562_v31, %v550_v35  ;;  %v576_v8 = vmul.f32 %v572_v55, %v557_v34  ;;  %v577_v15 = vmul.f32 %v573_v17, %v556_v10 }
 0x111   :  { %v596_v39 = vperm.slane %v594_v22, 0  ;;  %v643_v31 = vperm.slane %v640_v62, 1  ;;  %v666_v10 = vperm.slane %v664_v59, 0  ;;  %v667_v34 = vperm.slane %v664_v59, 1 }
 0x112   :  { %v567_v29 = vadd.f32 %v565_v13, %v543_v30  ;;  %v568_v7 = vadd.f32 %v566_v14, %v544_v6  ;;  %v677_v13 = vperm.slane %v675_v33, 0  ;;  %v678_v14 = vperm.slane %v675_v33, 1 }
 0x113   :  { %vm1096_vm14 = vcmp.lt.s32.totalorder %v2311_v41, 125 }
 0x114   :  { %v578_v11 = vadd.f32 %v576_v8, %v567_v29  ;;  %v579_v26 = vadd.f32 %v577_v15, %v568_v7  ;;  %937 = vrot.lane.b32.xlu0 %v2178_v50, %s2112_s18  ;;  %939 = vrot.lane.b32.xlu1 %v2186_v52, %s2112_s18 }
 0x115   :  { %965 = vrot.lane.b32.xlu2 %v2198_v12, %s2113_s19 }
 0x116   :  { %v581_v21 = vpop.permute.xlu0 %580  ;;  %v583_v18 = vpop.permute.xlu1 %582 }
 0x117   :  { %v585_v23 = vsel %vm584_vm15, %v581_v21, %v583_v18  ;;  %v586_v43 = vsel %vm584_vm15, %v583_v18, %v581_v21  ;;  %v2576_v44 = vpop.permute.xlu2 %659 }
 0x118   :  { %v600_v47 = vmul.f32 %v596_v39, %v586_v43  ;;  %v601_v48 = vmul.f32 %v597_v19, %v585_v23  ;;  %v699_v23 = vld [vmem:[#allocation6 + $0x17] ss:$8 sm:$0x3] }
 0x119   :  { %v702_v51 = vperm.slane %v699_v23, 1 }
 0x11a   :  { %v602_v37 = vadd.f32 %v600_v47, %v578_v11  ;;  %v603_v0 = vadd.f32 %v601_v48, %v579_v26 }
 0x11c   :  { %967 = vrot.lane.b32.xlu0 %v2207_v16, %s2113_s19  ;;  %972 = vrot.lane.b32.xlu1 %v2178_v50, %s2113_s19 }
 0x11d   :  { %974 = vrot.lane.b32.xlu2 %v2186_v52, %s2113_s19 }
 0x11e   :  { %v590_v25 = vpop.permute.xlu0 %589  ;;  %v616_v32 = vpop.permute.xlu1 %615 }
 0x11f   :  { %v591_v57 = vsel %vm584_vm15, %v2522_v24, %v590_v25  ;;  %v592_v28 = vsel %vm584_vm15, %v590_v25, %v2522_v24  ;;  %v620_v36 = vsel %vm619_vm0, %v616_v32, %v2544_v40  ;;  %v621_v42 = vsel %vm619_vm0, %v2544_v40, %v616_v32  ;;  %v2594_v1 = vpop.permute.xlu2 %692  ;;  %v710_v25 = vld [vmem:[#allocation6 + $0x80] ss:$8 sm:$0x3] }
 0x120   :  { %v611_v58 = vmul.f32 %v607_v20, %v592_v28  ;;  %v612_v60 = vmul.f32 %v608_v4, %v591_v57  ;;  %v635_v61 = vmul.f32 %v631_v27, %v621_v42  ;;  %v636_v53 = vmul.f32 %v632_v54, %v620_v36  ;;  %v734_v32 = vld [vmem:[#allocation6 + $0x20] ss:$8 sm:$0x3] }
 0x121   :  { %v642_v24 = vperm.slane %v640_v62, 0  ;;  %v712_v36 = vperm.slane %v710_v25, 0  ;;  %v713_v42 = vperm.slane %v710_v25, 1  ;;  %vm1131_vm15 = vcmp.lt.s32.totalorder %v2311_v41, 115 }
 0x122   :  { %v613_v63 = vadd.f32 %v611_v58, %v602_v37  ;;  %v614_v2 = vadd.f32 %v612_v60, %v603_v0  ;;  %v736_v58 = vperm.slane %v734_v32, 0  ;;  %v737_v60 = vperm.slane %v734_v32, 1 }
 0x124   :  { %v637_v3 = vadd.f32 %v635_v61, %v613_v63  ;;  %v638_v5 = vadd.f32 %v636_v53, %v614_v2  ;;  %1022 = vrot.lane.b32.xlu0 %v2198_v12, %s2114_s20  ;;  %1024 = vrot.lane.b32.xlu1 %v2207_v16, %s2114_s20 }
 0x125   :  { %1029 = vrot.lane.b32.xlu2 %v2178_v50, %s2114_s20 }
 0x126   :  { %v623_v40 = vpop.permute.xlu0 %622  ;;  %v625_v45 = vpop.permute.xlu1 %624 }
 0x127   :  { %v626_v46 = vsel %vm619_vm0, %v623_v40, %v625_v45  ;;  %v627_v55 = vsel %vm619_vm0, %v625_v45, %v623_v40  ;;  %v2603_v17 = vpop.permute.xlu2 %722  ;;  %vm1166_vm0 = vcmp.lt.s32.totalorder %v2311_v41, 114 }
 0x128   :  { %v646_v30 = vmul.f32 %v642_v24, %v627_v55  ;;  %v647_v6 = vmul.f32 %v643_v31, %v626_v46  ;;  %v745_v46 = vld [vmem:[#allocation6 + $0x81] ss:$8 sm:$0x3] }
 0x129   :  { %v748_v33 = vperm.slane %v745_v46, 1 }
 0x12a   :  { %v648_v35 = vadd.f32 %v646_v30, %v637_v3  ;;  %v649_v9 = vadd.f32 %v647_v6, %v638_v5 }
 0x12c   :  { %1031 = vrot.lane.b32.xlu0 %v2186_v52, %s2114_s20  ;;  %1057 = vrot.lane.b32.xlu1 %v2198_v12, %s2115_s21 }
 0x12d   :  { %1059 = vrot.lane.b32.xlu2 %v2207_v16, %s2115_s21 }
 0x12e   :  { %v653_v8 = vpop.permute.xlu0 %652  ;;  %v658_v15 = vpop.permute.xlu1 %657 }
 0x12f   :  { %v655_v22 = vsel %vm654_vm2, %v2564_v56, %v653_v8  ;;  %v656_v29 = vsel %vm654_vm2, %v653_v8, %v2564_v56  ;;  %v661_v7 = vsel %vm654_vm2, %v658_v15, %v2576_v44  ;;  %v662_v11 = vsel %vm654_vm2, %v2576_v44, %v658_v15  ;;  %v2613_v26 = vpop.permute.xlu2 %755  ;;  %v769_v8 = vld [vmem:[#allocation6 + $0x21] ss:$8 sm:$0x3]  ;;  %v780_v15 = vld [vmem:[#allocation6 + $0x82] ss:$8 sm:$0x3] }
 0x130   :  { %v670_v39 = vmul.f32 %v666_v10, %v656_v29  ;;  %v671_v19 = vmul.f32 %v667_v34, %v655_v22  ;;  %v681_v21 = vmul.f32 %v677_v13, %v662_v11  ;;  %v682_v18 = vmul.f32 %v678_v14, %v661_v7 }
 0x131   :  { %v701_v56 = vperm.slane %v699_v23, 0  ;;  %v771_v7 = vperm.slane %v769_v8, 0  ;;  %v772_v11 = vperm.slane %v769_v8, 1  ;;  %vm1201_vm2 = vcmp.lt.s32.totalorder %v2311_v41, 113 }
 0x132   :  { %v672_v43 = vadd.f32 %v670_v39, %v648_v35  ;;  %v673_v47 = vadd.f32 %v671_v19, %v649_v9  ;;  %v782_v39 = vperm.slane %v780_v15, 0  ;;  %v783_v19 = vperm.slane %v780_v15, 1 }
 0x134   :  { %v683_v48 = vadd.f32 %v681_v21, %v672_v43  ;;  %v684_v49 = vadd.f32 %v682_v18, %v673_v47  ;;  %1064 = vrot.lane.b32.xlu0 %v2178_v50, %s2115_s21  ;;  %1066 = vrot.lane.b32.xlu1 %v2186_v52, %s2115_s21 }
 0x135   :  { %1092 = vrot.lane.b32.xlu2 %v2198_v12, %s2116_s22 }
 0x136   :  { %v686_v44 = vpop.permute.xlu0 %685  ;;  %v688_v37 = vpop.permute.xlu1 %687 }
 0x137   :  { %v690_v0 = vsel %vm689_vm3, %v686_v44, %v688_v37  ;;  %v691_v20 = vsel %vm689_vm3, %v688_v37, %v686_v44  ;;  %v2623_v4 = vpop.permute.xlu2 %764 }
 0x138   :  { %v705_v27 = vmul.f32 %v701_v56, %v691_v20  ;;  %v706_v54 = vmul.f32 %v702_v51, %v690_v0  ;;  %v804_v0 = vld [vmem:[#allocation6 + $0x22] ss:$8 sm:$0x3] }
 0x139   :  { %v807_v32 = vperm.slane %v804_v0, 1 }
 0x13a   :  { %v707_v57 = vadd.f32 %v705_v27, %v683_v48  ;;  %v708_v28 = vadd.f32 %v706_v54, %v684_v49 }
 0x13c   :  { %1094 = vrot.lane.b32.xlu0 %v2207_v16, %s2116_s22  ;;  %1099 = vrot.lane.b32.xlu1 %v2178_v50, %s2116_s22 }
 0x13d   :  { %1101 = vrot.lane.b32.xlu2 %v2186_v52, %s2116_s22  ;;  %s1925_s22 = sshll.u32 %s3160_s3, 4  ;;  %s1926_s22 = int_to_ptr.hbm [resolvable:$true] %s1925_s22 }
 0x13e   :  { %v695_v61 = vpop.permute.xlu0 %694  ;;  %v721_v53 = vpop.permute.xlu1 %720 }
 0x13f   :  { %v696_v62 = vsel %vm689_vm3, %v2594_v1, %v695_v61  ;;  %v697_v63 = vsel %vm689_vm3, %v695_v61, %v2594_v1  ;;  %v725_v2 = vsel %vm724_vm4, %v721_v53, %v2603_v17  ;;  %v726_v3 = vsel %vm724_vm4, %v2603_v17, %v721_v53  ;;  %v2641_v5 = vpop.permute.xlu2 %797  ;;  %v815_v61 = vld [vmem:[#allocation6 + $0x83] ss:$8 sm:$0x3] }
 0x140   :  { %v716_v24 = vmul.f32 %v712_v36, %v697_v63  ;;  %v717_v31 = vmul.f32 %v713_v42, %v696_v62  ;;  %v740_v40 = vmul.f32 %v736_v58, %v726_v3  ;;  %v741_v45 = vmul.f32 %v737_v60, %v725_v2  ;;  %v839_v53 = vld [vmem:[#allocation6 + $0x23] ss:$8 sm:$0x3] }
 0x141   :  { %v747_v1 = vperm.slane %v745_v46, 0  ;;  %v817_v2 = vperm.slane %v815_v61, 0  ;;  %v818_v3 = vperm.slane %v815_v61, 1  ;;  %vm1236_vm3 = vcmp.lt.s32.totalorder %v2311_v41, 112 }
 0x142   :  { %v718_v55 = vadd.f32 %v716_v24, %v707_v57  ;;  %v719_v30 = vadd.f32 %v717_v31, %v708_v28  ;;  %v841_v24 = vperm.slane %v839_v53, 0  ;;  %v842_v31 = vperm.slane %v839_v53, 1 }
 0x144   :  { %v742_v6 = vadd.f32 %v740_v40, %v718_v55  ;;  %v743_v59 = vadd.f32 %v741_v45, %v719_v30  ;;  %1127 = vrot.lane.b32.xlu0 %v2198_v12, %s2117_s23  ;;  %1129 = vrot.lane.b32.xlu1 %v2207_v16, %s2117_s23 }
 0x145   :  { %1134 = vrot.lane.b32.xlu2 %v2178_v50, %s2117_s23 }
 0x146   :  { %v728_v17 = vpop.permute.xlu0 %727  ;;  %v730_v35 = vpop.permute.xlu1 %729 }
 0x147   :  { %v731_v9 = vsel %vm724_vm4, %v728_v17, %v730_v35  ;;  %v732_v10 = vsel %vm724_vm4, %v730_v35, %v728_v17  ;;  %v2650_v34 = vpop.permute.xlu2 %827  ;;  %vm1271_vm4 = vcmp.lt.s32.totalorder %v2311_v41, 111 }
 0x148   :  { %v751_v13 = vmul.f32 %v747_v1, %v732_v10  ;;  %v752_v14 = vmul.f32 %v748_v33, %v731_v9  ;;  %v850_v9 = vld [vmem:[#allocation6 + $0x84] ss:$8 sm:$0x3] }
 0x149   :  { %v853_v15 = vperm.slane %v850_v9, 1 }
 0x14a   :  { %v753_v22 = vadd.f32 %v751_v13, %v742_v6  ;;  %v754_v29 = vadd.f32 %v752_v14, %v743_v59 }
 0x14c   :  { %1136 = vrot.lane.b32.xlu0 %v2186_v52, %s2117_s23  ;;  %1162 = vrot.lane.b32.xlu1 %v2198_v12, %s2118_s24 }
 0x14d   :  { %1164 = vrot.lane.b32.xlu2 %v2207_v16, %s2118_s24 }
 0x14e   :  { %v758_v21 = vpop.permute.xlu0 %757  ;;  %v763_v18 = vpop.permute.xlu1 %762 }
 0x14f   :  { %v760_v23 = vsel %vm759_vm5, %v2613_v26, %v758_v21  ;;  %v761_v43 = vsel %vm759_vm5, %v758_v21, %v2613_v26  ;;  %v766_v47 = vsel %vm759_vm5, %v763_v18, %v2623_v4  ;;  %v767_v48 = vsel %vm759_vm5, %v2623_v4, %v763_v18  ;;  %v2660_v49 = vpop.permute.xlu2 %860  ;;  %v874_v21 = vld [vmem:[#allocation6 + $0x24] ss:$8 sm:$0x3]  ;;  %v885_v18 = vld [vmem:[#allocation6 + $0x85] ss:$8 sm:$0x3] }
 0x150   :  { %v775_v56 = vmul.f32 %v771_v7, %v761_v43  ;;  %v776_v51 = vmul.f32 %v772_v11, %v760_v23  ;;  %v786_v44 = vmul.f32 %v782_v39, %v767_v48  ;;  %v787_v37 = vmul.f32 %v783_v19, %v766_v47 }
 0x151   :  { %v806_v26 = vperm.slane %v804_v0, 0  ;;  %v876_v47 = vperm.slane %v874_v21, 0  ;;  %v877_v48 = vperm.slane %v874_v21, 1  ;;  %vm1306_vm5 = vcmp.lt.s32.totalorder %v2311_v41, 110 }
 0x152   :  { %v777_v20 = vadd.f32 %v775_v56, %v753_v22  ;;  %v778_v27 = vadd.f32 %v776_v51, %v754_v29  ;;  %v887_v56 = vperm.slane %v885_v18, 0  ;;  %v888_v51 = vperm.slane %v885_v18, 1 }
 0x154   :  { %v788_v54 = vadd.f32 %v786_v44, %v777_v20  ;;  %v789_v25 = vadd.f32 %v787_v37, %v778_v27  ;;  %1169 = vrot.lane.b32.xlu0 %v2178_v50, %s2118_s24  ;;  %1171 = vrot.lane.b32.xlu1 %v2186_v52, %s2118_s24 }
 0x155   :  { %1197 = vrot.lane.b32.xlu2 %v2198_v12, %s2119_s25 }
 0x156   :  { %v791_v4 = vpop.permute.xlu0 %790  ;;  %v793_v57 = vpop.permute.xlu1 %792 }
 0x157   :  { %v795_v28 = vsel %vm794_vm6, %v791_v4, %v793_v57  ;;  %v796_v36 = vsel %vm794_vm6, %v793_v57, %v791_v4  ;;  %v2670_v42 = vpop.permute.xlu2 %869 }
 0x158   :  { %v810_v58 = vmul.f32 %v806_v26, %v796_v36  ;;  %v811_v60 = vmul.f32 %v807_v32, %v795_v28  ;;  %v909_v28 = vld [vmem:[#allocation6 + $0x25] ss:$8 sm:$0x3] }
 0x159   :  { %v912_v53 = vperm.slane %v909_v28, 1 }
 0x15a   :  { %v812_v62 = vadd.f32 %v810_v58, %v788_v54  ;;  %v813_v63 = vadd.f32 %v811_v60, %v789_v25 }
 0x15c   :  { %1199 = vrot.lane.b32.xlu0 %v2207_v16, %s2119_s25  ;;  %1204 = vrot.lane.b32.xlu1 %v2178_v50, %s2119_s25 }
 0x15d   :  { %1206 = vrot.lane.b32.xlu2 %v2186_v52, %s2119_s25 }
 0x15e   :  { %v800_v40 = vpop.permute.xlu0 %799  ;;  %v826_v45 = vpop.permute.xlu1 %825 }
 0x15f   :  { %v801_v46 = vsel %vm794_vm6, %v2641_v5, %v800_v40  ;;  %v802_v55 = vsel %vm794_vm6, %v800_v40, %v2641_v5  ;;  %v830_v30 = vsel %vm829_vm7, %v826_v45, %v2650_v34  ;;  %v831_v6 = vsel %vm829_vm7, %v2650_v34, %v826_v45  ;;  %v2688_v59 = vpop.permute.xlu2 %902  ;;  %v920_v40 = vld [vmem:[#allocation6 + $0x86] ss:$8 sm:$0x3] }
 0x160   :  { %v821_v1 = vmul.f32 %v817_v2, %v802_v55  ;;  %v822_v33 = vmul.f32 %v818_v3, %v801_v46  ;;  %v845_v17 = vmul.f32 %v841_v24, %v831_v6  ;;  %v846_v35 = vmul.f32 %v842_v31, %v830_v30  ;;  %v944_v45 = vld [vmem:[#allocation6 + $0x26] ss:$8 sm:$0x3] }
 0x161   :  { %v852_v5 = vperm.slane %v850_v9, 0  ;;  %v922_v30 = vperm.slane %v920_v40, 0  ;;  %v923_v6 = vperm.slane %v920_v40, 1  ;;  %vm1341_vm6 = vcmp.lt.s32.totalorder %v2311_v41, 109 }
 0x162   :  { %v823_v10 = vadd.f32 %v821_v1, %v812_v62  ;;  %v824_v13 = vadd.f32 %v822_v33, %v813_v63  ;;  %v946_v1 = vperm.slane %v944_v45, 0  ;;  %v947_v33 = vperm.slane %v944_v45, 1 }
 0x164   :  { %v847_v14 = vadd.f32 %v845_v17, %v823_v10  ;;  %v848_v8 = vadd.f32 %v846_v35, %v824_v13  ;;  %1232 = vrot.lane.b32.xlu0 %v2198_v12, %s2120_s0  ;;  %1234 = vrot.lane.b32.xlu1 %v2207_v16, %s2120_s0 }
 0x165   :  { %1239 = vrot.lane.b32.xlu2 %v2178_v50, %s2120_s0 }
 0x166   :  { %v833_v34 = vpop.permute.xlu0 %832  ;;  %v835_v22 = vpop.permute.xlu1 %834 }
 0x167   :  { %v836_v29 = vsel %vm829_vm7, %v833_v34, %v835_v22  ;;  %v837_v7 = vsel %vm829_vm7, %v835_v22, %v833_v34  ;;  %v2697_v11 = vpop.permute.xlu2 %932  ;;  %vm1376_vm7 = vcmp.lt.s32.totalorder %v2311_v41, 99 }
 0x168   :  { %v856_v39 = vmul.f32 %v852_v5, %v837_v7  ;;  %v857_v19 = vmul.f32 %v853_v15, %v836_v29  ;;  %v955_v29 = vld [vmem:[#allocation6 + $0x87] ss:$8 sm:$0x3] }
 0x169   :  { %v958_v18 = vperm.slane %v955_v29, 1 }
 0x16a   :  { %v858_v23 = vadd.f32 %v856_v39, %v847_v14  ;;  %v859_v43 = vadd.f32 %v857_v19, %v848_v8 }
 0x16c   :  { %1241 = vrot.lane.b32.xlu0 %v2186_v52, %s2120_s0  ;;  %1267 = vrot.lane.b32.xlu1 %v2198_v12, %s2121_s1 }
 0x16d   :  { %1269 = vrot.lane.b32.xlu2 %v2207_v16, %s2121_s1 }
 0x16e   :  { %v863_v44 = vpop.permute.xlu0 %862  ;;  %v868_v37 = vpop.permute.xlu1 %867 }
 0x16f   :  { %v865_v0 = vsel %vm864_vm8, %v2660_v49, %v863_v44  ;;  %v866_v20 = vsel %vm864_vm8, %v863_v44, %v2660_v49  ;;  %v871_v27 = vsel %vm864_vm8, %v868_v37, %v2670_v42  ;;  %v872_v54 = vsel %vm864_vm8, %v2670_v42, %v868_v37  ;;  %v2707_v25 = vpop.permute.xlu2 %965  ;;  %v979_v44 = vld [vmem:[#allocation6 + $0x27] ss:$8 sm:$0x3]  ;;  %v990_v37 = vld [vmem:[#allocation6 + $0x90] ss:$8 sm:$0x3] }
 0x170   :  { %v880_v26 = vmul.f32 %v876_v47, %v866_v20  ;;  %v881_v32 = vmul.f32 %v877_v48, %v865_v0  ;;  %v891_v4 = vmul.f32 %v887_v56, %v872_v54  ;;  %v892_v57 = vmul.f32 %v888_v51, %v871_v27  ;;  %v1001_v27 = vld [vmem:[#allocation6 + $0x30] ss:$8 sm:$0x3]  ;;  %v1012_v54 = vld [vmem:[#allocation6 + $0x91] ss:$8 sm:$0x3] }
 0x171   :  { %v911_v49 = vperm.slane %v909_v28, 0  ;;  %vm1411_vm8 = vcmp.lt.s32.totalorder %v2311_v41, 98 }
 0x172   :  { %v882_v36 = vadd.f32 %v880_v26, %v858_v23  ;;  %v883_v58 = vadd.f32 %v881_v32, %v859_v43  ;;  %v981_v26 = vperm.slane %v979_v44, 0  ;;  %v982_v32 = vperm.slane %v979_v44, 1 }
 0x174   :  { %v893_v60 = vadd.f32 %v891_v4, %v882_v36  ;;  %v894_v61 = vadd.f32 %v892_v57, %v883_v58  ;;  %1274 = vrot.lane.b32.xlu0 %v2178_v50, %s2121_s1  ;;  %1276 = vrot.lane.b32.xlu1 %v2186_v52, %s2121_s1  ;;  %v992_v4 = vperm.slane %v990_v37, 0  ;;  %v993_v57 = vperm.slane %v990_v37, 1 }
 0x175   :  { %1302 = vrot.lane.b32.xlu2 %v2198_v12, %s2122_s26  ;;  %v1003_v58 = vperm.slane %v1001_v27, 0 }
 0x176   :  { %v896_v42 = vpop.permute.xlu0 %895  ;;  %v898_v62 = vpop.permute.xlu1 %897 }
 0x177   :  { %v900_v63 = vsel %vm899_vm9, %v896_v42, %v898_v62  ;;  %v901_v2 = vsel %vm899_vm9, %v898_v62, %v896_v42  ;;  %v2717_v3 = vpop.permute.xlu2 %974 }
 0x178   :  { %v915_v24 = vmul.f32 %v911_v49, %v901_v2  ;;  %v916_v31 = vmul.f32 %v912_v53, %v900_v63  ;;  %v1015_v49 = vperm.slane %v1012_v54, 1 }
 0x17a   :  { %v917_v46 = vadd.f32 %v915_v24, %v893_v60  ;;  %v918_v55 = vadd.f32 %v916_v31, %v894_v61  ;;  %v1004_v60 = vperm.slane %v1001_v27, 1  ;;  %v1014_v61 = vperm.slane %v1012_v54, 0 }
 0x17c   :  { %1304 = vrot.lane.b32.xlu0 %v2207_v16, %s2122_s26  ;;  %1309 = vrot.lane.b32.xlu1 %v2178_v50, %s2122_s26 }
 0x17d   :  { %1311 = vrot.lane.b32.xlu2 %v2186_v52, %s2122_s26 }
 0x17e   :  { %v905_v17 = vpop.permute.xlu0 %904  ;;  %v931_v35 = vpop.permute.xlu1 %930 }
 0x17f   :  { %v906_v9 = vsel %vm899_vm9, %v2688_v59, %v905_v17  ;;  %v907_v10 = vsel %vm899_vm9, %v905_v17, %v2688_v59  ;;  %v935_v13 = vsel %vm934_vm10, %v931_v35, %v2697_v11  ;;  %v936_v14 = vsel %vm934_vm10, %v2697_v11, %v931_v35  ;;  %v2735_v8 = vpop.permute.xlu2 %1029 }
 0x180   :  { %v926_v5 = vmul.f32 %v922_v30, %v907_v10  ;;  %v927_v15 = vmul.f32 %v923_v6, %v906_v9  ;;  %v950_v34 = vmul.f32 %v946_v1, %v936_v14  ;;  %v951_v22 = vmul.f32 %v947_v33, %v935_v13 }
 0x181   :  { %v957_v59 = vperm.slane %v955_v29, 0  ;;  %v1007_v6 = vmul.f32 %v1003_v58, %v2198_v12  ;;  %v1019_v1 = vmul.f32 %v1015_v49, %v2186_v52  ;;  %v1018_v33 = vmul.f32 %v1014_v61, %v2178_v50 }
 0x182   :  { %v928_v7 = vadd.f32 %v926_v5, %v917_v46  ;;  %v929_v39 = vadd.f32 %v927_v15, %v918_v55  ;;  %v1036_v46 = vld [vmem:[#allocation6 + $0x31] ss:$8 sm:$0x3]  ;;  %vm1446_vm9 = vcmp.lt.s32.totalorder %v2311_v41, 97 }
 0x183   :  { %v1038_v35 = vperm.slane %v1036_v46, 0  ;;  %v1039_v9 = vperm.slane %v1036_v46, 1 }
 0x184   :  { %v952_v19 = vadd.f32 %v950_v34, %v928_v7  ;;  %v953_v21 = vadd.f32 %v951_v22, %v929_v39  ;;  %1337 = vrot.lane.b32.xlu0 %v2198_v12, %s2123_s27  ;;  %1339 = vrot.lane.b32.xlu1 %v2207_v16, %s2123_s27 }
 0x185   :  { %1344 = vrot.lane.b32.xlu2 %v2178_v50, %s2123_s27 }
 0x186   :  { %v938_v11 = vpop.permute.xlu0 %937  ;;  %v940_v23 = vpop.permute.xlu1 %939 }
 0x187   :  { %v941_v43 = vsel %vm934_vm10, %v938_v11, %v940_v23  ;;  %v942_v47 = vsel %vm934_vm10, %v940_v23, %v938_v11  ;;  %v2744_v48 = vpop.permute.xlu2 %1059  ;;  %vm1481_vm10 = vcmp.lt.s32.totalorder %v2311_v41, 96 }
 0x188   :  { %v961_v56 = vmul.f32 %v957_v59, %v942_v47  ;;  %v962_v51 = vmul.f32 %v958_v18, %v941_v43  ;;  %v1071_v59 = vld [vmem:[#allocation6 + $0x32] ss:$8 sm:$0x3] }
 0x189   :  { %v1073_v47 = vperm.slane %v1071_v59, 0 }
 0x18a   :  { %v963_v0 = vadd.f32 %v961_v56, %v952_v19  ;;  %v964_v20 = vadd.f32 %v962_v51, %v953_v21  ;;  %v1047_v21 = vld [vmem:[#allocation6 + $0x92] ss:$8 sm:$0x3]  ;;  %v1074_v56 = vperm.slane %v1071_v59, 1 }
 0x18b   :  { %v1049_v23 = vperm.slane %v1047_v21, 0  ;;  %v1050_v43 = vperm.slane %v1047_v21, 1 }
 0x18c   :  { %1346 = vrot.lane.b32.xlu0 %v2186_v52, %s2123_s27  ;;  %1372 = vrot.lane.b32.xlu1 %v2198_v12, %s2124_s28 }
 0x18d   :  { %1374 = vrot.lane.b32.xlu2 %v2207_v16, %s2124_s28 }
 0x18e   :  { %v968_v28 = vpop.permute.xlu0 %967  ;;  %v973_v36 = vpop.permute.xlu1 %972 }
 0x18f   :  { %v970_v53 = vsel %vm969_vm11, %v2707_v25, %v968_v28  ;;  %v971_v42 = vsel %vm969_vm11, %v968_v28, %v2707_v25  ;;  %v976_v62 = vsel %vm969_vm11, %v973_v36, %v2717_v3  ;;  %v977_v63 = vsel %vm969_vm11, %v2717_v3, %v973_v36  ;;  %v2764_v2 = vpop.permute.xlu2 %1092  ;;  %v1082_v28 = vld [vmem:[#allocation6 + $0x93] ss:$8 sm:$0x3] }
 0x190   :  { %v985_v24 = vmul.f32 %v981_v26, %v971_v42  ;;  %v986_v31 = vmul.f32 %v982_v32, %v970_v53  ;;  %v996_v40 = vmul.f32 %v992_v4, %v977_v63  ;;  %v997_v45 = vmul.f32 %v993_v57, %v976_v62 }
 0x191   :  { %v1008_v25 = vmul.f32 %v1004_v60, %v2207_v16  ;;  %v1085_v49 = vperm.slane %v1082_v28, 1  ;;  %vm1516_vm11 = vcmp.lt.s32.totalorder %v2311_v41, 95 }
 0x192   :  { %v987_v55 = vadd.f32 %v985_v24, %v963_v0  ;;  %v988_v30 = vadd.f32 %v986_v31, %v964_v20 }
 0x194   :  { %v998_v3 = vadd.f32 %v996_v40, %v987_v55  ;;  %v999_v17 = vadd.f32 %v997_v45, %v988_v30  ;;  %1379 = vrot.lane.b32.xlu0 %v2178_v50, %s2124_s28  ;;  %1381 = vrot.lane.b32.xlu1 %v2186_v52, %s2124_s28  ;;  %v1106_v40 = vld [vmem:[#allocation6 + $0x33] ss:$8 sm:$0x3]  ;;  %v1117_v45 = vld [vmem:[#allocation6 + $0x94] ss:$8 sm:$0x3] }
 0x195   :  { %1407 = vrot.lane.b32.xlu2 %v2198_v12, %s2125_s29  ;;  %v1108_v30 = vperm.slane %v1106_v40, 0 }
 0x196   :  { %v1009_v10 = vadd.f32 %v1007_v6, %v998_v3  ;;  %v1010_v13 = vadd.f32 %v1008_v25, %v999_v17  ;;  %v1023_v14 = vpop.permute.xlu0 %1022  ;;  %v1025_v5 = vpop.permute.xlu1 %1024  ;;  %v1109_v6 = vperm.slane %v1106_v40, 1  ;;  %v1119_v25 = vperm.slane %v1117_v45, 0 }
 0x197   :  { %v1027_v15 = vsel %vm1026_vm12, %v1023_v14, %v1025_v5  ;;  %v1028_v34 = vsel %vm1026_vm12, %v1025_v5, %v1023_v14  ;;  %v2780_v22 = vpop.permute.xlu2 %1101 }
 0x198   :  { %v1020_v29 = vadd.f32 %v1018_v33, %v1009_v10  ;;  %v1021_v7 = vadd.f32 %v1019_v1, %v1010_v13  ;;  %v1042_v39 = vmul.f32 %v1038_v35, %v1027_v15  ;;  %v1043_v19 = vmul.f32 %v1039_v9, %v1028_v34 }
 0x199   :  { %v1120_v1 = vperm.slane %v1117_v45, 1 }
 0x19a   :  { %v1044_v18 = vadd.f32 %v1042_v39, %v1020_v29  ;;  %v1045_v11 = vadd.f32 %v1043_v19, %v1021_v7  ;;  %v1141_v29 = vld [vmem:[#allocation6 + $0x34] ss:$8 sm:$0x3] }
 0x19b   :  { %v1144_v59 = vperm.slane %v1141_v29, 1 }
 0x19c   :  { %1409 = vrot.lane.b32.xlu0 %v2207_v16, %s2125_s29  ;;  %1414 = vrot.lane.b32.xlu1 %v2178_v50, %s2125_s29 }
 0x19d   :  { %1416 = vrot.lane.b32.xlu2 %v2186_v52, %s2125_s29 }
 0x19e   :  { %v1032_v51 = vpop.permute.xlu0 %1031  ;;  %v1058_v44 = vpop.permute.xlu1 %1057 }
 0x19f   :  { %v1033_v37 = vsel %vm1026_vm12, %v2735_v8, %v1032_v51  ;;  %v1034_v0 = vsel %vm1026_vm12, %v1032_v51, %v2735_v8  ;;  %v1062_v20 = vsel %vm1061_vm13, %v1058_v44, %v2744_v48  ;;  %v1063_v27 = vsel %vm1061_vm13, %v2744_v48, %v1058_v44  ;;  %v2798_v54 = vpop.permute.xlu2 %1134  ;;  %v1152_v51 = vld [vmem:[#allocation6 + $0x95] ss:$8 sm:$0x3] }
 0x1a0   :  { %v1053_v26 = vmul.f32 %v1049_v23, %v1033_v37  ;;  %v1054_v32 = vmul.f32 %v1050_v43, %v1034_v0  ;;  %v1077_v4 = vmul.f32 %v1073_v47, %v1062_v20  ;;  %v1078_v57 = vmul.f32 %v1074_v56, %v1063_v27  ;;  %v1176_v44 = vld [vmem:[#allocation6 + $0x35] ss:$8 sm:$0x3] }
 0x1a1   :  { %v1084_v8 = vperm.slane %v1082_v28, 0  ;;  %v1154_v20 = vperm.slane %v1152_v51, 0  ;;  %v1155_v27 = vperm.slane %v1152_v51, 1  ;;  %vm1551_vm12 = vcmp.lt.s32.totalorder %v2311_v41, 94 }
 0x1a2   :  { %v1055_v36 = vadd.f32 %v1053_v26, %v1044_v18  ;;  %v1056_v58 = vadd.f32 %v1054_v32, %v1045_v11  ;;  %v1178_v26 = vperm.slane %v1176_v44, 0  ;;  %v1179_v32 = vperm.slane %v1176_v44, 1 }
 0x1a4   :  { %v1079_v60 = vadd.f32 %v1077_v4, %v1055_v36  ;;  %v1080_v61 = vadd.f32 %v1078_v57, %v1056_v58  ;;  %1442 = vrot.lane.b32.xlu0 %v2198_v12, %s2126_s30  ;;  %1444 = vrot.lane.b32.xlu1 %v2207_v16, %s2126_s30 }
 0x1a5   :  { %1449 = vrot.lane.b32.xlu2 %v2178_v50, %s2126_s30 }
 0x1a6   :  { %v1065_v48 = vpop.permute.xlu0 %1064  ;;  %v1067_v53 = vpop.permute.xlu1 %1066 }
 0x1a7   :  { %v1068_v42 = vsel %vm1061_vm13, %v1065_v48, %v1067_v53  ;;  %v1069_v62 = vsel %vm1061_vm13, %v1067_v53, %v1065_v48  ;;  %v2807_v63 = vpop.permute.xlu2 %1164  ;;  %vm1586_vm13 = vcmp.lt.s32.totalorder %v2311_v41, 93 }
 0x1a8   :  { %v1088_v24 = vmul.f32 %v1084_v8, %v1068_v42  ;;  %v1089_v31 = vmul.f32 %v1085_v49, %v1069_v62  ;;  %v1187_v42 = vld [vmem:[#allocation6 + $0x96] ss:$8 sm:$0x3] }
 0x1a9   :  { %v1190_v45 = vperm.slane %v1187_v42, 1 }
 0x1aa   :  { %v1090_v46 = vadd.f32 %v1088_v24, %v1079_v60  ;;  %v1091_v55 = vadd.f32 %v1089_v31, %v1080_v61 }
 0x1ac   :  { %1451 = vrot.lane.b32.xlu0 %v2186_v52, %s2126_s30  ;;  %1477 = vrot.lane.b32.xlu1 %v2198_v12, %s2127_s4 }
 0x1ad   :  { %1479 = vrot.lane.b32.xlu2 %v2207_v16, %s2127_s4 }
 0x1ae   :  { %v1095_v33 = vpop.permute.xlu0 %1094  ;;  %v1100_v3 = vpop.permute.xlu1 %1099 }
 0x1af   :  { %v1097_v17 = vsel %vm1096_vm14, %v2764_v2, %v1095_v33  ;;  %v1098_v35 = vsel %vm1096_vm14, %v1095_v33, %v2764_v2  ;;  %v1103_v9 = vsel %vm1096_vm14, %v1100_v3, %v2780_v22  ;;  %v1104_v10 = vsel %vm1096_vm14, %v2780_v22, %v1100_v3  ;;  %v2817_v13 = vpop.permute.xlu2 %1197  ;;  %v1211_v33 = vld [vmem:[#allocation6 + $0x36] ss:$8 sm:$0x3]  ;;  %v1222_v3 = vld [vmem:[#allocation6 + $0x97] ss:$8 sm:$0x3] }
 0x1b0   :  { %v1112_v14 = vmul.f32 %v1108_v30, %v1097_v17  ;;  %v1113_v5 = vmul.f32 %v1109_v6, %v1098_v35  ;;  %v1123_v15 = vmul.f32 %v1119_v25, %v1103_v9  ;;  %v1124_v34 = vmul.f32 %v1120_v1, %v1104_v10 }
 0x1b1   :  { %v1143_v2 = vperm.slane %v1141_v29, 0  ;;  %v1213_v9 = vperm.slane %v1211_v33, 0  ;;  %v1214_v10 = vperm.slane %v1211_v33, 1  ;;  %vm1621_vm14 = vcmp.lt.s32.totalorder %v2311_v41, 83 }
 0x1b2   :  { %v1114_v7 = vadd.f32 %v1112_v14, %v1090_v46  ;;  %v1115_v39 = vadd.f32 %v1113_v5, %v1091_v55  ;;  %v1224_v14 = vperm.slane %v1222_v3, 0  ;;  %v1225_v5 = vperm.slane %v1222_v3, 1 }
 0x1b4   :  { %v1125_v19 = vadd.f32 %v1123_v15, %v1114_v7  ;;  %v1126_v21 = vadd.f32 %v1124_v34, %v1115_v39  ;;  %1484 = vrot.lane.b32.xlu0 %v2178_v50, %s2127_s4  ;;  %1486 = vrot.lane.b32.xlu1 %v2186_v52, %s2127_s4 }
 0x1b5   :  { %1512 = vrot.lane.b32.xlu2 %v2198_v12, %s2128_s5 }
 0x1b6   :  { %v1128_v22 = vpop.permute.xlu0 %1127  ;;  %v1130_v18 = vpop.permute.xlu1 %1129 }
 0x1b7   :  { %v1132_v11 = vsel %vm1131_vm15, %v1128_v22, %v1130_v18  ;;  %v1133_v23 = vsel %vm1131_vm15, %v1130_v18, %v1128_v22  ;;  %v2827_v43 = vpop.permute.xlu2 %1206 }
 0x1b8   :  { %v1147_v47 = vmul.f32 %v1143_v2, %v1132_v11  ;;  %v1148_v56 = vmul.f32 %v1144_v59, %v1133_v23  ;;  %v1246_v11 = vld [vmem:[#allocation6 + $0x37] ss:$8 sm:$0x3] }
 0x1b9   :  { %v1249_v44 = vperm.slane %v1246_v11, 1 }
 0x1ba   :  { %v1149_v37 = vadd.f32 %v1147_v47, %v1125_v19  ;;  %v1150_v0 = vadd.f32 %v1148_v56, %v1126_v21 }
 0x1bc   :  { %1514 = vrot.lane.b32.xlu0 %v2207_v16, %s2128_s5  ;;  %1519 = vrot.lane.b32.xlu1 %v2178_v50, %s2128_s5 }
 0x1bd   :  { %1521 = vrot.lane.b32.xlu2 %v2186_v52, %s2128_s5 }
 0x1be   :  { %v1137_v4 = vpop.permute.xlu0 %1136  ;;  %v1163_v57 = vpop.permute.xlu1 %1162 }
 0x1bf   :  { %v1138_v28 = vsel %vm1131_vm15, %v2798_v54, %v1137_v4  ;;  %v1139_v36 = vsel %vm1131_vm15, %v1137_v4, %v2798_v54  ;;  %v1167_v58 = vsel %vm1166_vm0, %v1163_v57, %v2807_v63  ;;  %v1168_v60 = vsel %vm1166_vm0, %v2807_v63, %v1163_v57  ;;  %v2845_v61 = vpop.permute.xlu2 %1239  ;;  %v1257_v4 = vld [vmem:[#allocation6 + $0xa0] ss:$8 sm:$0x3] }
 0x1c0   :  { %v1158_v8 = vmul.f32 %v1154_v20, %v1138_v28  ;;  %v1159_v49 = vmul.f32 %v1155_v27, %v1139_v36  ;;  %v1182_v48 = vmul.f32 %v1178_v26, %v1167_v58  ;;  %v1183_v53 = vmul.f32 %v1179_v32, %v1168_v60  ;;  %v1281_v57 = vld [vmem:[#allocation6 + $0x40] ss:$8 sm:$0x3] }
 0x1c1   :  { %v1189_v54 = vperm.slane %v1187_v42, 0  ;;  %v1259_v58 = vperm.slane %v1257_v4, 0  ;;  %v1260_v60 = vperm.slane %v1257_v4, 1  ;;  %vm1656_vm15 = vcmp.lt.s32.totalorder %v2311_v41, 82 }
 0x1c2   :  { %v1160_v62 = vadd.f32 %v1158_v8, %v1149_v37  ;;  %v1161_v24 = vadd.f32 %v1159_v49, %v1150_v0  ;;  %v1283_v8 = vperm.slane %v1281_v57, 0  ;;  %v1284_v49 = vperm.slane %v1281_v57, 1 }
 0x1c4   :  { %v1184_v31 = vadd.f32 %v1182_v48, %v1160_v62  ;;  %v1185_v40 = vadd.f32 %v1183_v53, %v1161_v24  ;;  %1547 = vrot.lane.b32.xlu0 %v2198_v12, %s2129_s6  ;;  %1549 = vrot.lane.b32.xlu1 %v2207_v16, %s2129_s6 }
 0x1c5   :  { %1554 = vrot.lane.b32.xlu2 %v2178_v50, %s2129_s6 }
 0x1c6   :  { %v1170_v63 = vpop.permute.xlu0 %1169  ;;  %v1172_v46 = vpop.permute.xlu1 %1171 }
 0x1c7   :  { %v1173_v55 = vsel %vm1166_vm0, %v1170_v63, %v1172_v46  ;;  %v1174_v30 = vsel %vm1166_vm0, %v1172_v46, %v1170_v63  ;;  %v2854_v6 = vpop.permute.xlu2 %1269  ;;  %vm1691_vm0 = vcmp.lt.s32.totalorder %v2311_v41, 81 }
 0x1c8   :  { %v1193_v25 = vmul.f32 %v1189_v54, %v1173_v55  ;;  %v1194_v1 = vmul.f32 %v1190_v45, %v1174_v30  ;;  %v1292_v55 = vld [vmem:[#allocation6 + $0xa1] ss:$8 sm:$0x3] }
 0x1c9   :  { %v1295_v3 = vperm.slane %v1292_v55, 1 }
 0x1ca   :  { %v1195_v17 = vadd.f32 %v1193_v25, %v1184_v31  ;;  %v1196_v35 = vadd.f32 %v1194_v1, %v1185_v40 }
 0x1cc   :  { %1556 = vrot.lane.b32.xlu0 %v2186_v52, %s2129_s6  ;;  %1582 = vrot.lane.b32.xlu1 %v2198_v12, %s2130_s8 }
 0x1cd   :  { %1584 = vrot.lane.b32.xlu2 %v2207_v16, %s2130_s8 }
 0x1ce   :  { %v1200_v15 = vpop.permute.xlu0 %1199  ;;  %v1205_v34 = vpop.permute.xlu1 %1204 }
 0x1cf   :  { %v1202_v29 = vsel %vm1201_vm2, %v2817_v13, %v1200_v15  ;;  %v1203_v7 = vsel %vm1201_vm2, %v1200_v15, %v2817_v13  ;;  %v1208_v39 = vsel %vm1201_vm2, %v1205_v34, %v2827_v43  ;;  %v1209_v19 = vsel %vm1201_vm2, %v2827_v43, %v1205_v34  ;;  %v2864_v21 = vpop.permute.xlu2 %1302  ;;  %v1316_v15 = vld [vmem:[#allocation6 + $0x41] ss:$8 sm:$0x3]  ;;  %v1327_v34 = vld [vmem:[#allocation6 + $0xa2] ss:$8 sm:$0x3] }
 0x1d0   :  { %v1217_v2 = vmul.f32 %v1213_v9, %v1202_v29  ;;  %v1218_v59 = vmul.f32 %v1214_v10, %v1203_v7  ;;  %v1228_v22 = vmul.f32 %v1224_v14, %v1208_v39  ;;  %v1229_v18 = vmul.f32 %v1225_v5, %v1209_v19 }
 0x1d1   :  { %v1248_v13 = vperm.slane %v1246_v11, 0  ;;  %v1318_v39 = vperm.slane %v1316_v15, 0  ;;  %v1319_v19 = vperm.slane %v1316_v15, 1  ;;  %vm1726_vm2 = vcmp.lt.s32.totalorder %v2311_v41, 80 }
 0x1d2   :  { %v1219_v23 = vadd.f32 %v1217_v2, %v1195_v17  ;;  %v1220_v47 = vadd.f32 %v1218_v59, %v1196_v35  ;;  %v1329_v2 = vperm.slane %v1327_v34, 0  ;;  %v1330_v59 = vperm.slane %v1327_v34, 1 }
 0x1d4   :  { %v1230_v56 = vadd.f32 %v1228_v22, %v1219_v23  ;;  %v1231_v51 = vadd.f32 %v1229_v18, %v1220_v47  ;;  %1589 = vrot.lane.b32.xlu0 %v2178_v50, %s2130_s8  ;;  %1591 = vrot.lane.b32.xlu1 %v2186_v52, %s2130_s8 }
 0x1d5   :  { %1617 = vrot.lane.b32.xlu2 %v2198_v12, %s2131_s9 }
 0x1d6   :  { %v1233_v43 = vpop.permute.xlu0 %1232  ;;  %v1235_v37 = vpop.permute.xlu1 %1234 }
 0x1d7   :  { %v1237_v0 = vsel %vm1236_vm3, %v1233_v43, %v1235_v37  ;;  %v1238_v20 = vsel %vm1236_vm3, %v1235_v37, %v1233_v43  ;;  %v2874_v27 = vpop.permute.xlu2 %1311 }
 0x1d8   :  { %v1252_v26 = vmul.f32 %v1248_v13, %v1237_v0  ;;  %v1253_v32 = vmul.f32 %v1249_v44, %v1238_v20  ;;  %v1351_v0 = vld [vmem:[#allocation6 + $0x42] ss:$8 sm:$0x3] }
 0x1d9   :  { %v1354_v57 = vperm.slane %v1351_v0, 1 }
 0x1da   :  { %v1254_v28 = vadd.f32 %v1252_v26, %v1230_v56  ;;  %v1255_v36 = vadd.f32 %v1253_v32, %v1231_v51 }
 0x1dc   :  { %1619 = vrot.lane.b32.xlu0 %v2207_v16, %s2131_s9  ;;  %1624 = vrot.lane.b32.xlu1 %v2178_v50, %s2131_s9 }
 0x1dd   :  { %1626 = vrot.lane.b32.xlu2 %v2186_v52, %s2131_s9 }
 0x1de   :  { %v1242_v48 = vpop.permute.xlu0 %1241  ;;  %v1268_v53 = vpop.permute.xlu1 %1267 }
 0x1df   :  { %v1243_v42 = vsel %vm1236_vm3, %v2845_v61, %v1242_v48  ;;  %v1244_v62 = vsel %vm1236_vm3, %v1242_v48, %v2845_v61  ;;  %v1272_v24 = vsel %vm1271_vm4, %v1268_v53, %v2854_v6  ;;  %v1273_v31 = vsel %vm1271_vm4, %v2854_v6, %v1268_v53  ;;  %v2892_v40 = vpop.permute.xlu2 %1344  ;;  %v1362_v48 = vld [vmem:[#allocation6 + $0xa3] ss:$8 sm:$0x3] }
 0x1e0   :  { %v1263_v54 = vmul.f32 %v1259_v58, %v1243_v42  ;;  %v1264_v45 = vmul.f32 %v1260_v60, %v1244_v62  ;;  %v1287_v63 = vmul.f32 %v1283_v8, %v1272_v24  ;;  %v1288_v46 = vmul.f32 %v1284_v49, %v1273_v31  ;;  %v1386_v53 = vld [vmem:[#allocation6 + $0x43] ss:$8 sm:$0x3] }
 0x1e1   :  { %v1294_v61 = vperm.slane %v1292_v55, 0  ;;  %v1364_v24 = vperm.slane %v1362_v48, 0  ;;  %v1365_v31 = vperm.slane %v1362_v48, 1  ;;  %vm1761_vm3 = vcmp.lt.s32.totalorder %v2311_v41, 79 }
 0x1e2   :  { %v1265_v30 = vadd.f32 %v1263_v54, %v1254_v28  ;;  %v1266_v25 = vadd.f32 %v1264_v45, %v1255_v36  ;;  %v1388_v54 = vperm.slane %v1386_v53, 0  ;;  %v1389_v45 = vperm.slane %v1386_v53, 1 }
 0x1e4   :  { %v1289_v1 = vadd.f32 %v1287_v63, %v1265_v30  ;;  %v1290_v33 = vadd.f32 %v1288_v46, %v1266_v25  ;;  %1652 = vrot.lane.b32.xlu0 %v2198_v12, %s2132_s10  ;;  %1654 = vrot.lane.b32.xlu1 %v2207_v16, %s2132_s10 }
 0x1e5   :  { %1659 = vrot.lane.b32.xlu2 %v2178_v50, %s2132_s10 }
 0x1e6   :  { %v1275_v6 = vpop.permute.xlu0 %1274  ;;  %v1277_v17 = vpop.permute.xlu1 %1276 }
 0x1e7   :  { %v1278_v35 = vsel %vm1271_vm4, %v1275_v6, %v1277_v17  ;;  %v1279_v9 = vsel %vm1271_vm4, %v1277_v17, %v1275_v6  ;;  %v2901_v10 = vpop.permute.xlu2 %1374  ;;  %vm1796_vm4 = vcmp.lt.s32.totalorder %v2311_v41, 78 }
 0x1e8   :  { %v1298_v14 = vmul.f32 %v1294_v61, %v1278_v35  ;;  %v1299_v5 = vmul.f32 %v1295_v3, %v1279_v9  ;;  %v1397_v35 = vld [vmem:[#allocation6 + $0xa4] ss:$8 sm:$0x3] }
 0x1e9   :  { %v1400_v34 = vperm.slane %v1397_v35, 1 }
 0x1ea   :  { %v1300_v29 = vadd.f32 %v1298_v14, %v1289_v1  ;;  %v1301_v7 = vadd.f32 %v1299_v5, %v1290_v33 }
 0x1ec   :  { %1661 = vrot.lane.b32.xlu0 %v2186_v52, %s2132_s10  ;;  %1687 = vrot.lane.b32.xlu1 %v2198_v12, %s2133_s11 }
 0x1ed   :  { %1689 = vrot.lane.b32.xlu2 %v2207_v16, %s2133_s11 }
 0x1ee   :  { %v1305_v22 = vpop.permute.xlu0 %1304  ;;  %v1310_v18 = vpop.permute.xlu1 %1309 }
 0x1ef   :  { %v1307_v11 = vsel %vm1306_vm5, %v2864_v21, %v1305_v22  ;;  %v1308_v23 = vsel %vm1306_vm5, %v1305_v22, %v2864_v21  ;;  %v1313_v47 = vsel %vm1306_vm5, %v1310_v18, %v2874_v27  ;;  %v1314_v56 = vsel %vm1306_vm5, %v2874_v27, %v1310_v18  ;;  %v2911_v51 = vpop.permute.xlu2 %1407  ;;  %v1421_v22 = vld [vmem:[#allocation6 + $0x44] ss:$8 sm:$0x3]  ;;  %v1432_v18 = vld [vmem:[#allocation6 + $0xa5] ss:$8 sm:$0x3] }
 0x1f0   :  { %v1322_v13 = vmul.f32 %v1318_v39, %v1307_v11  ;;  %v1323_v44 = vmul.f32 %v1319_v19, %v1308_v23  ;;  %v1333_v43 = vmul.f32 %v1329_v2, %v1313_v47  ;;  %v1334_v37 = vmul.f32 %v1330_v59, %v1314_v56 }
 0x1f1   :  { %v1353_v21 = vperm.slane %v1351_v0, 0  ;;  %v1423_v47 = vperm.slane %v1421_v22, 0  ;;  %v1424_v56 = vperm.slane %v1421_v22, 1  ;;  %vm1831_vm5 = vcmp.lt.s32.totalorder %v2311_v41, 77 }
 0x1f2   :  { %v1324_v20 = vadd.f32 %v1322_v13, %v1300_v29  ;;  %v1325_v26 = vadd.f32 %v1323_v44, %v1301_v7  ;;  %v1434_v13 = vperm.slane %v1432_v18, 0  ;;  %v1435_v44 = vperm.slane %v1432_v18, 1 }
 0x1f4   :  { %v1335_v32 = vadd.f32 %v1333_v43, %v1324_v20  ;;  %v1336_v4 = vadd.f32 %v1334_v37, %v1325_v26  ;;  %1694 = vrot.lane.b32.xlu0 %v2178_v50, %s2133_s11  ;;  %1696 = vrot.lane.b32.xlu1 %v2186_v52, %s2133_s11 }
 0x1f5   :  { %1722 = vrot.lane.b32.xlu2 %v2198_v12, %s2134_s12 }
 0x1f6   :  { %v1338_v27 = vpop.permute.xlu0 %1337  ;;  %v1340_v28 = vpop.permute.xlu1 %1339 }
 0x1f7   :  { %v1342_v36 = vsel %vm1341_vm6, %v1338_v27, %v1340_v28  ;;  %v1343_v58 = vsel %vm1341_vm6, %v1340_v28, %v1338_v27  ;;  %v2921_v60 = vpop.permute.xlu2 %1416 }
 0x1f8   :  { %v1357_v8 = vmul.f32 %v1353_v21, %v1342_v36  ;;  %v1358_v49 = vmul.f32 %v1354_v57, %v1343_v58  ;;  %v1456_v36 = vld [vmem:[#allocation6 + $0x45] ss:$8 sm:$0x3] }
 0x1f9   :  { %v1459_v53 = vperm.slane %v1456_v36, 1 }
 0x1fa   :  { %v1359_v42 = vadd.f32 %v1357_v8, %v1335_v32  ;;  %v1360_v62 = vadd.f32 %v1358_v49, %v1336_v4 }
 0x1fc   :  { %1724 = vrot.lane.b32.xlu0 %v2207_v16, %s2134_s12  ;;  %1729 = vrot.lane.b32.xlu1 %v2178_v50, %s2134_s12 }
 0x1fd   :  { %1731 = vrot.lane.b32.xlu2 %v2186_v52, %s2134_s12 }
 0x1fe   :  { %v1347_v63 = vpop.permute.xlu0 %1346  ;;  %v1373_v46 = vpop.permute.xlu1 %1372 }
 0x1ff   :  { %v1348_v55 = vsel %vm1341_vm6, %v2892_v40, %v1347_v63  ;;  %v1349_v30 = vsel %vm1341_vm6, %v1347_v63, %v2892_v40  ;;  %v1377_v25 = vsel %vm1376_vm7, %v1373_v46, %v2901_v10  ;;  %v1378_v1 = vsel %vm1376_vm7, %v2901_v10, %v1373_v46  ;;  %v2939_v33 = vpop.permute.xlu2 %1449  ;;  %v1467_v63 = vld [vmem:[#allocation6 + $0xa6] ss:$8 sm:$0x3] }
 0x200   :  { %v1368_v61 = vmul.f32 %v1364_v24, %v1348_v55  ;;  %v1369_v3 = vmul.f32 %v1365_v31, %v1349_v30  ;;  %v1392_v6 = vmul.f32 %v1388_v54, %v1377_v25  ;;  %v1393_v17 = vmul.f32 %v1389_v45, %v1378_v1  ;;  %v1491_v46 = vld [vmem:[#allocation6 + $0x46] ss:$8 sm:$0x3] }
 0x201   :  { %v1399_v40 = vperm.slane %v1397_v35, 0  ;;  %v1469_v25 = vperm.slane %v1467_v63, 0  ;;  %v1493_v1 = vperm.slane %v1491_v46, 0 }
 0x202   :  { %v1370_v9 = vadd.f32 %v1368_v61, %v1359_v42  ;;  %v1371_v14 = vadd.f32 %v1369_v3, %v1360_v62  ;;  %v1494_v61 = vperm.slane %v1491_v46, 1  ;;  %v1561_v46 = vld [vmem:[#allocation6 + $0x50] ss:$8 sm:$0x3] }
 0x204   :  { %v1394_v5 = vadd.f32 %v1392_v6, %v1370_v9  ;;  %v1395_v15 = vadd.f32 %v1393_v17, %v1371_v14  ;;  %1757 = vrot.lane.b32.xlu0 %v2198_v12, %s2135_s13  ;;  %1759 = vrot.lane.b32.xlu1 %v2207_v16, %s2135_s13 }
 0x205   :  { %1764 = vrot.lane.b32.xlu2 %v2178_v50, %s2135_s13 }
 0x206   :  { %v1380_v10 = vpop.permute.xlu0 %1379  ;;  %v1382_v29 = vpop.permute.xlu1 %1381 }
 0x207   :  { %v1383_v7 = vsel %vm1376_vm7, %v1380_v10, %v1382_v29  ;;  %v1384_v39 = vsel %vm1376_vm7, %v1382_v29, %v1380_v10  ;;  %v2948_v19 = vpop.permute.xlu2 %1479 }
 0x208   :  { %v1403_v2 = vmul.f32 %v1399_v40, %v1383_v7  ;;  %v1404_v59 = vmul.f32 %v1400_v34, %v1384_v39  ;;  %v1502_v40 = vld [vmem:[#allocation6 + $0xa7] ss:$8 sm:$0x3] }
 0x209   :  { %v1505_v39 = vperm.slane %v1502_v40, 1 }
 0x20a   :  { %v1405_v11 = vadd.f32 %v1403_v2, %v1394_v5  ;;  %v1406_v23 = vadd.f32 %v1404_v59, %v1395_v15 }
 0x20c   :  { %1766 = vrot.lane.b32.xlu0 %v2186_v52, %s2135_s13  ;;  %1792 = vrot.lane.b32.xlu1 %v2198_v12, %s2136_s14 }
 0x20d   :  { %1794 = vrot.lane.b32.xlu2 %v2207_v16, %s2136_s14 }
 0x20e   :  { %v1410_v43 = vpop.permute.xlu0 %1409  ;;  %v1415_v37 = vpop.permute.xlu1 %1414 }
 0x20f   :  { %v1412_v0 = vsel %vm1411_vm8, %v2911_v51, %v1410_v43  ;;  %v1413_v20 = vsel %vm1411_vm8, %v1410_v43, %v2911_v51  ;;  %v1418_v26 = vsel %vm1411_vm8, %v1415_v37, %v2921_v60  ;;  %v1419_v32 = vsel %vm1411_vm8, %v2921_v60, %v1415_v37  ;;  %v2958_v4 = vpop.permute.xlu2 %1512 }
 0x210   :  { %v1427_v21 = vmul.f32 %v1423_v47, %v1412_v0  ;;  %v1428_v57 = vmul.f32 %v1424_v56, %v1413_v20  ;;  %v1438_v27 = vmul.f32 %v1434_v13, %v1418_v26  ;;  %v1439_v28 = vmul.f32 %v1435_v44, %v1419_v32  ;;  %v1526_v47 = vld [vmem:[#allocation6 + $0x47] ss:$8 sm:$0x3] }
 0x211   :  { %v1458_v51 = vperm.slane %v1456_v36, 0  ;;  %v1528_v44 = vperm.slane %v1526_v47, 0  ;;  %v1529_v43 = vperm.slane %v1526_v47, 1 }
 0x212   :  { %v1429_v58 = vadd.f32 %v1427_v21, %v1405_v11  ;;  %v1430_v8 = vadd.f32 %v1428_v57, %v1406_v23 }
 0x214   :  { %v1440_v49 = vadd.f32 %v1438_v27, %v1429_v58  ;;  %v1441_v48 = vadd.f32 %v1439_v28, %v1430_v8  ;;  %1799 = vrot.lane.b32.xlu0 %v2178_v50, %s2136_s14  ;;  %1801 = vrot.lane.b32.xlu1 %v2186_v52, %s2136_s14 }
 0x215   :  { %1827 = vrot.lane.b32.xlu2 %v2198_v12, %s2137_s15  ;;  %v1470_v12 = vperm.slane %v1467_v63, 1 }
 0x216   :  { %v1443_v60 = vpop.permute.xlu0 %1442  ;;  %v1445_v42 = vpop.permute.xlu1 %1444 }
 0x217   :  { %v1447_v62 = vsel %vm1446_vm9, %v1443_v60, %v1445_v42  ;;  %v1448_v24 = vsel %vm1446_vm9, %v1445_v42, %v1443_v60  ;;  %v2968_v31 = vpop.permute.xlu2 %1521 }
 0x218   :  { %v1462_v54 = vmul.f32 %v1458_v51, %v1447_v62  ;;  %v1463_v45 = vmul.f32 %v1459_v53, %v1448_v24 }
 0x21a   :  { %v1464_v55 = vadd.f32 %v1462_v54, %v1440_v49  ;;  %v1465_v30 = vadd.f32 %v1463_v45, %v1441_v48  ;;  %v1537_v45 = vld [vmem:[#allocation6 + $0xb0] ss:$8 sm:$0x3] }
 0x21c   :  { %1829 = vrot.lane.b32.xlu0 %v2207_v16, %s2137_s15  ;;  %1834 = vrot.lane.b32.xlu1 %v2178_v50, %s2137_s15 }
 0x21d   :  { %1836 = vrot.lane.b32.xlu2 %v2186_v52, %s2137_s15 }
 0x21e   :  { %v1452_v3 = vpop.permute.xlu0 %1451  ;;  %v1478_v6 = vpop.permute.xlu1 %1477 }
 0x21f   :  { %v1453_v17 = vsel %vm1446_vm9, %v2939_v33, %v1452_v3  ;;  %v1454_v35 = vsel %vm1446_vm9, %v1452_v3, %v2939_v33  ;;  %v1482_v50 = vsel %vm1481_vm10, %v1478_v6, %v2948_v19  ;;  %v1483_v16 = vsel %vm1481_vm10, %v2948_v19, %v1478_v6  ;;  %v2986_v9 = vpop.permute.xlu2 %1554 }
 0x220   :  { %v1473_v52 = vmul.f32 %v1469_v25, %v1453_v17  ;;  %v1474_v14 = vmul.f32 %v1470_v12, %v1454_v35  ;;  %v1497_v5 = vmul.f32 %v1493_v1, %v1482_v50  ;;  %v1498_v15 = vmul.f32 %v1494_v61, %v1483_v16  ;;  %v1572_v1 = vld [vmem:[#allocation6 + $0xb1] ss:$8 sm:$0x3] }
 0x221   :  { %v1504_v33 = vperm.slane %v1502_v40, 0  ;;  %v1563_v61 = vperm.slane %v1561_v46, 0  ;;  %v1564_v3 = vperm.slane %v1561_v46, 1 }
 0x222   :  { %v1475_v34 = vadd.f32 %v1473_v52, %v1464_v55  ;;  %v1476_v10 = vadd.f32 %v1474_v14, %v1465_v30  ;;  %v1539_v55 = vperm.slane %v1537_v45, 0  ;;  %v1540_v30 = vperm.slane %v1537_v45, 1 }
 0x223   :  { %v1574_v14 = vperm.slane %v1572_v1, 0 }
 0x224   :  { %v1499_v29 = vadd.f32 %v1497_v5, %v1475_v34  ;;  %v1500_v7 = vadd.f32 %v1498_v15, %v1476_v10  ;;  %v1575_v5 = vperm.slane %v1572_v1, 1  ;;  %v1596_v15 = vld [vmem:[#allocation6 + $0x51] ss:$8 sm:$0x3] }
 0x225   :  { %v1677_v1 = vld [vmem:[#allocation6 + $0xb4] ss:$8 sm:$0x3] }
 0x226   :  { %v1485_v2 = vpop.permute.xlu0 %1484  ;;  %v1487_v59 = vpop.permute.xlu1 %1486 }
 0x227   :  { %v1488_v22 = vsel %vm1481_vm10, %v1485_v2, %v1487_v59  ;;  %v1489_v19 = vsel %vm1481_vm10, %v1487_v59, %v1485_v2  ;;  %v2992_v18 = vpop.permute.xlu2 %1584 }
 0x228   :  { %v1508_v11 = vmul.f32 %v1504_v33, %v1488_v22  ;;  %v1509_v23 = vmul.f32 %v1505_v39, %v1489_v19  ;;  %v1599_v33 = vperm.slane %v1596_v15, 1 }
 0x22a   :  { %v1510_v56 = vadd.f32 %v1508_v11, %v1499_v29  ;;  %v1511_v13 = vadd.f32 %v1509_v23, %v1500_v7  ;;  %v1607_v29 = vld [vmem:[#allocation6 + $0xb2] ss:$8 sm:$0x3]  ;;  %v1598_v7 = vperm.slane %v1596_v15, 0 }
 0x22b   :  { %v1631_v11 = vld [vmem:[#allocation6 + $0x52] ss:$8 sm:$0x3]  ;;  %v1609_v47 = vperm.slane %v1607_v29, 0 }
 0x22e   :  { %v1515_v37 = vpop.permute.xlu0 %1514  ;;  %v1520_v0 = vpop.permute.xlu1 %1519 }
 0x22f   :  { %v1517_v20 = vsel %vm1516_vm11, %v2958_v4, %v1515_v37  ;;  %v1518_v26 = vsel %vm1516_vm11, %v1515_v37, %v2958_v4  ;;  %v3001_v57 = vpop.permute.xlu2 %1617  ;;  %v1523_v25 = vsel %vm1516_vm11, %v1520_v0, %v2968_v31  ;;  %v1524_v12 = vsel %vm1516_vm11, %v2968_v31, %v1520_v0 }
 0x230   :  { %v1532_v32 = vmul.f32 %v1528_v44, %v1517_v20  ;;  %v1533_v21 = vmul.f32 %v1529_v43, %v1518_v26  ;;  %v1543_v16 = vmul.f32 %v1539_v55, %v1523_v25  ;;  %v1544_v52 = vmul.f32 %v1540_v30, %v1524_v12 }
 0x231   :  { %v1610_v44 = vperm.slane %v1607_v29, 1  ;;  %v1633_v26 = vperm.slane %v1631_v11, 0  ;;  %v1701_v29 = vld [vmem:[#allocation6 + $0x54] ss:$8 sm:$0x3] }
 0x232   :  { %v1534_v27 = vadd.f32 %v1532_v32, %v1510_v56  ;;  %v1535_v28 = vadd.f32 %v1533_v21, %v1511_v13  ;;  %v1634_v32 = vperm.slane %v1631_v11, 1 }
 0x234   :  { %v1545_v2 = vadd.f32 %v1543_v16, %v1534_v27  ;;  %v1546_v59 = vadd.f32 %v1544_v52, %v1535_v28 }
 0x236   :  { %v1548_v36 = vpop.permute.xlu0 %1547  ;;  %v1550_v58 = vpop.permute.xlu1 %1549 }
 0x237   :  { %v3003_v8 = vpop.permute.xlu2 %1626  ;;  %v1552_v35 = vsel %vm1551_vm12, %v1548_v36, %v1550_v58  ;;  %v1553_v50 = vsel %vm1551_vm12, %v1550_v58, %v1548_v36  ;;  %v1642_v36 = vld [vmem:[#allocation6 + $0xb3] ss:$8 sm:$0x3] }
 0x238   :  { %v1567_v34 = vmul.f32 %v1563_v61, %v1552_v35  ;;  %v1568_v10 = vmul.f32 %v1564_v3, %v1553_v50  ;;  %v1644_v46 = vperm.slane %v1642_v36, 0  ;;  %v1645_v55 = vperm.slane %v1642_v36, 1 }
 0x23a   :  { %v1569_v56 = vadd.f32 %v1567_v34, %v1545_v2  ;;  %v1570_v13 = vadd.f32 %v1568_v10, %v1546_v59 }
 0x23e   :  { %v1557_v49 = vpop.permute.xlu0 %1556  ;;  %v1583_v48 = vpop.permute.xlu1 %1582 }
 0x23f   :  { %v3005_v51 = vpop.permute.xlu2 %1659  ;;  %v1558_v31 = vsel %vm1551_vm12, %v2986_v9, %v1557_v49  ;;  %v1559_v40 = vsel %vm1551_vm12, %v1557_v49, %v2986_v9  ;;  %v1587_v23 = vsel %vm1586_vm13, %v1583_v48, %v2992_v18  ;;  %v1588_v9 = vsel %vm1586_vm13, %v2992_v18, %v1583_v48 }
 0x240   :  { %v1578_v22 = vmul.f32 %v1574_v14, %v1558_v31  ;;  %v1579_v19 = vmul.f32 %v1575_v5, %v1559_v40  ;;  %v1602_v27 = vmul.f32 %v1598_v7, %v1587_v23  ;;  %v1603_v28 = vmul.f32 %v1599_v33, %v1588_v9 }
 0x241   :  { %v1679_v31 = vperm.slane %v1677_v1, 0 }
 0x242   :  { %v1580_v21 = vadd.f32 %v1578_v22, %v1569_v56  ;;  %v1581_v18 = vadd.f32 %v1579_v19, %v1570_v13  ;;  %v1704_v22 = vperm.slane %v1701_v29, 1 }
 0x244   :  { %v1605_v30 = vadd.f32 %v1603_v28, %v1581_v18 }
 0x246   :  { %v1590_v53 = vpop.permute.xlu0 %1589  ;;  %v1592_v60 = vpop.permute.xlu1 %1591 }
 0x247   :  { %v3009_v4 = vpop.permute.xlu2 %1689  ;;  %v1593_v0 = vsel %vm1586_vm13, %v1590_v53, %v1592_v60  ;;  %v1594_v20 = vsel %vm1586_vm13, %v1592_v60, %v1590_v53  ;;  %v1666_v53 = vld [vmem:[#allocation6 + $0x53] ss:$8 sm:$0x3]  ;;  %v1604_v60 = vadd.f32 %v1602_v27, %v1580_v21  ;;  %vm1907_vm13 = vcmask 1040384  }
 0x248   :  { %v1613_v48 = vmul.f32 %v1609_v47, %v1593_v0  ;;  %v1614_v45 = vmul.f32 %v1610_v44, %v1594_v20  ;;  %v1668_v50 = vperm.slane %v1666_v53, 0  ;;  %v1669_v16 = vperm.slane %v1666_v53, 1  ;;  %v1736_v47 = vld [vmem:[#allocation6 + $0x55] ss:$8 sm:$0x3] }
 0x249   :  { %v1738_v18 = vperm.slane %v1736_v47, 0 }
 0x24a   :  { %v1615_v3 = vadd.f32 %v1613_v48, %v1604_v60  ;;  %v1616_v35 = vadd.f32 %v1614_v45, %v1605_v30 }
 0x24e   :  { %v1620_v42 = vpop.permute.xlu0 %1619  ;;  %v3007_v62 = vpop.permute.xlu1 %1624 }
 0x24f   :  { %v3015_v63 = vpop.permute.xlu2 %1722  ;;  %v1622_v58 = vsel %vm1621_vm14, %v3001_v57, %v1620_v42  ;;  %v1623_v49 = vsel %vm1621_vm14, %v1620_v42, %v3001_v57  ;;  %v1628_v61 = vsel %vm1621_vm14, %v3007_v62, %v3003_v8  ;;  %v1629_v57 = vsel %vm1621_vm14, %v3003_v8, %v3007_v62 }
 0x250   :  { %v1637_v25 = vmul.f32 %v1633_v26, %v1622_v58  ;;  %v1638_v12 = vmul.f32 %v1634_v32, %v1623_v49  ;;  %v1680_v8 = vperm.slane %v1677_v1, 1  ;;  %v1648_v34 = vmul.f32 %v1644_v46, %v1628_v61  ;;  %v1747_v58 = vld [vmem:[#allocation6 + $0xb6] ss:$8 sm:$0x3] }
 0x251   :  { %v1649_v10 = vmul.f32 %v1645_v55, %v1629_v57  ;;  %v1749_v53 = vperm.slane %v1747_v58, 0  ;;  %v1782_v1 = vld [vmem:[#allocation6 + $0xb7] ss:$8 sm:$0x3] }
 0x252   :  { %v1639_v62 = vadd.f32 %v1637_v25, %v1615_v3  ;;  %v1640_v40 = vadd.f32 %v1638_v12, %v1616_v35 }
 0x254   :  { %v1650_v19 = vadd.f32 %v1648_v34, %v1639_v62  ;;  %v1651_v11 = vadd.f32 %v1649_v10, %v1640_v40 }
 0x256   :  { %v3011_v24 = vpop.permute.xlu0 %1652  ;;  %v3013_v54 = vpop.permute.xlu1 %1654 }
 0x257   :  { %v3039_v39 = vpop.permute.xlu2 %1731  ;;  %v1657_v5 = vsel %vm1656_vm15, %v3011_v24, %v3013_v54  ;;  %v1658_v15 = vsel %vm1656_vm15, %v3013_v54, %v3011_v24  ;;  %v1712_v24 = vld [vmem:[#allocation6 + $0xb5] ss:$8 sm:$0x3]  ;;  %v1703_v54 = vperm.slane %v1701_v29, 0 }
 0x258   :  { %v1672_v2 = vmul.f32 %v1668_v50, %v1657_v5  ;;  %v1673_v59 = vmul.f32 %v1669_v16, %v1658_v15  ;;  %v1715_v0 = vperm.slane %v1712_v24, 1  ;;  %v1806_v29 = vld [vmem:[#allocation6 + $0x57] ss:$8 sm:$0x3] }
 0x25a   :  { %v1674_v13 = vadd.f32 %v1672_v2, %v1650_v19  ;;  %v1675_v44 = vadd.f32 %v1673_v59, %v1651_v11  ;;  %v1808_v59 = vperm.slane %v1806_v29, 0 }
 0x25e   :  { %v3024_v6 = vpop.permute.xlu0 %1661  ;;  %v3026_v17 = vpop.permute.xlu1 %1687 }
 0x25f   :  { %v3071_v42 = vpop.permute.xlu2 %1764  ;;  %v1663_v7 = vsel %vm1656_vm15, %v3005_v51, %v3024_v6  ;;  %v1664_v33 = vsel %vm1656_vm15, %v3024_v6, %v3005_v51  ;;  %v1692_v56 = vsel %vm1691_vm0, %v3026_v17, %v3009_v4  ;;  %v1693_v51 = vsel %vm1691_vm0, %v3009_v4, %v3026_v17 }
 0x260   :  { %v1683_v23 = vmul.f32 %v1679_v31, %v1663_v7  ;;  %v1684_v9 = vmul.f32 %v1680_v8, %v1664_v33  ;;  %v1714_v6 = vperm.slane %v1712_v24, 0  ;;  %v1739_v4 = vperm.slane %v1736_v47, 1 }
 0x261   :  { %v1707_v28 = vmul.f32 %v1703_v54, %v1692_v56  ;;  %v1708_v36 = vmul.f32 %v1704_v22, %v1693_v51  ;;  %v1784_v31 = vperm.slane %v1782_v1, 0  ;;  %v1785_v8 = vperm.slane %v1782_v1, 1  ;;  %v1817_v54 = vld [vmem:[#allocation6 + $0xc0] ss:$8 sm:$0x3] }
 0x262   :  { %v1685_v17 = vadd.f32 %v1683_v23, %v1674_v13  ;;  %v1686_v27 = vadd.f32 %v1684_v9, %v1675_v44  ;;  %v1809_v24 = vperm.slane %v1806_v29, 1  ;;  %v1820_v13 = vperm.slane %v1817_v54, 1 }
 0x263   :  { %vm1915_vm15 = vcmp.lt.s32.totalorder %v155_v38, 256 }
 0x264   :  { %v1709_v60 = vadd.f32 %v1707_v28, %v1685_v17  ;;  %v1710_v30 = vadd.f32 %v1708_v36, %v1686_v27  ;;  %v1852_v17 = vld [vmem:[#allocation6 + $0xc1] ss:$8 sm:$0x3] }
 0x266   :  { %v3048_v43 = vpop.permute.xlu0 %1694  ;;  %v3050_v37 = vpop.permute.xlu1 %1696 }
 0x267   :  { %v1698_v32 = vsel %vm1691_vm0, %v3048_v43, %v3050_v37  ;;  %v1699_v21 = vsel %vm1691_vm0, %v3050_v37, %v3048_v43  ;;  %v1795_v49 = vpop.permute.xlu2 %1794  ;;  %v1750_v43 = vperm.slane %v1747_v58, 1  ;;  %v1771_v37 = vld [vmem:[#allocation6 + $0x56] ss:$8 sm:$0x3] }
 0x268   :  { %v1718_v46 = vmul.f32 %v1714_v6, %v1698_v32  ;;  %v1719_v55 = vmul.f32 %v1715_v0, %v1699_v21  ;;  %v1773_v35 = vperm.slane %v1771_v37, 0  ;;  %v1774_v50 = vperm.slane %v1771_v37, 1 }
 0x269   :  { %v1819_v6 = vperm.slane %v1817_v54, 0 }
 0x26a   :  { %v1720_v57 = vadd.f32 %v1718_v46, %v1709_v60  ;;  %v1721_v3 = vadd.f32 %v1719_v55, %v1710_v30  ;;  %v1854_v46 = vperm.slane %v1852_v17, 0  ;;  %v1855_v55 = vperm.slane %v1852_v17, 1 }
 0x26e   :  { %v1725_v52 = vpop.permute.xlu0 %1724  ;;  %v1730_v14 = vpop.permute.xlu1 %1729 }
 0x26f   :  { %v1727_v48 = vsel %vm1726_vm2, %v3015_v63, %v1725_v52  ;;  %v1728_v45 = vsel %vm1726_vm2, %v1725_v52, %v3015_v63  ;;  %v1733_v61 = vsel %vm1726_vm2, %v1730_v14, %v3039_v39  ;;  %v1734_v63 = vsel %vm1726_vm2, %v3039_v39, %v1730_v14  ;;  %v1828_v2 = vpop.permute.xlu2 %1827 }
 0x270   :  { %v1742_v25 = vmul.f32 %v1738_v18, %v1727_v48  ;;  %v1743_v12 = vmul.f32 %v1739_v4, %v1728_v45  ;;  %v1753_v34 = vmul.f32 %v1749_v53, %v1733_v61  ;;  %v1754_v10 = vmul.f32 %v1750_v43, %v1734_v63  ;;  %v1841_v4 = vld [vmem:[#allocation6 + $0x60] ss:$8 sm:$0x3] }
 0x271   :  { %v1843_v36 = vperm.slane %v1841_v4, 0  ;;  %v1844_v58 = vperm.slane %v1841_v4, 1 }
 0x272   :  { %v1744_v62 = vadd.f32 %v1742_v25, %v1720_v57  ;;  %v1745_v40 = vadd.f32 %v1743_v12, %v1721_v3 }
 0x274   :  { %v1755_v22 = vadd.f32 %v1753_v34, %v1744_v62  ;;  %v1756_v19 = vadd.f32 %v1754_v10, %v1745_v40 }
 0x276   :  { %v1758_v20 = vpop.permute.xlu0 %1757  ;;  %v1760_v26 = vpop.permute.xlu1 %1759 }
 0x277   :  { %v1762_v5 = vsel %vm1761_vm3, %v1758_v20, %v1760_v26  ;;  %v1763_v15 = vsel %vm1761_vm3, %v1760_v26, %v1758_v20  ;;  %v1837_v45 = vpop.permute.xlu2 %1836 }
 0x278   :  { %v1777_v7 = vmul.f32 %v1773_v35, %v1762_v5  ;;  %v1778_v33 = vmul.f32 %v1774_v50, %v1763_v15  ;;  %v1863_v50 = vstv %s3159_s2  ;;  %s2138_s2 = smov [#allocation8]  }
 0x279   :  { %s1923_s19 = sshll.u32 %s2138_s2, 4  ;;  %s1924_s19 = int_to_ptr.vmem [resolvable:$true] %s1923_s19 }
 0x27a   :  { %v1779_v56 = vadd.f32 %v1777_v7, %v1755_v22 }
 0x27e   :  { %v1767_v16 = vpop.permute.xlu0 %1766  ;;  %v1793_v52 = vpop.permute.xlu1 %1792 }
 0x27f   :  { %v1768_v39 = vsel %vm1761_vm3, %v3071_v42, %v1767_v16  ;;  %v1769_v14 = vsel %vm1761_vm3, %v1767_v16, %v3071_v42  ;;  %v1797_v9 = vsel %vm1796_vm4, %v1793_v52, %v1795_v49  ;;  %v1798_v47 = vsel %vm1796_vm4, %v1795_v49, %v1793_v52 }
 0x280   :  { %v1788_v11 = vmul.f32 %v1784_v31, %v1768_v39  ;;  %v1789_v23 = vmul.f32 %v1785_v8, %v1769_v14  ;;  %v1780_v42 = vadd.f32 %v1778_v33, %v1756_v19  ;;  %v1812_v21 = vmul.f32 %v1808_v59, %v1797_v9 }
 0x281   :  { %v1813_v18 = vmul.f32 %v1809_v24, %v1798_v47 }
 0x282   :  { %v1790_v26 = vadd.f32 %v1788_v11, %v1779_v56  ;;  %v1791_v32 = vadd.f32 %v1789_v23, %v1780_v42 }
 0x284   :  { %v1814_v49 = vadd.f32 %v1812_v21, %v1790_v26  ;;  %v1815_v48 = vadd.f32 %v1813_v18, %v1791_v32 }
 0x286   :  { %v1800_v51 = vpop.permute.xlu0 %1799  ;;  %v1802_v44 = vpop.permute.xlu1 %1801 }
 0x287   :  { %v1803_v0 = vsel %vm1796_vm4, %v1800_v51, %v1802_v44  ;;  %v1804_v20 = vsel %vm1796_vm4, %v1802_v44, %v1800_v51 }
 0x288   :  { %v1823_v27 = vmul.f32 %v1819_v6, %v1803_v0  ;;  %v1824_v28 = vmul.f32 %v1820_v13, %v1804_v20 }
 0x28a   :  { %v1825_v53 = vadd.f32 %v1823_v27, %v1814_v49  ;;  %v1826_v43 = vadd.f32 %v1824_v28, %v1815_v48 }
 0x28e   :  { %v1830_v37 = vpop.permute.xlu0 %1829  ;;  %v1835_v60 = vpop.permute.xlu1 %1834 }
 0x28f   :  { %v1832_v30 = vsel %vm1831_vm5, %v1828_v2, %v1830_v37  ;;  %v1833_v25 = vsel %vm1831_vm5, %v1830_v37, %v1828_v2  ;;  %v1838_v12 = vsel %vm1831_vm5, %v1835_v60, %v1837_v45  ;;  %v1839_v1 = vsel %vm1831_vm5, %v1837_v45, %v1835_v60 }
 0x290   :  { %v1847_v61 = vmul.f32 %v1843_v36, %v1832_v30  ;;  %v1848_v63 = vmul.f32 %v1844_v58, %v1833_v25  ;;  %v1858_v57 = vmul.f32 %v1854_v46, %v1838_v12  ;;  %v1859_v3 = vmul.f32 %v1855_v55, %v1839_v1 }
 0x292   :  { %v1849_v41 = vadd.f32 %v1847_v61, %v1825_v53  ;;  %v1850_v35 = vadd.f32 %v1848_v63, %v1826_v43 }
 0x294   :  { %v1860_v16 = vadd.f32 %v1858_v57, %v1849_v41  ;;  %v1861_v52 = vadd.f32 %v1859_v3, %v1850_v35 }
 0x296   :  { %v1864_v5 = vadd.f32 %v1863_v50, %v1860_v16  ;;  %v1865_v15 = vadd.f32 %v1863_v50, %v1861_v52 }
 0x298   :  { %v1939_v31 = vmul.f32 -1.442695, %v1864_v5  ;;  %v1940_v8 = vmul.f32 -1.442695, %v1865_v15 }
 0x29a   :  { %1998 = vpow2.f32 %v1939_v31 }
 0x29b   :  { %2000 = vpow2.f32 %v1940_v8 }
 0x2a0   :  { %v1999_v62 = vpop.eup %1998 }
 0x2a1   :  { %v2001_v40 = vpop.eup %2000  ;;  %v1872_v34 = vadd.f32 1.0, %v1999_v62 }
 0x2a2   :  { %v1873_v10 = vadd.f32 1.0, %v2001_v40 }
 0x2a3   :  { %2002 = vrcp.f32 %v1872_v34  ;;  %vm1879_vm8 = vweird.f32 %v1872_v34  ;;  %v1885_v11 = vand.u32 2147483648, %v1872_v34  ;;  %v1883_v9 = vand.u32 2147483647, %v1872_v34 }
 0x2a4   :  { %2004 = vrcp.f32 %v1873_v10  ;;  %v1900_v24 = vand.u32 2147483648, %v1873_v10  ;;  %v1898_v22 = vand.u32 2147483647, %v1873_v10  ;;  %vm1894_vm9 = vweird.f32 %v1873_v10 }
 0x2a5   :  { %v1886_v6 = vor.u32 1.1754944e-38, %v1885_v11  ;;  %vm1884_vm14 = vcmp.eq.f32.partialorder %v1883_v9, 8.507059e+37 }
 0x2a6   :  { %v1901_v56 = vor.u32 1.1754944e-38, %v1900_v24  ;;  %vm1899_vm12 = vcmp.eq.f32.partialorder %v1898_v22, 8.507059e+37 }
 0x2a9   :  { %v2003_v29 = vpop.eup %2002 }
 0x2aa   :  { %v2005_v39 = vpop.eup %2004  ;;  %v1875_v14 = vmul.f32 %v2003_v29, %v1872_v34  ;;  %vm1880_vm6 = vweird.f32 %v2003_v29 }
 0x2ab   :  { %v1890_v7 = vmul.f32 %v2005_v39, %v1873_v10  ;;  %vm1895_vm7 = vweird.f32 %v2005_v39  ;;  %vm3143_vm10 = vmor %vm1879_vm8, %vm1880_vm6 }
 0x2ac   :  { %v1876_v33 = vsub.f32 1.0, %v1875_v14  ;;  %vm1896_vm11 = vmor %vm1894_vm9, %vm1895_vm7 }
 0x2ad   :  { %v1891_v2 = vsub.f32 1.0, %v1890_v7 }
 0x2ae   :  { %v1877_v59 = vmul.f32 %v2003_v29, %v1876_v33 }
 0x2af   :  { %v1892_v54 = vmul.f32 %v2005_v39, %v1891_v2 }
 0x2b0   :  { %v1878_v19 = vadd.f32 %v2003_v29, %v1877_v59 }
 0x2b1   :  { %v1893_v47 = vadd.f32 %v2005_v39, %v1892_v54 }
 0x2b2   :  { %v1882_v42 = vsel %vm3143_vm10, %v2003_v29, %v1878_v19 }
 0x2b3   :  { %v1897_v51 = vsel %vm1896_vm11, %v2005_v39, %v1893_v47  ;;  %v1887_v0 = vsel %vm1884_vm14, %v1886_v6, %v1882_v42 }
 0x2b4   :  { %v1902_v13 = vsel %vm1899_vm12, %v1901_v56, %v1897_v51 }
 0x2b5   :  { %v1906_v44 = vrot.slane %v1902_v13, 7 }
 0x2b7   :  { %v1908_v20 = vsel %vm1907_vm13, %v1887_v0, %v1906_v44  ;;  %v1909_v26 = vsel %vm146_vm1, %v1887_v0, %v1906_v44 }
 0x2b8   :  { %v1910_v32 = vrot.slane %v1909_v26, 1  ;;  %1917 = vst.msk [vmem:[#allocation8] sm:$0x3] %vm1915_vm15, %v1908_v20 }
 0x2ba   :  { %1918 = vst.msk [vmem:[#allocation8 + $0x2] sm:$0x3] %vm1915_vm15, %v1910_v32 }
 0x2bb   :  { %1931 = dma.vmem_to_hbm [thread:$0]  %s1924_s19, 64, %s1926_s22, [#allocation5], %s2101_s7, %s2101_s7, %s2112_s18  }
 0x2bc   :  { %2082 = dma.done.wait [#allocation5], 64  }
 0x2bd   :  { %2083 = vsyncadd [#allocation5], 4294967232 }
 0x2be   :  { %1936 = vsyncpa [#allocation4], 1 }
 0x2bf   :  { %1937 = vsyncpa [#allocation7], 1 }
 0x2c0   :  { %1938 = vsyncpa [#allocation5], 1 }

</bundles_post_ra>
